<compile_context>
chip_gen: v6e
topology: v6e:2x2x1
jax: 0.10.0
libtpu: 0.0.40
codegen_flags: <defaults>
</compile_context>

<pallas_src>
import math
from functools import partial

import jax
import jax.numpy as jnp
from jax.experimental import pallas as pl
from jax.experimental.pallas import tpu as pltpu

# ----------------------------- model config ---------------------------------
D_IN = 3          # xyz points
D_OUT = 1         # SDF value
D_HIDDEN = 32
N_LAYERS = 5      # => 6 linear layers (num_layers = N_LAYERS + 2)
SKIP_IN = (4,)
BIAS = 0.5
SCALE = 1.0
INSIDE_OUTSIDE = False

_DIMS = [D_IN] + [D_HIDDEN] * N_LAYERS + [D_OUT]
_NUM_LAYERS = len(_DIMS)            # 7
_N_LIN = _NUM_LAYERS - 1            # 6 linear layers
_INV_SQRT2 = 1.0 / math.sqrt(2.0)
_SKIP_HID = D_HIDDEN - D_IN         # 29 = out_dim of the layer feeding the skip


def _round_up(a, b):
    return (a + b - 1) // b * b


# --------------------------- parameter init ---------------------------------
def init_params(key):
    """Deterministic geometric init matching NPullNetwork.__init__.

    Weights are stored as (in_dim, out_dim); torch nn.Linear stores the
    transpose (out_dim, in_dim).
    """
    params = []
    for l in range(_N_LIN):
        if l + 1 in SKIP_IN:
            out_dim = _DIMS[l + 1] - _DIMS[0]
        else:
            out_dim = _DIMS[l + 1]
        in_dim = _DIMS[l]
        key, kw = jax.random.split(key)
        if l == _NUM_LAYERS - 2:
            # last layer: normal(mean=+-sqrt(pi)/sqrt(in_dim), std=1e-4), bias=-+bias
            mean = math.sqrt(math.pi) / math.sqrt(in_dim)
            if INSIDE_OUTSIDE:
                mean = -mean
                b_val = BIAS
            else:
                b_val = -BIAS
            w = mean + 1e-4 * jax.random.normal(kw, (in_dim, out_dim), jnp.float32)
            b = jnp.full((1, out_dim), b_val, jnp.float32)
        else:
            # multires == 0 => plain geometric init branch
            std = math.sqrt(2.0) / math.sqrt(out_dim)
            w = std * jax.random.normal(kw, (in_dim, out_dim), jnp.float32)
            b = jnp.zeros((1, out_dim), jnp.float32)
        params.append((w, b))
    return params


# --------------------------- host-side packing --------------------------------
def pack_params(params, g=8):
    """Pack weights into block-diag bf16 tiles + one small f32 misc buffer.

    Returns:
      wbd  : (5, g*32, g*32) bf16 — layer l in 0..4 is kron(I_g, block_l) with
             block_0 = W0^T placed in columns 29:31 (input coords live there),
             block_1 = W1^T, block_2 = W2^T,
             block_3 = W3^T in rows 0:28 (rows 29:31 zero -> skip slots),
             block_4 = W4^T (torch cat order [hidden(29), inputs(3)] matches).
      misc : (g*32, 8) f32 — col l (0..4) = bias of layer l tiled per group,
             col 5 = last-layer weight w5 tiled per group, col 6 = b5 broadcast.
    """
    (w0, b0), (w1, b1), (w2, b2), (w3, b3), (w4, b4), (w5, b5) = params
    fb = D_HIDDEN

    blk0 = jnp.zeros((fb, fb), jnp.float32).at[:, _SKIP_HID:].set(w0.T)
    blk1 = w1.T
    blk2 = w2.T
    blk3 = jnp.zeros((fb, fb), jnp.float32).at[:_SKIP_HID, :].set(w3.T)
    blk4 = w4.T
    eye = jnp.eye(g, dtype=jnp.float32)
    wbd = jnp.stack([jnp.kron(eye, b) for b in (blk0, blk1, blk2, blk3, blk4)])
    wbd = wbd.astype(jnp.bfloat16)                        # (5, g*32, g*32)

    gf = g * fb
    b3p = jnp.zeros((fb,), jnp.float32).at[:_SKIP_HID].set(b3[0])
    misc = jnp.zeros((gf, 8), jnp.float32)
    for i, col in enumerate((b0[0], b1[0], b2[0], b3p, b4[0])):
        misc = misc.at[:, i].set(jnp.tile(col, g))
    misc = misc.at[:, 5].set(jnp.tile(w5[:, 0], g))       # last-layer weight, f32
    misc = misc.at[:, 6].set(jnp.full((gf,), b5[0, 0]))   # last-layer bias
    return wbd, misc


# ------------------------------- kernel --------------------------------------
def npull_kernel(x_ref, w_ref, m_ref, out_ref):
    """Fused MLP forward for one tile of g point-groups.

    x_ref  : (3, g*tpg)        f32, lane-dense transposed points
    w_ref  : (5, g*32, g*32)   bf16 block-diagonal weights (layers 0..4)
    m_ref  : (g*32, 8)         f32 biases / last-layer weight / last-layer bias
    out_ref: (1, g, tpg)       f32 SDF output (group-major, lane-dense)
    """
    g = out_ref.shape[1]
    tpg = out_ref.shape[2]
    fb = D_HIDDEN

    xb = x_ref[...]                                     # (3, g*tpg)
    if SCALE != 1.0:
        xb = xb * SCALE
    m = m_ref[...]                                      # (g*32, 8)

    # Embed each group's 3 coords into rows 29:31 of its 32-row feature block.
    # Used both as the layer-0 matmul operand (W0^T sits in cols 29:31 of its
    # diagonal block) and as the skip-layer addend (rows 29:31 of h3 are zero).
    zpad = jnp.zeros((fb - D_IN, tpg), jnp.float32)
    pieces = []
    for gg in range(g):
        pieces.append(zpad)
        pieces.append(xb[:, gg * tpg:(gg + 1) * tpg])   # lane-aligned static slice
    inp_emb = jnp.concatenate(pieces, axis=0)           # (g*32, tpg) f32

    def layer(l, act):
        r = jnp.dot(w_ref[l], act.astype(jnp.bfloat16),
                    preferred_element_type=jnp.float32) + m[:, l:l + 1]
        return jnp.maximum(r, 0.0)

    h = layer(0, inp_emb)                               # lin0 + relu
    h = layer(1, h)                                     # lin1 + relu
    h = layer(2, h)                                     # lin2 + relu
    h = layer(3, h)                                     # lin3 (29 out) + relu
    h = layer(4, (h + inp_emb) * _INV_SQRT2)            # skip concat/sqrt2 + lin4 + relu

    # lin5 (32 -> 1, no activation) in f32 on the VPU/XLU: weighted per-group
    # sublane reduction instead of a 7th (1-useful-row) MXU matmul.
    t = h * m[:, 5:6]                                   # broadcast w5 over lanes
    rows = [jnp.sum(t[gg * fb:(gg + 1) * fb, :], axis=0, keepdims=True)
            for gg in range(g)]
    out = jnp.concatenate(rows, axis=0) + m[0:g, 6:7]   # (g, tpg)
    if SCALE != 1.0:
        out = out * (1.0 / SCALE)
    out_ref[0] = out


# ------------------------------- wrapper --------------------------------------
@partial(jax.jit, static_argnames=("tile_n", "g"))
def _npull_forward_impl(x, params, *, tile_n, g):
    N = x.shape[0]
    fb = D_HIDDEN
    gf = g * fb

    # tile_n/g must stay a multiple of 128 lanes; cap the tile for small N and
    # pad N up to a whole number of tiles (padded rows are discarded).
    unit = g * 128
    tn = max(unit, min(tile_n, _round_up(N, unit)))
    tn = _round_up(tn, unit)
    tpg = tn // g
    n_pad = _round_up(N, tn)
    grid_n = n_pad // tn
    # NOTE(v7x): 2 TensorCores per chip — for large N pick tile_n so grid_n is
    # even, otherwise one core idles on the "parallel" axis.

    x_t = jnp.pad(x.astype(jnp.float32).T, ((0, 0), (0, n_pad - N)))  # (3, n_pad)
    wbd, misc = pack_params(params, g)

    macs_per_pt = (fb * D_IN + 2 * fb * fb + _SKIP_HID * fb + fb * fb + fb * D_OUT)
    cost = pl.CostEstimate(
        flops=2 * macs_per_pt * n_pad,
        transcendentals=0,
        bytes_accessed=n_pad * 4 * (D_IN + D_OUT) + wbd.size * 2 + misc.size * 4,
    )

    out = pl.pallas_call(
        npull_kernel,
        out_shape=jax.ShapeDtypeStruct((grid_n, g, tpg), jnp.float32),
        grid=(grid_n,),
        in_specs=[
            # streamed, lane-dense input points for this tile
            pl.BlockSpec((D_IN, tn), lambda i: (0, i)),
            # packed parameters: constant index_map => DMA'd once, resident
            pl.BlockSpec((5, gf, gf), lambda i: (0, 0, 0)),
            pl.BlockSpec((gf, 8), lambda i: (0, 0)),
        ],
        out_specs=pl.BlockSpec((1, g, tpg), lambda i: (i, 0, 0)),
        compiler_params=pltpu.CompilerParams(
            dimension_semantics=("parallel",)),
        cost_estimate=cost,
    )(x_t, wbd, misc)

    # (grid_n, g, tpg) flattens back to the original point order i*tn + gg*tpg + p.
    return out.reshape(n_pad)[:N].reshape(N, D_OUT)


def npull_forward(x, params, *, tile_n=16384, g=8):
    """x: (N, 3) float32 -> (N, 1) float32 SDF.

    g=8 matches the 256-wide v6e/v7x MXU; use g=4 on v5e (128-wide MXU).
    """
    return _npull_forward_impl(x, params, tile_n=tile_n, g=g)


# --------------------------- pure-JAX reference -------------------------------
def npull_reference(x, params):
    inp = x * SCALE
    h = inp
    for l, (w, b) in enumerate(params):
        if l in SKIP_IN:
            h = jnp.concatenate([h, inp], axis=1) * _INV_SQRT2
        h = h @ w + b
        if l < _N_LIN - 1:
            h = jnp.maximum(h, 0.0)
    return h / SCALE


# --------------------------------- main ---------------------------------------
if __name__ == "__main__":
    key = jax.random.PRNGKey(0)
    k_param, k_x = jax.random.split(key)

    params = init_params(k_param)
    N = 3000  # non-multiple of the tile -> exercises padding + a 2-step grid
    x = jax.random.uniform(k_x, (N, D_IN), jnp.float32, minval=-1.0, maxval=1.0)

    out = npull_forward(x, params, tile_n=2048)   # 2 grid steps of 8x256 points
    out = jax.block_until_ready(out)

    ref = npull_reference(x, params)
    assert out.shape == (N, D_OUT)
    err = float(jnp.max(jnp.abs(out - ref)))
    # bf16 matmul operands on the hidden layers => relaxed tolerance vs f32 ref.
    assert err < 5e-2, f"max abs err {err}"

    print("KERNEL_OK")
</pallas_src>

<mosaic_0001>
module attributes {stable_mosaic.version = 11 : i64} {
  func.func @npull_kernel(%arg0: i32, %arg1: memref<3x2048xf32, #tpu.memory_space<vmem>>, %arg2: memref<5x256x256xbf16, #tpu.memory_space<vmem>>, %arg3: memref<256x8xf32, #tpu.memory_space<vmem>>, %arg4: memref<1x8x256xf32, #tpu.memory_space<vmem>>) attributes {dimension_semantics = [#tpu.dimension_semantics<parallel>], iteration_bounds = array<i64: 2>, scalar_prefetch = 0 : i64, scratch_operands = 0 : i64, tpu.core_type = #tpu.core_type<tc>, window_params = [{transform_indices = @transform_0, window_bounds = array<i64: 3, 2048>}, {pipeline_mode = #tpu.pipeline_mode<synchronous>, transform_indices = @transform_1, window_bounds = array<i64: 5, 256, 256>}, {pipeline_mode = #tpu.pipeline_mode<synchronous>, transform_indices = @transform_2, window_bounds = array<i64: 256, 8>}, {transform_indices = @transform_3, window_bounds = array<i64: 1, 8, 256>}]} {
    %c0 = arith.constant 0 : index
    %c0_0 = arith.constant 0 : index
    %0 = vector.load %arg1[%c0, %c0_0] : memref<3x2048xf32, #tpu.memory_space<vmem>>, vector<3x2048xf32>
    %c0_1 = arith.constant 0 : index
    %c0_2 = arith.constant 0 : index
    %1 = vector.load %arg3[%c0_1, %c0_2] : memref<256x8xf32, #tpu.memory_space<vmem>>, vector<256x8xf32>
    %cst = arith.constant 0.000000e+00 : f32
    %2 = vector.broadcast %cst : f32 to vector<29x256xf32>
    %3 = vector.extract_strided_slice %0 {offsets = [0, 0], sizes = [3, 256], strides = [1, 1]} : vector<3x2048xf32> to vector<3x256xf32>
    %4 = vector.extract_strided_slice %0 {offsets = [0, 256], sizes = [3, 256], strides = [1, 1]} : vector<3x2048xf32> to vector<3x256xf32>
    %5 = vector.extract_strided_slice %0 {offsets = [0, 512], sizes = [3, 256], strides = [1, 1]} : vector<3x2048xf32> to vector<3x256xf32>
    %6 = vector.extract_strided_slice %0 {offsets = [0, 768], sizes = [3, 256], strides = [1, 1]} : vector<3x2048xf32> to vector<3x256xf32>
    %7 = vector.extract_strided_slice %0 {offsets = [0, 1024], sizes = [3, 256], strides = [1, 1]} : vector<3x2048xf32> to vector<3x256xf32>
    %8 = vector.extract_strided_slice %0 {offsets = [0, 1280], sizes = [3, 256], strides = [1, 1]} : vector<3x2048xf32> to vector<3x256xf32>
    %9 = vector.extract_strided_slice %0 {offsets = [0, 1536], sizes = [3, 256], strides = [1, 1]} : vector<3x2048xf32> to vector<3x256xf32>
    %10 = vector.extract_strided_slice %0 {offsets = [0, 1792], sizes = [3, 256], strides = [1, 1]} : vector<3x2048xf32> to vector<3x256xf32>
    %11 = tpu.concatenate %2, %3, %2, %4, %2, %5, %2, %6, %2, %7, %2, %8, %2, %9, %2, %10 in 0 : vector<29x256xf32>, vector<3x256xf32>, vector<29x256xf32>, vector<3x256xf32>, vector<29x256xf32>, vector<3x256xf32>, vector<29x256xf32>, vector<3x256xf32>, vector<29x256xf32>, vector<3x256xf32>, vector<29x256xf32>, vector<3x256xf32>, vector<29x256xf32>, vector<3x256xf32>, vector<29x256xf32>, vector<3x256xf32> -> vector<256x256xf32>
    %c0_3 = arith.constant 0 : index
    %c0_4 = arith.constant 0 : index
    %c0_5 = arith.constant 0 : index
    %12 = vector.load %arg2[%c0_3, %c0_4, %c0_5] : memref<5x256x256xbf16, #tpu.memory_space<vmem>>, vector<1x256x256xbf16>
    %13 = vector.shape_cast %12 : vector<1x256x256xbf16> to vector<256x256xbf16>
    %14 = arith.truncf %11 : vector<256x256xf32> to vector<256x256xbf16>
    %cst_6 = arith.constant dense<0.000000e+00> : vector<256x256xf32>
    %15 = tpu.matmul %13, %14, %cst_6 {dimension_numbers = #tpu.dot_dimension_numbers<[1], [0], [0], [1], [0, 0, 1, 1], [], []>} : vector<256x256xbf16>, vector<256x256xbf16>, vector<256x256xf32> -> vector<256x256xf32>
    %16 = vector.extract_strided_slice %1 {offsets = [0, 0], sizes = [256, 1], strides = [1, 1]} : vector<256x8xf32> to vector<256x1xf32>
    %17 = vector.broadcast %16 : vector<256x1xf32> to vector<256x256xf32>
    %18 = arith.addf %15, %17 : vector<256x256xf32>
    %cst_7 = arith.constant 0.000000e+00 : f32
    %19 = vector.broadcast %cst_7 : f32 to vector<256x256xf32>
    %20 = arith.maximumf %18, %19 : vector<256x256xf32>
    %c1 = arith.constant 1 : index
    %c0_8 = arith.constant 0 : index
    %c0_9 = arith.constant 0 : index
    %21 = vector.load %arg2[%c1, %c0_8, %c0_9] : memref<5x256x256xbf16, #tpu.memory_space<vmem>>, vector<1x256x256xbf16>
    %22 = vector.shape_cast %21 : vector<1x256x256xbf16> to vector<256x256xbf16>
    %23 = arith.truncf %20 : vector<256x256xf32> to vector<256x256xbf16>
    %cst_10 = arith.constant dense<0.000000e+00> : vector<256x256xf32>
    %24 = tpu.matmul %22, %23, %cst_10 {dimension_numbers = #tpu.dot_dimension_numbers<[1], [0], [0], [1], [0, 0, 1, 1], [], []>} : vector<256x256xbf16>, vector<256x256xbf16>, vector<256x256xf32> -> vector<256x256xf32>
    %25 = vector.extract_strided_slice %1 {offsets = [0, 1], sizes = [256, 1], strides = [1, 1]} : vector<256x8xf32> to vector<256x1xf32>
    %26 = vector.broadcast %25 : vector<256x1xf32> to vector<256x256xf32>
    %27 = arith.addf %24, %26 : vector<256x256xf32>
    %cst_11 = arith.constant 0.000000e+00 : f32
    %28 = vector.broadcast %cst_11 : f32 to vector<256x256xf32>
    %29 = arith.maximumf %27, %28 : vector<256x256xf32>
    %c2 = arith.constant 2 : index
    %c0_12 = arith.constant 0 : index
    %c0_13 = arith.constant 0 : index
    %30 = vector.load %arg2[%c2, %c0_12, %c0_13] : memref<5x256x256xbf16, #tpu.memory_space<vmem>>, vector<1x256x256xbf16>
    %31 = vector.shape_cast %30 : vector<1x256x256xbf16> to vector<256x256xbf16>
    %32 = arith.truncf %29 : vector<256x256xf32> to vector<256x256xbf16>
    %cst_14 = arith.constant dense<0.000000e+00> : vector<256x256xf32>
    %33 = tpu.matmul %31, %32, %cst_14 {dimension_numbers = #tpu.dot_dimension_numbers<[1], [0], [0], [1], [0, 0, 1, 1], [], []>} : vector<256x256xbf16>, vector<256x256xbf16>, vector<256x256xf32> -> vector<256x256xf32>
    %34 = vector.extract_strided_slice %1 {offsets = [0, 2], sizes = [256, 1], strides = [1, 1]} : vector<256x8xf32> to vector<256x1xf32>
    %35 = vector.broadcast %34 : vector<256x1xf32> to vector<256x256xf32>
    %36 = arith.addf %33, %35 : vector<256x256xf32>
    %cst_15 = arith.constant 0.000000e+00 : f32
    %37 = vector.broadcast %cst_15 : f32 to vector<256x256xf32>
    %38 = arith.maximumf %36, %37 : vector<256x256xf32>
    %c3 = arith.constant 3 : index
    %c0_16 = arith.constant 0 : index
    %c0_17 = arith.constant 0 : index
    %39 = vector.load %arg2[%c3, %c0_16, %c0_17] : memref<5x256x256xbf16, #tpu.memory_space<vmem>>, vector<1x256x256xbf16>
    %40 = vector.shape_cast %39 : vector<1x256x256xbf16> to vector<256x256xbf16>
    %41 = arith.truncf %38 : vector<256x256xf32> to vector<256x256xbf16>
    %cst_18 = arith.constant dense<0.000000e+00> : vector<256x256xf32>
    %42 = tpu.matmul %40, %41, %cst_18 {dimension_numbers = #tpu.dot_dimension_numbers<[1], [0], [0], [1], [0, 0, 1, 1], [], []>} : vector<256x256xbf16>, vector<256x256xbf16>, vector<256x256xf32> -> vector<256x256xf32>
    %43 = vector.extract_strided_slice %1 {offsets = [0, 3], sizes = [256, 1], strides = [1, 1]} : vector<256x8xf32> to vector<256x1xf32>
    %44 = vector.broadcast %43 : vector<256x1xf32> to vector<256x256xf32>
    %45 = arith.addf %42, %44 : vector<256x256xf32>
    %cst_19 = arith.constant 0.000000e+00 : f32
    %46 = vector.broadcast %cst_19 : f32 to vector<256x256xf32>
    %47 = arith.maximumf %45, %46 : vector<256x256xf32>
    %48 = arith.addf %47, %11 : vector<256x256xf32>
    %cst_20 = arith.constant 0.707106769 : f32
    %49 = vector.broadcast %cst_20 : f32 to vector<256x256xf32>
    %50 = arith.mulf %48, %49 : vector<256x256xf32>
    %c4 = arith.constant 4 : index
    %c0_21 = arith.constant 0 : index
    %c0_22 = arith.constant 0 : index
    %51 = vector.load %arg2[%c4, %c0_21, %c0_22] : memref<5x256x256xbf16, #tpu.memory_space<vmem>>, vector<1x256x256xbf16>
    %52 = vector.shape_cast %51 : vector<1x256x256xbf16> to vector<256x256xbf16>
    %53 = arith.truncf %50 : vector<256x256xf32> to vector<256x256xbf16>
    %cst_23 = arith.constant dense<0.000000e+00> : vector<256x256xf32>
    %54 = tpu.matmul %52, %53, %cst_23 {dimension_numbers = #tpu.dot_dimension_numbers<[1], [0], [0], [1], [0, 0, 1, 1], [], []>} : vector<256x256xbf16>, vector<256x256xbf16>, vector<256x256xf32> -> vector<256x256xf32>
    %55 = vector.extract_strided_slice %1 {offsets = [0, 4], sizes = [256, 1], strides = [1, 1]} : vector<256x8xf32> to vector<256x1xf32>
    %56 = vector.broadcast %55 : vector<256x1xf32> to vector<256x256xf32>
    %57 = arith.addf %54, %56 : vector<256x256xf32>
    %cst_24 = arith.constant 0.000000e+00 : f32
    %58 = vector.broadcast %cst_24 : f32 to vector<256x256xf32>
    %59 = arith.maximumf %57, %58 : vector<256x256xf32>
    %60 = vector.extract_strided_slice %1 {offsets = [0, 5], sizes = [256, 1], strides = [1, 1]} : vector<256x8xf32> to vector<256x1xf32>
    %61 = vector.broadcast %60 : vector<256x1xf32> to vector<256x256xf32>
    %62 = arith.mulf %59, %61 : vector<256x256xf32>
    %63 = vector.extract_strided_slice %62 {offsets = [0, 0], sizes = [32, 256], strides = [1, 1]} : vector<256x256xf32> to vector<32x256xf32>
    %cst_25 = arith.constant dense<0.000000e+00> : vector<256xf32>
    %64 = vector.multi_reduction <add>, %63, %cst_25 [0] : vector<32x256xf32> to vector<256xf32>
    %65 = vector.shape_cast %64 : vector<256xf32> to vector<1x256xf32>
    %66 = vector.extract_strided_slice %62 {offsets = [32, 0], sizes = [32, 256], strides = [1, 1]} : vector<256x256xf32> to vector<32x256xf32>
    %cst_26 = arith.constant dense<0.000000e+00> : vector<256xf32>
    %67 = vector.multi_reduction <add>, %66, %cst_26 [0] : vector<32x256xf32> to vector<256xf32>
    %68 = vector.shape_cast %67 : vector<256xf32> to vector<1x256xf32>
    %69 = vector.extract_strided_slice %62 {offsets = [64, 0], sizes = [32, 256], strides = [1, 1]} : vector<256x256xf32> to vector<32x256xf32>
    %cst_27 = arith.constant dense<0.000000e+00> : vector<256xf32>
    %70 = vector.multi_reduction <add>, %69, %cst_27 [0] : vector<32x256xf32> to vector<256xf32>
    %71 = vector.shape_cast %70 : vector<256xf32> to vector<1x256xf32>
    %72 = vector.extract_strided_slice %62 {offsets = [96, 0], sizes = [32, 256], strides = [1, 1]} : vector<256x256xf32> to vector<32x256xf32>
    %cst_28 = arith.constant dense<0.000000e+00> : vector<256xf32>
    %73 = vector.multi_reduction <add>, %72, %cst_28 [0] : vector<32x256xf32> to vector<256xf32>
    %74 = vector.shape_cast %73 : vector<256xf32> to vector<1x256xf32>
    %75 = vector.extract_strided_slice %62 {offsets = [128, 0], sizes = [32, 256], strides = [1, 1]} : vector<256x256xf32> to vector<32x256xf32>
    %cst_29 = arith.constant dense<0.000000e+00> : vector<256xf32>
    %76 = vector.multi_reduction <add>, %75, %cst_29 [0] : vector<32x256xf32> to vector<256xf32>
    %77 = vector.shape_cast %76 : vector<256xf32> to vector<1x256xf32>
    %78 = vector.extract_strided_slice %62 {offsets = [160, 0], sizes = [32, 256], strides = [1, 1]} : vector<256x256xf32> to vector<32x256xf32>
    %cst_30 = arith.constant dense<0.000000e+00> : vector<256xf32>
    %79 = vector.multi_reduction <add>, %78, %cst_30 [0] : vector<32x256xf32> to vector<256xf32>
    %80 = vector.shape_cast %79 : vector<256xf32> to vector<1x256xf32>
    %81 = vector.extract_strided_slice %62 {offsets = [192, 0], sizes = [32, 256], strides = [1, 1]} : vector<256x256xf32> to vector<32x256xf32>
    %cst_31 = arith.constant dense<0.000000e+00> : vector<256xf32>
    %82 = vector.multi_reduction <add>, %81, %cst_31 [0] : vector<32x256xf32> to vector<256xf32>
    %83 = vector.shape_cast %82 : vector<256xf32> to vector<1x256xf32>
    %84 = vector.extract_strided_slice %62 {offsets = [224, 0], sizes = [32, 256], strides = [1, 1]} : vector<256x256xf32> to vector<32x256xf32>
    %cst_32 = arith.constant dense<0.000000e+00> : vector<256xf32>
    %85 = vector.multi_reduction <add>, %84, %cst_32 [0] : vector<32x256xf32> to vector<256xf32>
    %86 = vector.shape_cast %85 : vector<256xf32> to vector<1x256xf32>
    %87 = tpu.concatenate %65, %68, %71, %74, %77, %80, %83, %86 in 0 : vector<1x256xf32>, vector<1x256xf32>, vector<1x256xf32>, vector<1x256xf32>, vector<1x256xf32>, vector<1x256xf32>, vector<1x256xf32>, vector<1x256xf32> -> vector<8x256xf32>
    %88 = vector.extract_strided_slice %1 {offsets = [0, 6], sizes = [8, 1], strides = [1, 1]} : vector<256x8xf32> to vector<8x1xf32>
    %89 = vector.broadcast %88 : vector<8x1xf32> to vector<8x256xf32>
    %90 = arith.addf %87, %89 : vector<8x256xf32>
    %c0_33 = arith.constant 0 : index
    %c0_34 = arith.constant 0 : index
    %c0_35 = arith.constant 0 : index
    %91 = vector.load %arg4[%c0_33, %c0_34, %c0_35] : memref<1x8x256xf32, #tpu.memory_space<vmem>>, vector<1x8x256xf32>
    %92 = vector.shape_cast %91 : vector<1x8x256xf32> to vector<8x256xf32>
    %93 = vector.shape_cast %90 : vector<8x256xf32> to vector<1x8x256xf32>
    tpu.vector_store %arg4[%c0_33, %c0_34, %c0_35], %93 {strides = array<i32>} : memref<1x8x256xf32, #tpu.memory_space<vmem>>, vector<1x8x256xf32>,
    return
  }
  func.func @transform_0(%arg0: i32) -> (i32, i32) {
    %c0_i32 = arith.constant 0 : i32
    %c0_i32_0 = arith.constant 0 : i32
    return %c0_i32, %arg0 : i32, i32
  }
  func.func @transform_1(%arg0: i32) -> (i32, i32, i32) {
    %c0_i32 = arith.constant 0 : i32
    %c0_i32_0 = arith.constant 0 : i32
    %c0_i32_1 = arith.constant 0 : i32
    %c0_i32_2 = arith.constant 0 : i32
    return %c0_i32, %c0_i32_0, %c0_i32_1 : i32, i32, i32
  }
  func.func @transform_2(%arg0: i32) -> (i32, i32) {
    %c0_i32 = arith.constant 0 : i32
    %c0_i32_0 = arith.constant 0 : i32
    %c0_i32_1 = arith.constant 0 : i32
    return %c0_i32, %c0_i32_0 : i32, i32
  }
  func.func @transform_3(%arg0: i32) -> (i32, i32, i32) {
    %c0_i32 = arith.constant 0 : i32
    %c0_i32_0 = arith.constant 0 : i32
    %c0_i32_1 = arith.constant 0 : i32
    return %arg0, %c0_i32, %c0_i32_0 : i32, i32, i32
  }
}

</mosaic_0001>

<bundles_post_ra>
// kernel: tile.40
= control target key start
LH: loop header
LB: loop body
LE: loop exit
PB: predicated region body
PF: predicated region fallthrough
CT: control target
= control target key end

     0   :  { %s22_s0 = inlined_call_operand.vmem [shape: f32[32], index: 0, kind: input, shape index: {}]   ;;  %s23_s1 = inlined_call_operand.vmem [shape: f32[8,32], index: 1, kind: output, shape index: {}]  }
   0x1   :  { %v4_v0 = vld [vmem:[%s22_s0] ss:$0 sm:$0xff] }
   0x2   :  { %5 = vst [vmem:[%s23_s1] sm:$0xff] %v4_v0 }

// kernel: _npull_forward_impl.1
= control target key start
LH: loop header
LB: loop body
LE: loop exit
PB: predicated region body
PF: predicated region fallthrough
CT: control target
= control target key end

     0   :  { %s4669_s12 = smov 0   ;;  %s7265_s0 = inlined_call_operand.vmem [shape: f32[3,4096], index: 0, kind: input, shape index: {}]   ;;  %s7266_s1 = inlined_call_operand.vmem [shape: bf16[5,256,256], index: 1, kind: input, shape index: {}]   ;;  %s7267_s2 = inlined_call_operand.vmem [shape: f32[256,8], index: 2, kind: input, shape index: {}]   ;;  %s7268_s3 = inlined_call_operand.vmem [shape: f32[2,8,256], index: 3, kind: output, shape index: {}]  }
   0x1 LB: > { %s4675_s13 = sadd.s32 4294967295, %s4637_s12   ;;  %p3895_p0 = scmp.ge.s32.totalorder %s4637_s12, 1  ;;  %s4637_s12 = sphi %s4669_s12, %s13_s12  }
   0x2   : > { %p138_p1 = scmp.lt.s32.totalorder %s4637_s12, 3 }
   0x4   : > { %p139_p2 = pnand %p3895_p0, %p138_p1 }
   0x6   : > { %142 = sbr.rel (%p139_p2) target bundleno = 1831 (0x727), region = 32 }
   0xb   : > { %s3896_s14 = sshll.u32 %s4675_s13, 4  ;;  %v4329_v0 = vld [vmem:[%s7266_s1 + $0x4] ss:$8 sps:$4 sm:$0xff]   ;;  %v4639_v1 = vmov 0   ;;  %vm261_vm0 = vcmask 1044480   ;;  %vm4640_vm2 = vmmov 1  }
   0xc   : > { %p163_p3 = scmp.lt.s32.totalorder %s3896_s14, 31  ;;  %4306 = vset.pattern.permute.xlu1 %v4639_v1  ;;  %4305 = vset.pattern.permute.xlu0 %v4639_v1  ;;  %v4332_v2 = vld [vmem:[%s7266_s1 + $0x84] ss:$8 sps:$4 sm:$0xff]   ;;  %vm3932_vm1 = vmneg %vm261_vm0  ;;  %v4641_v10 = vmov 0.0   ;;  %v4642_v16 = vmov 0.0|0.0   ;;  %v4751_v22 = vld [vmem:[%s7267_s2 + $0x70] sm:$0xff] }
   0xd   : > { %679 = vmatprep.mubr.bf16.mxu0 %v4329_v0  ;;  %759 = vmatprep.mubr.bf16.mxu1 %v4332_v2  ;;  %vm4705_vm3 = vmpackc.low %vm3932_vm1, %vm4640_vm2  ;;  %v4756_v23 = vld [vmem:[%s7267_s2 + $0x60] sm:$0xff]  ;;  %v4763_v24 = vld [vmem:[%s7267_s2 + $0x78] sm:$0xff]  ;;  %vm3808_vm4 = vcmask 1040384   ;;  %vm3811_vm5 = vcmask 1041408   ;;  %vm3814_vm6 = vcmask 1042432   ;;  %vm3817_vm7 = vcmask 1043456  }
   0xe   : > { %s7749_s14 = smov (!%p163_p3, %s3896_s14), 31  ;;  %399 = vperm.xlu0 %4305, %v4751_v22   ;;  %389 = vperm.xlu1 %4306, %v4756_v23   ;;  %v4773_v26 = vld [vmem:[%s7267_s2 + $0x68] sm:$0xff]  ;;  %v4786_v29 = vld [vmem:[%s7267_s2 + $0x58] sm:$0xff]  ;;  %v4796_v31 = vld [vmem:[%s7267_s2 + $0x50] sm:$0xff]  ;;  %vm3822_vm8 = vcmask 1045504   ;;  %p168_p4 = scmp.lt.s32.totalorder %s4675_s13, 1 }
   0xf   : > { %s3897_s19 = sshll.u32 %s7749_s14, 2  ;;  %v4817_v35 = vld [vmem:[%s7267_s2 + $0x48] sm:$0xff]  ;;  %v4822_v36 = vld [vmem:[%s7267_s2 + $0x40] sm:$0xff]  ;;  %v4840_v40 = vld [vmem:[%s7267_s2 + $0x38] sm:$0xff]  ;;  %vm3825_vm9 = vcmask 1046528  }
  0x10   : > { %s4689_s22 = scalar_lea.vmem %s7265_s0, %s3897_s19  ;;  %v4845_v41 = vld [vmem:[%s7267_s2 + $0x30] sm:$0xff]  ;;  %v4859_v44 = vld [vmem:[%s7267_s2 + $0x28] sm:$0xff]  ;;  %v4864_v45 = vld [vmem:[%s7267_s2 + $0x20] sm:$0xff]  ;;  %s7751_s13 = smov (!%p168_p4, %s4675_s13), 1 }
  0x11   : > { %v4692_v3 = vld [vmem:[%s4689_s22 + $0x18] sm:$0x77]  ;;  %v4695_v4 = vld [vmem:[%s4689_s22 + $0x10] sm:$0x77]  ;;  %v4717_v14 = vld [vmem:[%s4689_s22 + $0x8] sm:$0x77] }
  0x12   : > { %7406 = vst [vmem:[#allocation2_spill] sm:$0xff] %v4692_v3  ;;  %7407 = vst [vmem:[#allocation3_spill] sm:$0xff] %v4695_v4  ;;  %v232_v5 = vcombine.high %v4692_v3, %v4692_v3  ;;  %v7273_v6 = vrot.slane %v4692_v3, 3  ;;  %v226_v7 = vcombine.high %v4695_v4, %v4695_v4  ;;  %v7274_v15 = vrot.slane %v4695_v4, 3  ;;  %v4746_v21 = vld [vmem:[%s4689_s22] sm:$0x77]  ;;  %404 = vperm.xlu0 %4305, %v4763_v24  }
  0x13   : > { %7412 = vst [vmem:[#allocation6_spill] sm:$0xff] %v4717_v14  ;;  %v220_v18 = vcombine.high %v4717_v14, %v4717_v14  ;;  %7414 = vst [vmem:[#allocation8_spill] sm:$0xff] %v4746_v21  ;;  %v7275_v25 = vrot.slane %v4717_v14, 3  ;;  %v214_v28 = vcombine.high %v4746_v21, %v4746_v21  ;;  %394 = vperm.xlu1 %4306, %v4773_v26   ;;  %v4805_v33 = vld [vmem:[%s4689_s22 + $0x38] sm:$0x77]  ;;  %v7276_v34 = vrot.slane %v4746_v21, 3 }
  0x14   : > { %v4703_v8 = vrot.slane %v232_v5, 3  ;;  %v3938_v11 = vpack.c.bf16 %v7273_v6, %v4641_v10  ;;  %v4714_v13 = vrot.slane %v226_v7, 3  ;;  %v3946_v19 = vpack.c.bf16 %v7274_v15, %v4641_v10  ;;  %7416 = vst [vmem:[#allocation10_spill] sm:$0xff] %v4805_v33  ;;  %v4854_v43 = vld [vmem:[%s4689_s22 + $0x30] sm:$0x77]  ;;  %v4882_v49 = vld [vmem:[%s7267_s2 + $0x18] sm:$0xff] }
  0x15   : > { %v4743_v20 = vrot.slane %v220_v18, 3  ;;  %v3954_v30 = vpack.c.bf16 %v7275_v25, %v4641_v10  ;;  %v4802_v32 = vrot.slane %v214_v28, 3  ;;  %v256_v38 = vcombine.high %v4805_v33, %v4805_v33  ;;  %7418 = vst [vmem:[#allocation12_spill] sm:$0xff] %v4854_v43  ;;  %v4887_v50 = vld [vmem:[%s7267_s2 + $0x10] sm:$0xff]  ;;  %v4897_v52 = vld [vmem:[%s4689_s22 + $0x28] sm:$0x77] }
  0x16   : > { %7408 = vst [vmem:[#allocation4_spill] sm:$0xff] %v4703_v8  ;;  %v3934_v12 = vpack.c.bf16 %v4703_v8, %v4641_v10  ;;  %7411 = vst [vmem:[#allocation5_spill] sm:$0xff] %v4714_v13  ;;  %v3942_v17 = vpack.c.bf16 %v4714_v13, %v4641_v10  ;;  %379 = vperm.xlu0 %4305, %v4796_v31   ;;  %v3962_v39 = vpack.c.bf16 %v7276_v34, %v4641_v10  ;;  %v4908_v54 = vld [vmem:[%s7267_s2 + $0x8] sm:$0xff]  ;;  %v4913_v55 = vld [vmem:[%s7267_s2] sm:$0xff]  ;;  %s4254_s5 = sshll.u32 %s7751_s13, 4 }
  0x17   : > { %7413 = vst [vmem:[#allocation7_spill] sm:$0xff] %v4743_v20  ;;  %v3950_v27 = vpack.c.bf16 %v4743_v20, %v4641_v10  ;;  %7415 = vst [vmem:[#allocation9_spill] sm:$0xff] %v4802_v32  ;;  %384 = vperm.xlu1 %4306, %v4786_v29   ;;  %v3958_v37 = vpack.c.bf16 %v4802_v32, %v4641_v10  ;;  %v4851_v42 = vrot.slane %v256_v38, 3  ;;  %v7271_v46 = vrot.slane %v4805_v33, 3  ;;  %v4931_v59 = vld [vmem:[%s7267_s2 + $0xf8] sm:$0xff]  ;;  %v4936_v60 = vld [vmem:[%s7267_s2 + $0xf0] sm:$0xff]  ;;  %s172_s8 = scalar_lea.vmem %s7268_s3, %s4254_s5 }
  0x18   : > { %3935 = vmatprep.subr.msk.bf16.mxu0 %vm4705_vm3, %v3934_v12  ;;  %4255 = vmatprep.subr.msk.bf16.mxu1 %vm4705_vm3, %v3934_v12  ;;  %v250_v48 = vcombine.high %v4854_v43, %v4854_v43  ;;  %7419 = vst [vmem:[#allocation13_spill] sm:$0xff] %v4897_v52  ;;  %v7270_v56 = vrot.slane %v4854_v43, 3  ;;  %v244_v58 = vcombine.high %v4897_v52, %v4897_v52  ;;  %v4946_v62 = vld [vmem:[%s4689_s22 + $0x20] sm:$0x77]  ;;  %v4957_v0 = vld [vmem:[%s7267_s2 + $0xe8] sm:$0xff]  ;;  %v7269_v2 = vrot.slane %v4897_v52, 3 }
  0x19   : > { %3939 = vmatpush1.bf16.msk.msra.mxu0 %vm4705_vm3, %v3938_v11  ;;  %4271 = vmatpush1.bf16.msk.msra.mxu1 %vm4705_vm3, %v3938_v11  ;;  %7417 = vst [vmem:[#allocation11_spill] sm:$0xff] %v4851_v42  ;;  %v3966_v47 = vpack.c.bf16 %v4851_v42, %v4641_v10  ;;  %v3970_v51 = vpack.c.bf16 %v7271_v46, %v4641_v10  ;;  %7421 = vst [vmem:[#allocation15_spill] sm:$0xff] %v4946_v62  ;;  %v4962_v1 = vld [vmem:[%s7267_s2 + $0xe0] sm:$0xff]  ;;  %v4980_v11 = vld [vmem:[%s7267_s2 + $0xd8] sm:$0xff]  ;;  %v7272_v28 = vrot.slane %v4946_v62, 3 }
  0x1a   : > { %649 = vmatprep.subr.bf16.mxu0 %v4642_v16  ;;  %4256 = vmatprep.subr.bf16.mxu1 %v4642_v16  ;;  %v4903_v53 = vrot.slane %v250_v48, 3  ;;  %v3978_v61 = vpack.c.bf16 %v7270_v56, %v4641_v10  ;;  %v4952_v63 = vrot.slane %v244_v58, 3  ;;  %v238_v7 = vcombine.high %v4946_v62, %v4946_v62  ;;  %v4985_v12 = vld [vmem:[%s7267_s2 + $0xd0] sm:$0xff]  ;;  %v5050_v48 = vld [vmem:[%s7267_s2 + $0xa0] sm:$0xff]  ;;  %v5079_v58 = vld [vmem:[%s7267_s2 + $0x98] sm:$0xff] }
  0x1b   : > { %374 = vperm.xlu1 %4306, %v4817_v35   ;;  %369 = vperm.xlu0 %4305, %v4822_v36   ;;  %v5029_v38 = vld [vmem:[%s7267_s2 + $0xb0] sm:$0xff]  ;;  %7427 = vst [vmem:[#allocation21_spill] sm:$0xff] %v5050_v48  ;;  %7428 = vst [vmem:[#allocation22_spill] sm:$0xff] %v5079_v58 }
  0x1c   : > { %7420 = vst [vmem:[#allocation14_spill] sm:$0xff] %v4903_v53  ;;  %v3974_v57 = vpack.c.bf16 %v4903_v53, %v4641_v10  ;;  %7422 = vst [vmem:[#allocation16_spill] sm:$0xff] %v4952_v63  ;;  %v3982_v5 = vpack.c.bf16 %v4952_v63, %v4641_v10  ;;  %v4998_v18 = vrot.slane %v238_v7, 3  ;;  %v4335_v9 = vld [vmem:[%s7266_s1 + $0x94] ss:$8 sps:$4 sm:$0xff]  }
  0x1d   : > { %650 = vmatpush1.bf16.msra.mxu0 %v4642_v16  ;;  %4272 = vmatpush1.bf16.msra.mxu1 %v4642_v16  ;;  %7425 = vst [vmem:[#allocation19_spill] sm:$0xff] %v5029_v38  ;;  %v4337_v7 = vld [vmem:[%s7266_s1 + $0x10] ss:$8 sps:$4 sm:$0xff]  }
  0x1e   : > { %3943 = vmatprep.subr.msk.bf16.mxu0 %vm4705_vm3, %v3942_v17  ;;  %4257 = vmatprep.subr.msk.bf16.mxu1 %vm4705_vm3, %v3942_v17  ;;  %v3986_v17 = vpack.c.bf16 %v7269_v2, %v4641_v10  ;;  %7423 = vst [vmem:[#allocation17_spill] sm:$0xff] %v4998_v18 }
  0x1f   : > { %364 = vperm.xlu1 %4306, %v4840_v40   ;;  %359 = vperm.xlu0 %4305, %v4845_v41  }
  0x21   : > { %3947 = vmatpush1.bf16.msk.msra.mxu0 %vm4705_vm3, %v3946_v19  ;;  %4273 = vmatpush1.bf16.msk.msra.mxu1 %vm4705_vm3, %v3946_v19  ;;  %v5003_v19 = vld [vmem:[%s7267_s2 + $0xc8] sm:$0xff] }
  0x22   : > { %653 = vmatprep.subr.bf16.mxu0 %v4642_v16  ;;  %4258 = vmatprep.subr.bf16.mxu1 %v4642_v16 }
  0x23   : > { %354 = vperm.xlu1 %4306, %v4859_v44   ;;  %349 = vperm.xlu0 %4305, %v4864_v45  }
  0x25   : > { %654 = vmatpush1.bf16.msra.mxu0 %v4642_v16  ;;  %4274 = vmatpush1.bf16.msra.mxu1 %v4642_v16 }
  0x26   : > { %3951 = vmatprep.subr.msk.bf16.mxu0 %vm4705_vm3, %v3950_v27  ;;  %4259 = vmatprep.subr.msk.bf16.mxu1 %vm4705_vm3, %v3950_v27  ;;  %v5008_v27 = vld [vmem:[%s7267_s2 + $0xc0] sm:$0xff] }
  0x27   : > { %344 = vperm.xlu1 %4306, %v4882_v49   ;;  %339 = vperm.xlu0 %4305, %v4887_v50  }
  0x29   : > { %3955 = vmatpush1.bf16.msk.msra.mxu0 %vm4705_vm3, %v3954_v30  ;;  %4275 = vmatpush1.bf16.msk.msra.mxu1 %vm4705_vm3, %v3954_v30  ;;  %v3990_v30 = vpack.c.bf16 %v4998_v18, %v4641_v10 }
  0x2a   : > { %657 = vmatprep.subr.bf16.mxu0 %v4642_v16  ;;  %4260 = vmatprep.subr.bf16.mxu1 %v4642_v16 }
  0x2b   : > { %334 = vperm.xlu1 %4306, %v4908_v54   ;;  %329 = vperm.xlu0 %4305, %v4913_v55  }
  0x2d   : > { %658 = vmatpush1.bf16.msra.mxu0 %v4642_v16  ;;  %4276 = vmatpush1.bf16.msra.mxu1 %v4642_v16 }
  0x2e   : > { %3959 = vmatprep.subr.msk.bf16.mxu0 %vm4705_vm3, %v3958_v37  ;;  %4261 = vmatprep.subr.msk.bf16.mxu1 %vm4705_vm3, %v3958_v37  ;;  %v5024_v37 = vld [vmem:[%s7267_s2 + $0xb8] sm:$0xff] }
  0x2f   : > { %484 = vperm.xlu1 %4306, %v4931_v59   ;;  %479 = vperm.xlu0 %4305, %v4936_v60   ;;  %7424 = vst [vmem:[#allocation18_spill] sm:$0xff] %v5024_v37 }
  0x31   : > { %3963 = vmatpush1.bf16.msk.msra.mxu0 %vm4705_vm3, %v3962_v39  ;;  %4277 = vmatpush1.bf16.msk.msra.mxu1 %vm4705_vm3, %v3962_v39  ;;  %v3994_v39 = vpack.c.bf16 %v7272_v28, %v4641_v10  ;;  %v4327_v10 = vld [vmem:[%s7266_s1] ss:$8 sps:$4 sm:$0xff]  }
  0x32   : > { %661 = vmatprep.subr.bf16.mxu0 %v4642_v16  ;;  %4262 = vmatprep.subr.bf16.mxu1 %v4642_v16 }
  0x33   : > { %474 = vperm.xlu1 %4306, %v4957_v0   ;;  %469 = vperm.xlu0 %4305, %v4962_v1  }
  0x35   : > { %662 = vmatpush1.bf16.msra.mxu0 %v4642_v16  ;;  %4278 = vmatpush1.bf16.msra.mxu1 %v4642_v16 }
  0x36   : > { %3967 = vmatprep.subr.msk.bf16.mxu0 %vm4705_vm3, %v3966_v47  ;;  %4263 = vmatprep.subr.msk.bf16.mxu1 %vm4705_vm3, %v3966_v47  ;;  %v5045_v47 = vld [vmem:[%s7267_s2 + $0xa8] sm:$0xff] }
  0x37   : > { %464 = vperm.xlu1 %4306, %v4980_v11   ;;  %459 = vperm.xlu0 %4305, %v4985_v12   ;;  %7426 = vst [vmem:[#allocation20_spill] sm:$0xff] %v5045_v47 }
  0x39   : > { %3971 = vmatpush2.bf16.msk.msra.mxu0 %vm4705_vm3, %v3970_v51  ;;  %4279 = vmatpush2.bf16.msk.msra.mxu1 %vm4705_vm3, %v3970_v51  ;;  %v4330_v51 = vld [vmem:[%s7266_s1 + $0x80] ss:$8 sps:$4 sm:$0xff]  }
  0x3a   : > { %665 = vmatprep.subr.bf16.mxu0 %v4642_v16  ;;  %4264 = vmatprep.subr.bf16.mxu1 %v4642_v16 }
  0x3b   : > { %454 = vperm.xlu1 %4306, %v5003_v19   ;;  %449 = vperm.xlu0 %4305, %v5008_v27  }
  0x3d   : > { %666 = vmatpush2.bf16.msra.mxu0 %v4642_v16  ;;  %4280 = vmatpush2.bf16.msra.mxu1 %v4642_v16 }
  0x3e   : > { %3975 = vmatprep.subr.msk.bf16.mxu0 %vm4705_vm3, %v3974_v57  ;;  %4265 = vmatprep.subr.msk.bf16.mxu1 %vm4705_vm3, %v3974_v57  ;;  %v4333_v57 = vld [vmem:[%s7266_s1 + $0x14] ss:$8 sps:$4 sm:$0xff]  }
  0x3f   : > { %444 = vperm.xlu1 %4306, %v5024_v37   ;;  %439 = vperm.xlu0 %4305, %v5029_v38  }
  0x41   : > { %3979 = vmatpush2.bf16.msk.msra.mxu0 %vm4705_vm3, %v3978_v61  ;;  %4281 = vmatpush2.bf16.msk.msra.mxu1 %vm4705_vm3, %v3978_v61  ;;  %v5084_v61 = vld [vmem:[%s7267_s2 + $0x90] sm:$0xff] }
  0x42   : > { %669 = vmatprep.subr.bf16.mxu0 %v4642_v16  ;;  %4266 = vmatprep.subr.bf16.mxu1 %v4642_v16  ;;  %7429 = vst [vmem:[#allocation23_spill] sm:$0xff] %v5084_v61 }
  0x43   : > { %434 = vperm.xlu1 %4306, %v5045_v47   ;;  %429 = vperm.xlu0 %4305, %v5050_v48  }
  0x45   : > { %670 = vmatpush2.bf16.msra.mxu0 %v4642_v16  ;;  %4282 = vmatpush2.bf16.msra.mxu1 %v4642_v16 }
  0x46   : > { %3983 = vmatprep.subr.msk.bf16.mxu0 %vm4705_vm3, %v3982_v5  ;;  %4267 = vmatprep.subr.msk.bf16.mxu1 %vm4705_vm3, %v3982_v5  ;;  %v5096_v5 = vld [vmem:[%s7267_s2 + $0x80] sm:$0xff] }
  0x47   : > { %424 = vperm.xlu1 %4306, %v5079_v58   ;;  %419 = vperm.xlu0 %4305, %v5084_v61   ;;  %7431 = vst [vmem:[#allocation25_spill] sm:$0xff] %v5096_v5 }
  0x49   : > { %3987 = vmatpush2.bf16.msk.msra.mxu0 %vm4705_vm3, %v3986_v17  ;;  %4283 = vmatpush2.bf16.msk.msra.mxu1 %vm4705_vm3, %v3986_v17  ;;  %v4338_v17 = vld [vmem:[%s7266_s1 + $0x90] ss:$8 sps:$4 sm:$0xff]  }
  0x4a   : > { %673 = vmatprep.subr.bf16.mxu0 %v4642_v16  ;;  %4268 = vmatprep.subr.bf16.mxu1 %v4642_v16 }
  0x4b   : > { %409 = vperm.xlu0 %4305, %v5096_v5  }
  0x4d   : > { %674 = vmatpush2.bf16.msra.mxu0 %v4642_v16  ;;  %4284 = vmatpush2.bf16.msra.mxu1 %v4642_v16 }
  0x4e   : > { %3991 = vmatprep.subr.msk.bf16.mxu0 %vm4705_vm3, %v3990_v30  ;;  %4269 = vmatprep.subr.msk.bf16.mxu1 %vm4705_vm3, %v3990_v30  ;;  %v4339_v30 = vld [vmem:[%s7266_s1 + $0x24] ss:$8 sps:$4 sm:$0xff]  }
  0x51   : > { %3995 = vmatpush2.bf16.msk.msra.mxu0 %vm4705_vm3, %v3994_v39  ;;  %4285 = vmatpush2.bf16.msk.msra.mxu1 %vm4705_vm3, %v3994_v39  ;;  %v4341_v39 = vld [vmem:[%s7266_s1 + $0xa4] ss:$8 sps:$4 sm:$0xff]  }
  0x52   : > { %677 = vmatprep.subr.bf16.mxu0 %v4642_v16  ;;  %4270 = vmatprep.subr.bf16.mxu1 %v4642_v16 }
  0x55   : > { %678 = vmatpush2.bf16.msra.mxu0 %v4642_v16  ;;  %4286 = vmatpush2.bf16.msra.mxu1 %v4642_v16  ;;  %v5091_v16 = vld [vmem:[%s7267_s2 + $0x88] sm:$0xff] }
  0x56   : > { %7430 = vst [vmem:[#allocation24_spill] sm:$0xff] %v5091_v16  ;;  %414 = vperm.xlu1 %4306, %v5091_v16  }
  0x58   : > { %680 = vmatmul.mubr.bf16.vlgmr.msra.gmra.mxu0 %v4327_v10  ;;  %760 = vmatmul.mubr.bf16.vlgmr.msra.gmra.mxu1 %v4330_v51  ;;  %v4343_v10 = vld [vmem:[%s7266_s1 + $0x20] ss:$8 sps:$4 sm:$0xff]  }
  0x59   : > { %689 = vmatprep.mubr.bf16.mxu0 %v4333_v57  ;;  %769 = vmatprep.mubr.bf16.mxu1 %v4335_v9  ;;  %v4344_v51 = vld [vmem:[%s7266_s1 + $0xa0] ss:$8 sps:$4 sm:$0xff]   ;;  %v4345_v57 = vld [vmem:[%s7266_s1 + $0x34] ss:$8 sps:$4 sm:$0xff]  }
  0x5a   : > { %v4347_v9 = vld [vmem:[%s7266_s1 + $0xb4] ss:$8 sps:$4 sm:$0xff]  }
  0x60   : > { %690 = vmatmul.mubr.bf16.gmra.mxu0 %v4337_v7  ;;  %770 = vmatmul.mubr.bf16.gmra.mxu1 %v4338_v17  ;;  %v4349_v7 = vld [vmem:[%s7266_s1 + $0x30] ss:$8 sps:$4 sm:$0xff]  }
  0x61   : > { %699 = vmatprep.mubr.bf16.mxu0 %v4339_v30  ;;  %779 = vmatprep.mubr.bf16.mxu1 %v4341_v39  ;;  %v4350_v17 = vld [vmem:[%s7266_s1 + $0xb0] ss:$8 sps:$4 sm:$0xff]   ;;  %v4351_v30 = vld [vmem:[%s7266_s1 + $0x44] ss:$8 sps:$4 sm:$0xff]  }
  0x62   : > { %v4353_v39 = vld [vmem:[%s7266_s1 + $0xc4] ss:$8 sps:$4 sm:$0xff]  }
  0x68   : > { %700 = vmatmul.mubr.bf16.gmra.mxu0 %v4343_v10  ;;  %780 = vmatmul.mubr.bf16.gmra.mxu1 %v4344_v51  ;;  %v4355_v10 = vld [vmem:[%s7266_s1 + $0x40] ss:$8 sps:$4 sm:$0xff]  }
  0x69   : > { %709 = vmatprep.mubr.bf16.mxu0 %v4345_v57  ;;  %789 = vmatprep.mubr.bf16.mxu1 %v4347_v9  ;;  %v4356_v51 = vld [vmem:[%s7266_s1 + $0xc0] ss:$8 sps:$4 sm:$0xff]   ;;  %v4357_v57 = vld [vmem:[%s7266_s1 + $0x54] ss:$8 sps:$4 sm:$0xff]  }
  0x6a   : > { %v4359_v9 = vld [vmem:[%s7266_s1 + $0xd4] ss:$8 sps:$4 sm:$0xff]  }
  0x70   : > { %710 = vmatmul.mubr.bf16.gmra.mxu0 %v4349_v7  ;;  %790 = vmatmul.mubr.bf16.gmra.mxu1 %v4350_v17  ;;  %v4361_v7 = vld [vmem:[%s7266_s1 + $0x50] ss:$8 sps:$4 sm:$0xff]  }
  0x71   : > { %719 = vmatprep.mubr.bf16.mxu0 %v4351_v30  ;;  %799 = vmatprep.mubr.bf16.mxu1 %v4353_v39  ;;  %v4362_v17 = vld [vmem:[%s7266_s1 + $0xd0] ss:$8 sps:$4 sm:$0xff]   ;;  %v4363_v30 = vld [vmem:[%s7266_s1 + $0x64] ss:$8 sps:$4 sm:$0xff]  }
  0x72   : > { %v4365_v39 = vld [vmem:[%s7266_s1 + $0xe4] ss:$8 sps:$4 sm:$0xff]  }
  0x78   : > { %720 = vmatmul.mubr.bf16.gmra.mxu0 %v4355_v10  ;;  %800 = vmatmul.mubr.bf16.gmra.mxu1 %v4356_v51  ;;  %v4367_v10 = vld [vmem:[%s7266_s1 + $0x60] ss:$8 sps:$4 sm:$0xff]  }
  0x79   : > { %729 = vmatprep.mubr.bf16.mxu0 %v4357_v57  ;;  %809 = vmatprep.mubr.bf16.mxu1 %v4359_v9  ;;  %v4368_v51 = vld [vmem:[%s7266_s1 + $0xe0] ss:$8 sps:$4 sm:$0xff]   ;;  %v4369_v57 = vld [vmem:[%s7266_s1 + $0x74] ss:$8 sps:$4 sm:$0xff]  }
  0x7a   : > { %v4371_v9 = vld [vmem:[%s7266_s1 + $0xf4] ss:$8 sps:$4 sm:$0xff]  }
  0x80   : > { %730 = vmatmul.mubr.bf16.gmra.mxu0 %v4361_v7  ;;  %810 = vmatmul.mubr.bf16.gmra.mxu1 %v4362_v17  ;;  %v4373_v7 = vld [vmem:[%s7266_s1 + $0x70] ss:$8 sps:$4 sm:$0xff]  }
  0x81   : > { %739 = vmatprep.mubr.bf16.mxu0 %v4363_v30  ;;  %819 = vmatprep.mubr.bf16.mxu1 %v4365_v39  ;;  %v4374_v17 = vld [vmem:[%s7266_s1 + $0xf0] ss:$8 sps:$4 sm:$0xff]  }
  0x88   : > { %740 = vmatmul.mubr.bf16.gmra.mxu0 %v4367_v10  ;;  %820 = vmatmul.mubr.bf16.gmra.mxu1 %v4368_v51 }
  0x89   : > { %749 = vmatprep.mubr.bf16.mxu0 %v4369_v57  ;;  %829 = vmatprep.mubr.bf16.mxu1 %v4371_v9  ;;  %v5178_v30 = vpop.permute.xlu0 %399  ;;  %v5180_v39 = vpop.permute.xlu1 %389 }
  0x8d   : > { %v5182_v2 = vpop.permute.xlu0 %404 }
  0x8e   : > { %v5184_v10 = vpop.permute.xlu1 %394 }
  0x90   : > { %750 = vmatmul.mubr.bf16.gmra.mxu0 %v4373_v7  ;;  %830 = vmatmul.mubr.bf16.gmra.mxu1 %v4374_v17 }
  0x91   : > { %v5186_v51 = vpop.permute.xlu0 %379 }
  0x92   : > { %v5188_v57 = vpop.permute.xlu1 %384 }
  0x96   : > { %v5190_v9 = vpop.permute.xlu0 %369  ;;  %v5192_v56 = vpop.permute.xlu1 %374 }
  0x9a   : > { %v5194_v46 = vpop.permute.xlu0 %359  ;;  %v5196_v7 = vpop.permute.xlu1 %364 }
  0x9e   : > { %v5198_v17 = vpop.permute.xlu0 %349  ;;  %v5200_v28 = vpop.permute.xlu1 %354 }
  0xa2   : > { %v5202_v6 = vpop.permute.xlu0 %339  ;;  %v5204_v15 = vpop.permute.xlu1 %344 }
  0xa6   : > { %v5206_v25 = vpop.permute.xlu0 %329  ;;  %v5208_v34 = vpop.permute.xlu1 %334 }
  0xa7   : > { %7432 = vst [vmem:[#allocation26_spill] sm:$0xff] %v5206_v25 }
  0xaa   : > { %v5210_v52 = vpop.permute.xlu0 %479  ;;  %v5212_v63 = vpop.permute.xlu1 %484 }
  0xab   : > { %7433 = vst [vmem:[#allocation27_spill] sm:$0xff] %v5210_v52  ;;  %7434 = vst [vmem:[#allocation28_spill] sm:$0xff] %v5212_v63 }
  0xae   : > { %v5214_v53 = vpop.permute.xlu0 %469  ;;  %v5216_v43 = vpop.permute.xlu1 %474 }
  0xaf   : > { %7435 = vst [vmem:[#allocation29_spill] sm:$0xff] %v5214_v53  ;;  %7436 = vst [vmem:[#allocation30_spill] sm:$0xff] %v5216_v43 }
  0xb2   : > { %v5218_v42 = vpop.permute.xlu0 %459  ;;  %v5220_v33 = vpop.permute.xlu1 %464 }
  0xb3   : > { %7437 = vst [vmem:[#allocation31_spill] sm:$0xff] %v5218_v42  ;;  %7438 = vst [vmem:[#allocation32_spill] sm:$0xff] %v5220_v33 }
  0xb6   : > { %v5222_v18 = vpop.permute.xlu0 %449  ;;  %v5224_v62 = vpop.permute.xlu1 %454 }
  0xb7   : > { %7439 = vst [vmem:[#allocation33_spill] sm:$0xff] %v5222_v18  ;;  %7440 = vst [vmem:[#allocation34_spill] sm:$0xff] %v5224_v62 }
  0xba   : > { %v5226_v8 = vpop.permute.xlu0 %439  ;;  %v5228_v3 = vpop.permute.xlu1 %444 }
  0xbb   : > { %7441 = vst [vmem:[#allocation35_spill] sm:$0xff] %v5226_v8  ;;  %7442 = vst [vmem:[#allocation36_spill] sm:$0xff] %v5228_v3  ;;  %v4377_v8 = vld [vmem:[%s7266_s1 + $0x104] ss:$8 sps:$4 sm:$0xff]  }
  0xbc   : > { %1289 = vmatprep.mubr.bf16.mxu1 %v4377_v8 }
  0xbe   : > { %v5230_v13 = vpop.permute.xlu0 %429  ;;  %v5232_v4 = vpop.permute.xlu1 %434 }
  0xbf   : > { %7443 = vst [vmem:[#allocation37_spill] sm:$0xff] %v5230_v13  ;;  %7444 = vst [vmem:[#allocation38_spill] sm:$0xff] %v5232_v4 }
  0xc2   : > { %v5234_v20 = vpop.permute.xlu0 %419  ;;  %v5236_v14 = vpop.permute.xlu1 %424 }
  0xc3   : > { %7445 = vst [vmem:[#allocation39_spill] sm:$0xff] %v5234_v20  ;;  %7446 = vst [vmem:[#allocation40_spill] sm:$0xff] %v5236_v14 }
  0xc6   : > { %v5238_v32 = vpop.permute.xlu0 %409 }
  0xc7   : > { %7447 = vst [vmem:[#allocation41_spill] sm:$0xff] %v5238_v32 }
  0xd1   : > { %v5240_v5 = vpop.permute.xlu1 %414 }
  0xd2   : > { %7448 = vst [vmem:[#allocation42_spill] sm:$0xff] %v5240_v5 }
 0x118   : > { %v681_v21 = vpop.f32.mrf.mxu0  ;;  %v761_v16 = vpop.f32.mrf.mxu1 }
 0x119   : > { %v762_v3 = vadd.f32 %v761_v16, %v5238_v32  ;;  %v682_v33 = vadd.f32 %v681_v21, %v5206_v25 }
 0x11a   : > { %v5242_v18 = vpop.f32.mrf.mxu0  ;;  %v5244_v62 = vpop.f32.mrf.mxu1 }
 0x11b   : > { %7449 = vst [vmem:[#allocation43_spill] sm:$0xff] %v5242_v18  ;;  %7450 = vst [vmem:[#allocation44_spill] sm:$0xff] %v5244_v62  ;;  %v872_v62 = vmax.f32 %v762_v3, 0.0  ;;  %v840_v48 = vmax.f32 %v682_v33, 0.0 }
 0x11c   : > { %v685_v58 = vpop.f32.mrf.mxu0  ;;  %v765_v61 = vpop.f32.mrf.mxu1 }
 0x11d   : > { %v686_v42 = vadd.f32 %v685_v58, %v5208_v34  ;;  %v766_v43 = vadd.f32 %v765_v61, %v5240_v5 }
 0x11e   : > { %v5253_v53 = vpop.f32.mrf.mxu0  ;;  %v5255_v47 = vpop.f32.mrf.mxu1 }
 0x11f   : > { %7451 = vst [vmem:[#allocation45_spill] sm:$0xff] %v5255_v47  ;;  %v842_v16 = vmax.f32 %v686_v42, 0.0  ;;  %v874_v32 = vmax.f32 %v766_v43, 0.0 }
 0x120   : > { %v691_v52 = vpop.f32.mrf.mxu0  ;;  %v771_v63 = vpop.f32.mrf.mxu1 }
 0x121   : > { %v5257_v37 = vpack.c.bf16 %v842_v16, %v840_v48  ;;  %v772_v8 = vadd.f32 %v771_v63, %v5234_v20  ;;  %v5264_v58 = vpack.c.bf16 %v874_v32, %v872_v62  ;;  %v692_v61 = vadd.f32 %v691_v52, %v5202_v6 }
 0x122   : > { %v5259_v21 = vpop.f32.mrf.mxu0  ;;  %v5261_v38 = vpop.f32.mrf.mxu1 }
 0x123   : > { %7452 = vst [vmem:[#allocation46_spill] sm:$0xff] %v5257_v37  ;;  %7453 = vst [vmem:[#allocation47_spill] sm:$0xff] %v5261_v38  ;;  %v876_v48 = vmax.f32 %v772_v8, 0.0  ;;  %v844_v16 = vmax.f32 %v692_v61, 0.0 }
 0x124   : > { %7454 = vst [vmem:[#allocation48_spill] sm:$0xff] %v5264_v58  ;;  %v695_v5 = vpop.f32.mrf.mxu0  ;;  %v775_v47 = vpop.f32.mrf.mxu1 }
 0x125   : > { %v696_v3 = vadd.f32 %v695_v5, %v5204_v15  ;;  %v776_v33 = vadd.f32 %v775_v47, %v5236_v14 }
 0x126   : > { %v5269_v42 = vpop.f32.mrf.mxu0  ;;  %v5271_v43 = vpop.f32.mrf.mxu1 }
 0x127   : > { %7455 = vst [vmem:[#allocation49_spill] sm:$0xff] %v5271_v43  ;;  %v846_v37 = vmax.f32 %v696_v3, 0.0  ;;  %v878_v38 = vmax.f32 %v776_v33, 0.0 }
 0x128   : > { %v5273_v18 = vpop.f32.mrf.mxu0  ;;  %v781_v32 = vpop.f32.mrf.mxu1 }
 0x129   : > { %v5275_v62 = vpack.c.bf16 %v846_v37, %v844_v16  ;;  %v782_v52 = vadd.f32 %v781_v32, %v5230_v13  ;;  %v5282_v47 = vpack.c.bf16 %v878_v38, %v876_v48 }
 0x12a   : > { %v5278_v63 = vpop.f32.mrf.mxu0  ;;  %v5280_v5 = vpop.f32.mrf.mxu1 }
 0x12b   : > { %7456 = vst [vmem:[#allocation50_spill] sm:$0xff] %v5275_v62  ;;  %7457 = vst [vmem:[#allocation51_spill] sm:$0xff] %v5280_v5  ;;  %v880_v61 = vmax.f32 %v782_v52, 0.0 }
 0x12c   : > { %7458 = vst [vmem:[#allocation52_spill] sm:$0xff] %v5282_v47  ;;  %v5284_v58 = vpop.f32.mrf.mxu0  ;;  %v785_v43 = vpop.f32.mrf.mxu1 }
 0x12d   : > { %v786_v8 = vadd.f32 %v785_v43, %v5232_v4 }
 0x12e   : > { %v5287_v3 = vpop.f32.mrf.mxu0  ;;  %v5289_v33 = vpop.f32.mrf.mxu1 }
 0x12f   : > { %7459 = vst [vmem:[#allocation53_spill] sm:$0xff] %v5289_v33  ;;  %v882_v37 = vmax.f32 %v786_v8, 0.0 }
 0x130   : > { %v5291_v16 = vpop.f32.mrf.mxu0  ;;  %v5293_v32 = vpop.f32.mrf.mxu1 }
 0x131   : > { %7460 = vst [vmem:[#allocation54_spill] sm:$0xff] %v5293_v32  ;;  %v5295_v14 = vpack.c.bf16 %v882_v37, %v880_v61 }
 0x132   : > { %v5297_v20 = vpop.f32.mrf.mxu0  ;;  %v5299_v38 = vpop.f32.mrf.mxu1 }
 0x133   : > { %7461 = vst [vmem:[#allocation55_spill] sm:$0xff] %v5295_v14  ;;  %7462 = vst [vmem:[#allocation56_spill] sm:$0xff] %v5299_v38 }
 0x134   : > { %v5301_v48 = vpop.f32.mrf.mxu0  ;;  %v5303_v47 = vpop.f32.mrf.mxu1 }
 0x135   : > { %7463 = vst [vmem:[#allocation57_spill] sm:$0xff] %v5303_v47  ;;  %v4643_v47 = vmov 1  }
 0x136   : > { %v5305_v43 = vpop.f32.mrf.mxu0  ;;  %v5307_v52 = vpop.f32.mrf.mxu1  ;;  %4308 = vset.pattern.permute.xlu1 %v4643_v47  ;;  %4307 = vset.pattern.permute.xlu0 %v4643_v47 }
 0x137   : > { %7464 = vst [vmem:[#allocation58_spill] sm:$0xff] %v5307_v52  ;;  %1030 = vperm.xlu1 %4308, %v4763_v24   ;;  %1026 = vperm.xlu0 %4307, %v4751_v22  }
 0x138   : > { %v5309_v33 = vpop.f32.mrf.mxu0  ;;  %v5311_v8 = vpop.f32.mrf.mxu1 }
 0x139   : > { %7465 = vst [vmem:[#allocation59_spill] sm:$0xff] %v5311_v8 }
 0x13a   : > { %v5313_v4 = vpop.f32.mrf.mxu0  ;;  %v5315_v61 = vpop.f32.mrf.mxu1 }
 0x13b   : > { %7466 = vst [vmem:[#allocation60_spill] sm:$0xff] %v5315_v61  ;;  %1018 = vperm.xlu1 %4308, %v4756_v23   ;;  %1022 = vperm.xlu0 %4307, %v4773_v26  }
 0x13c   : > { %v5317_v37 = vpop.f32.mrf.mxu0  ;;  %v5319_v14 = vpop.f32.mrf.mxu1 }
 0x13d   : > { %7467 = vst [vmem:[#allocation61_spill] sm:$0xff] %v5319_v14 }
 0x13e   : > { %v727_v32 = vpop.f32.mrf.mxu0  ;;  %v5321_v5 = vpop.f32.mrf.mxu1 }
 0x13f   : > { %7468 = vst [vmem:[#allocation62_spill] sm:$0xff] %v5321_v5  ;;  %1010 = vperm.xlu1 %4308, %v4796_v31   ;;  %1014 = vperm.xlu0 %4307, %v4786_v29  }
 0x140   : > { %v731_v13 = vpop.f32.mrf.mxu0  ;;  %v5325_v52 = vpop.f32.mrf.mxu1 }
 0x141   : > { %7469 = vst [vmem:[#allocation63_spill] sm:$0xff] %v5325_v52 }
 0x142   : > { %v733_v8 = vpop.f32.mrf.mxu0  ;;  %v5329_v14 = vpop.f32.mrf.mxu1 }
 0x143   : > { %7470 = vst [vmem:[#allocation64_spill] sm:$0xff] %v5329_v14  ;;  %1002 = vperm.xlu1 %4308, %v4822_v36   ;;  %1006 = vperm.xlu0 %4307, %v4817_v35  }
 0x144   : > { %v735_v38 = vpop.f32.mrf.mxu0  ;;  %v5333_v47 = vpop.f32.mrf.mxu1 }
 0x145   : > { %7471 = vst [vmem:[#allocation65_spill] sm:$0xff] %v5333_v47 }
 0x146   : > { %v737_v61 = vpop.f32.mrf.mxu0  ;;  %v5337_v52 = vpop.f32.mrf.mxu1 }
 0x147   : > { %7472 = vst [vmem:[#allocation66_spill] sm:$0xff] %v5337_v52  ;;  %994 = vperm.xlu1 %4308, %v4845_v41   ;;  %998 = vperm.xlu0 %4307, %v4840_v40  }
 0x148   : > { %v741_v5 = vpop.f32.mrf.mxu0  ;;  %v5341_v14 = vpop.f32.mrf.mxu1 }
 0x149   : > { %7473 = vst [vmem:[#allocation67_spill] sm:$0xff] %v5341_v14 }
 0x14a   : > { %v743_v24 = vpop.f32.mrf.mxu0  ;;  %v5348_v52 = vpop.f32.mrf.mxu1 }
 0x14b   : > { %986 = vperm.xlu1 %4308, %v4864_v45   ;;  %990 = vperm.xlu0 %4307, %v4859_v44   ;;  %7474 = vst [vmem:[#allocation68_spill] sm:$0xff] %v5348_v52  ;;  %v744_v40 = vadd.f32 %v743_v24, %v5180_v39  ;;  %v738_v44 = vadd.f32 %v737_v61, %v5188_v57 }
 0x14c   : > { %v745_v22 = vpop.f32.mrf.mxu0  ;;  %v742_v52 = vadd.f32 %v741_v5, %v5180_v39  ;;  %v734_v24 = vadd.f32 %v733_v8, %v5186_v51  ;;  %v732_v5 = vadd.f32 %v731_v13, %v5186_v51  ;;  %v718_v13 = vadd.f32 %v5305_v43, %v5196_v7 }
 0x14d   : > { %v746_v25 = vadd.f32 %v745_v22, %v5184_v10 }
 0x14e   : > { %v747_v23 = vpop.f32.mrf.mxu0  ;;  %v864_v61 = vmax.f32 %v742_v52, 0.0  ;;  %v722_v52 = vadd.f32 %v5309_v33, %v5190_v9  ;;  %v855_v33 = vmax.f32 %v718_v13, 0.0  ;;  %v7486_v13 = vld [vmem:[#allocation50_spill] sm:$0xff] }
 0x14f   : > { %v748_v36 = vadd.f32 %v747_v23, %v5184_v10  ;;  %978 = vperm.xlu1 %4308, %v4887_v50   ;;  %982 = vperm.xlu0 %4307, %v4882_v49   ;;  %v736_v10 = vadd.f32 %v735_v38, %v5188_v57  ;;  %v728_v49 = vadd.f32 %v727_v32, %v5192_v56 }
 0x150   : > { %v751_v26 = vpop.f32.mrf.mxu0  ;;  %v724_v57 = vadd.f32 %v5313_v4, %v5190_v9  ;;  %v860_v4 = vmax.f32 %v732_v5, 0.0  ;;  %v708_v9 = vadd.f32 %v5287_v3, %v5200_v28 }
 0x151   : > { %v752_v41 = vadd.f32 %v751_v26, %v5178_v30  ;;  %v867_v23 = vmax.f32 %v748_v36, 0.0  ;;  %v859_v51 = vmax.f32 %v728_v49, 0.0  ;;  %v7481_v49 = vld [vmem:[#allocation21_spill] sm:$0xff] }
 0x152   : > { %v753_v31 = vpop.f32.mrf.mxu0  ;;  %v851_v3 = vmax.f32 %v708_v9, 0.0  ;;  %v7484_v5 = vld [vmem:[#allocation68_spill] sm:$0xff] }
 0x153   : > { %v754_v35 = vadd.f32 %v753_v31, %v5178_v30  ;;  %v5358_v30 = vpop.f32.mrf.mxu1  ;;  %v868_v26 = vmax.f32 %v752_v41, 0.0  ;;  %970 = vperm.xlu1 %4308, %v4913_v55   ;;  %974 = vperm.xlu0 %4307, %v4908_v54   ;;  %v726_v55 = vadd.f32 %v5317_v37, %v5192_v56  ;;  %v862_v54 = vmax.f32 %v736_v10, 0.0  ;;  %v7492_v9 = vld [vmem:[#allocation32_spill] sm:$0xff] }
 0x154   : > { %v755_v29 = vpop.f32.mrf.mxu0  ;;  %v714_v56 = vadd.f32 %v5297_v20, %v5194_v46  ;;  %v857_v37 = vmax.f32 %v724_v57, 0.0  ;;  %v856_v20 = vmax.f32 %v722_v52, 0.0  ;;  %v7485_v57 = vld [vmem:[#allocation30_spill] sm:$0xff]  ;;  %v7488_v52 = vld [vmem:[#allocation64_spill] sm:$0xff] }
 0x155   : > { %v756_v47 = vadd.f32 %v755_v29, %v5182_v2  ;;  %v869_v31 = vmax.f32 %v754_v35, 0.0  ;;  %v5366_v22 = vpop.f32.mrf.mxu1  ;;  %v947_v36 = vpack.c.bf16 %v862_v54, %v860_v4  ;;  %v712_v35 = vadd.f32 %v5291_v16, %v5194_v46 }
 0x156   : > { %v757_v62 = vpop.f32.mrf.mxu0  ;;  %v946_v43 = vpack.c.bf16 %v859_v51, %v857_v37  ;;  %v698_v46 = vadd.f32 %v5269_v42, %v5204_v15  ;;  %v688_v15 = vadd.f32 %v5253_v53, %v5208_v34  ;;  %v7480_v53 = vld [vmem:[#allocation27_spill] sm:$0xff] }
 0x157   : > { %v758_v14 = vadd.f32 %v757_v62, %v5182_v2  ;;  %v870_v45 = vmax.f32 %v756_v47, 0.0  ;;  %v865_v2 = vmax.f32 %v744_v40, 0.0  ;;  %v866_v47 = vmax.f32 %v746_v25, 0.0  ;;  %1090 = vperm.xlu1 %4308, %v4936_v60   ;;  %1094 = vperm.xlu0 %4307, %v4931_v59   ;;  %v5378_v8 = vpop.f32.mrf.mxu1 }
 0x158   : > { %v861_v25 = vmax.f32 %v734_v24, 0.0  ;;  %v716_v59 = vadd.f32 %v5301_v48, %v5196_v7  ;;  %v858_v60 = vmax.f32 %v726_v55, 0.0  ;;  %v704_v7 = vadd.f32 %v5278_v63, %v5198_v17  ;;  %v7477_v24 = vld [vmem:[#allocation19_spill] sm:$0xff] }
 0x159   : > { %v871_v29 = vmax.f32 %v758_v14, 0.0  ;;  %v951_v50 = vpack.c.bf16 %v870_v45, %v868_v26  ;;  %v863_v14 = vmax.f32 %v738_v44, 0.0  ;;  %v950_v39 = vpack.c.bf16 %v867_v23, %v865_v2  ;;  %v833_v41 = vpop.f32.mrf.mxu1  ;;  %v7478_v2 = vld [vmem:[#allocation18_spill] sm:$0xff] }
 0x15a   : > { %v949_v38 = vpack.c.bf16 %v866_v47, %v864_v61  ;;  %v853_v48 = vmax.f32 %v714_v56, 0.0  ;;  %v945_v40 = vpack.c.bf16 %v858_v60, %v856_v20  ;;  %v702_v45 = vadd.f32 %v5273_v18, %v5198_v17  ;;  %v7489_v56 = vld [vmem:[#allocation67_spill] sm:$0xff] }
 0x15b   : > { %v952_v62 = vpack.c.bf16 %v871_v29, %v869_v31  ;;  %v948_v32 = vpack.c.bf16 %v863_v14, %v861_v25  ;;  %1082 = vperm.xlu1 %4308, %v4962_v1   ;;  %1086 = vperm.xlu0 %4307, %v4957_v0   ;;  %v706_v1 = vadd.f32 %v5284_v58, %v5200_v28  ;;  %v854_v0 = vmax.f32 %v716_v59, 0.0  ;;  %v835_v44 = vpop.f32.mrf.mxu1  ;;  %v7475_v31 = vld [vmem:[#allocation26_spill] sm:$0xff]  ;;  %v7476_v29 = vld [vmem:[#allocation43_spill] sm:$0xff]  ;;  %v7482_v14 = vld [vmem:[#allocation20_spill] sm:$0xff] }
 0x15c   : > { %v944_v16 = vpack.c.bf16 %v855_v33, %v853_v48  ;;  %v852_v63 = vmax.f32 %v712_v35, 0.0  ;;  %v694_v28 = vadd.f32 %v5259_v21, %v5202_v6  ;;  %v849_v58 = vmax.f32 %v704_v7, 0.0  ;;  %v7494_v7 = vld [vmem:[#allocation46_spill] sm:$0xff]  ;;  %v7495_v48 = vld [vmem:[#allocation33_spill] sm:$0xff] }
 0x15d   : > { %1257 = vmatprep.subr.bf16.mxu1 %v952_v62  ;;  %v850_v23 = vmax.f32 %v706_v1, 0.0  ;;  %v848_v18 = vmax.f32 %v702_v45, 0.0  ;;  %v837_v17 = vpop.f32.mrf.mxu1  ;;  %v684_v26 = vadd.f32 %v7476_v29, %v7475_v31  ;;  %v834_v47 = vadd.f32 %v833_v41, %v7480_v53  ;;  %v7496_v1 = vld [vmem:[#allocation60_spill] sm:$0xff]  ;;  %v7505_v29 = vld [vmem:[#allocation59_spill] sm:$0xff] }
 0x15e   : > { %1258 = vmatpush1.bf16.msra.mxu1 %v951_v50  ;;  %v942_v42 = vpack.c.bf16 %v851_v3, %v849_v58  ;;  %v845_v6 = vmax.f32 %v694_v28, 0.0  ;;  %v828_v25 = vadd.f32 %v5366_v22, %v7485_v57  ;;  %v826_v59 = vadd.f32 %v5358_v30, %v7485_v57  ;;  %v7490_v22 = vld [vmem:[#allocation23_spill] sm:$0xff]  ;;  %v7500_v28 = vld [vmem:[#allocation24_spill] sm:$0xff]  ;;  %v7501_v58 = vld [vmem:[#allocation34_spill] sm:$0xff] }
 0x15f   : > { %1259 = vmatprep.subr.bf16.mxu1 %v950_v39  ;;  %1074 = vperm.xlu1 %4308, %v4985_v12   ;;  %v943_v12 = vpack.c.bf16 %v854_v0, %v852_v63  ;;  %v941_v21 = vpack.c.bf16 %v850_v23, %v848_v18  ;;  %v841_v34 = vmax.f32 %v684_v26, 0.0  ;;  %v7483_v39 = vld [vmem:[#allocation29_spill] sm:$0xff]  ;;  %v901_v51 = vmax.f32 %v834_v47, 0.0  ;;  %v7502_v23 = vld [vmem:[#allocation62_spill] sm:$0xff]  ;;  %v7503_v18 = vld [vmem:[#allocation35_spill] sm:$0xff] }
 0x160   : > { %1078 = vperm.xlu0 %4307, %v4980_v11   ;;  %v847_v11 = vmax.f32 %v698_v46, 0.0  ;;  %v824_v61 = vadd.f32 %v7484_v5, %v7483_v39  ;;  %v822_v37 = vadd.f32 %v7489_v56, %v7483_v39  ;;  %v899_v35 = vmax.f32 %v828_v25, 0.0  ;;  %v7498_v46 = vld [vmem:[#allocation65_spill] sm:$0xff]  ;;  %v7511_v39 = vld [vmem:[#allocation54_spill] sm:$0xff] }
 0x161   : > { %v804_v0 = vadd.f32 %v7496_v1, %v7495_v48  ;;  %v816_v3 = vadd.f32 %v7498_v46, %v7492_v9  ;;  %v898_v45 = vmax.f32 %v826_v59, 0.0  ;;  %v802_v26 = vadd.f32 %v7505_v29, %v7495_v48  ;;  %v7516_v59 = vld [vmem:[#allocation47_spill] sm:$0xff]  ;;  %v7520_v48 = vld [vmem:[#allocation44_spill] sm:$0xff]  ;;  %v7522_v46 = vld [vmem:[#allocation45_spill] sm:$0xff] }
 0x162   : > { %1260 = vmatpush1.bf16.msra.mxu1 %v949_v38  ;;  %v940_v10 = vpack.c.bf16 %v847_v11, %v845_v6  ;;  %v832_v38 = vadd.f32 %v5378_v8, %v7480_v53  ;;  %v7493_v8 = vld [vmem:[#allocation66_spill] sm:$0xff]  ;;  %v7506_v6 = vld [vmem:[#allocation61_spill] sm:$0xff]  ;;  %v792_v5 = vadd.f32 %v7511_v39, %v7503_v18 }
 0x163   : > { %1261 = vmatprep.subr.bf16.mxu1 %v948_v32  ;;  %1066 = vperm.xlu1 %4308, %v5008_v27   ;;  %v843_v27 = vmax.f32 %v688_v15, 0.0  ;;  %v7487_v32 = vld [vmem:[#allocation31_spill] sm:$0xff]  ;;  %v818_v33 = vadd.f32 %v7493_v8, %v7492_v9  ;;  %v888_v25 = vmax.f32 %v802_v26, 0.0  ;;  %v4386_v29 = vld [vmem:[%s7266_s1 + $0x130] ss:$8 sps:$4 sm:$0xff]  }
 0x164   : > { %1070 = vperm.xlu0 %4307, %v5003_v19   ;;  %v7479_v19 = vld [vmem:[#allocation28_spill] sm:$0xff]  ;;  %v814_v4 = vadd.f32 %v7488_v52, %v7487_v32  ;;  %v900_v41 = vmax.f32 %v832_v38, 0.0  ;;  %v7513_v38 = vld [vmem:[#allocation38_spill] sm:$0xff]  ;;  %v884_v56 = vmax.f32 %v792_v5, 0.0 }
 0x165   : > { %v838_v62 = vadd.f32 %v837_v17, %v7479_v19  ;;  %v836_v50 = vadd.f32 %v835_v44, %v7479_v19  ;;  %v938_v54 = vpack.c.bf16 %v843_v27, %v841_v34  ;;  %v7499_v44 = vld [vmem:[#allocation25_spill] sm:$0xff]  ;;  %v895_v11 = vmax.f32 %v818_v33, 0.0  ;;  %v7504_v17 = vld [vmem:[#allocation56_spill] sm:$0xff]  ;;  %v4387_v26 = vld [vmem:[%s7266_s1 + $0x144] ss:$8 sps:$4 sm:$0xff]  }
 0x166   : > { %1262 = vmatpush1.bf16.msra.mxu1 %v947_v36  ;;  %v7491_v36 = vld [vmem:[#allocation22_spill] sm:$0xff]  ;;  %v893_v15 = vmax.f32 %v814_v4, 0.0  ;;  %v794_v31 = vadd.f32 %v7504_v17, %v7503_v18  ;;  %v7507_v19 = vld [vmem:[#allocation36_spill] sm:$0xff]  ;;  %v889_v34 = vmax.f32 %v804_v0, 0.0 }
 0x167   : > { %1263 = vmatprep.subr.bf16.mxu1 %v946_v43  ;;  %1058 = vperm.xlu1 %4308, %v7477_v24   ;;  %v903_v55 = vmax.f32 %v838_v62, 0.0  ;;  %v902_v60 = vmax.f32 %v836_v50, 0.0  ;;  %v897_v43 = vmax.f32 %v824_v61, 0.0  ;;  %v7508_v62 = vld [vmem:[#allocation58_spill] sm:$0xff]  ;;  %v7509_v50 = vld [vmem:[#allocation37_spill] sm:$0xff]  ;;  %v7517_v33 = vld [vmem:[#allocation40_spill] sm:$0xff] }
 0x168   : > { %1062 = vperm.xlu0 %4307, %v7478_v2   ;;  %v894_v2 = vmax.f32 %v816_v3, 0.0  ;;  %v964_v47 = vpack.c.bf16 %v895_v11, %v893_v15  ;;  %v7512_v61 = vld [vmem:[#allocation57_spill] sm:$0xff]  ;;  %v7525_v15 = vld [vmem:[#allocation48_spill] sm:$0xff]  ;;  %v4381_v18 = vld [vmem:[%s7266_s1 + $0x124] ss:$8 sps:$4 sm:$0xff]  }
 0x169   : > { %v968_v20 = vpack.c.bf16 %v903_v55, %v901_v51  ;;  %v967_v63 = vpack.c.bf16 %v902_v60, %v900_v41  ;;  %v796_v57 = vadd.f32 %v7512_v61, %v7507_v19  ;;  %v4378_v11 = vld [vmem:[%s7266_s1 + $0x114] ss:$8 sps:$4 sm:$0xff]   ;;  %v4383_v17 = vld [vmem:[%s7266_s1 + $0x120] ss:$8 sps:$4 sm:$0xff]   ;;  %v4410_v39 = vld [vmem:[%s7266_s1 + $0x1b0] ss:$8 sps:$4 sm:$0xff]  }
 0x16a   : > { %1264 = vmatpush1.bf16.msra.mxu1 %v945_v40  ;;  %v7497_v40 = vld [vmem:[#allocation63_spill] sm:$0xff] }
 0x16b   : > { %1265 = vmatprep.subr.bf16.mxu1 %v944_v16  ;;  %1050 = vperm.xlu1 %4308, %v7481_v49   ;;  %v812_v30 = vadd.f32 %v7497_v40, %v7487_v32  ;;  %v896_v16 = vmax.f32 %v822_v37, 0.0  ;;  %v7510_v49 = vld [vmem:[#allocation51_spill] sm:$0xff]  ;;  %v885_v32 = vmax.f32 %v794_v31, 0.0  ;;  %v4384_v31 = vld [vmem:[%s7266_s1 + $0x134] ss:$8 sps:$4 sm:$0xff]  }
 0x16c   : > { %1054 = vperm.xlu0 %4307, %v7482_v14   ;;  %v784_v14 = vadd.f32 %v7510_v49, %v7509_v50  ;;  %v7515_v37 = vld [vmem:[#allocation39_spill] sm:$0xff] }
 0x16d   : > { %v892_v24 = vmax.f32 %v812_v30, 0.0  ;;  %v965_v27 = vpack.c.bf16 %v898_v45, %v896_v16  ;;  %v774_v60 = vadd.f32 %v7516_v59, %v7515_v37  ;;  %v7521_v30 = vld [vmem:[#allocation42_spill] sm:$0xff] }
 0x16e   : > { %1266 = vmatpush1.bf16.msra.mxu1 %v943_v12  ;;  %v808_v12 = vadd.f32 %v7502_v23, %v7501_v58  ;;  %v881_v8 = vmax.f32 %v784_v14, 0.0  ;;  %v768_v3 = vadd.f32 %v7522_v46, %v7521_v30  ;;  %v7524_v23 = vld [vmem:[#allocation52_spill] sm:$0xff]  ;;  %v4405_v50 = vld [vmem:[%s7266_s1 + $0x1a4] ss:$8 sps:$4 sm:$0xff]   ;;  %v4407_v49 = vld [vmem:[%s7266_s1 + $0x1a0] ss:$8 sps:$4 sm:$0xff]  }
 0x16f   : > { %1267 = vmatprep.subr.bf16.mxu1 %v942_v42  ;;  %1042 = vperm.xlu1 %4308, %v7490_v22   ;;  %v966_v42 = vpack.c.bf16 %v899_v35, %v897_v43  ;;  %v886_v22 = vmax.f32 %v796_v57, 0.0  ;;  %v7518_v43 = vld [vmem:[#allocation49_spill] sm:$0xff]  ;;  %v877_v40 = vmax.f32 %v774_v60, 0.0  ;;  %v4411_v5 = vld [vmem:[%s7266_s1 + $0x1c4] ss:$8 sps:$4 sm:$0xff]  }
 0x170   : > { %1046 = vperm.xlu0 %4307, %v7491_v36   ;;  %v891_v53 = vmax.f32 %v808_v12, 0.0  ;;  %v778_v35 = vadd.f32 %v7518_v43, %v7517_v33  ;;  %v875_v45 = vmax.f32 %v768_v3, 0.0  ;;  %v4375_v12 = vld [vmem:[%s7266_s1 + $0x100] ss:$8 sps:$4 sm:$0xff]   ;;  %v4408_v14 = vld [vmem:[%s7266_s1 + $0x1b4] ss:$8 sps:$4 sm:$0xff]  }
 0x171   : > { %v959_v41 = vpack.c.bf16 %v886_v22, %v884_v56  ;;  %v4413_v61 = vld [vmem:[%s7266_s1 + $0x1c0] ss:$8 sps:$4 sm:$0xff]   ;;  %v4414_v57 = vld [vmem:[%s7266_s1 + $0x1d4] ss:$8 sps:$4 sm:$0xff]  }
 0x172   : > { %1268 = vmatpush1.bf16.msra.mxu1 %v941_v21  ;;  %v806_v21 = vadd.f32 %v7506_v6, %v7501_v58  ;;  %v962_v4 = vpack.c.bf16 %v891_v53, %v889_v34  ;;  %v879_v0 = vmax.f32 %v778_v35, 0.0  ;;  %v4389_v6 = vld [vmem:[%s7266_s1 + $0x140] ss:$8 sps:$4 sm:$0xff]   ;;  %v4402_v53 = vld [vmem:[%s7266_s1 + $0x194] ss:$8 sps:$4 sm:$0xff]  }
 0x173   : > { %1269 = vmatprep.subr.bf16.mxu1 %v940_v10  ;;  %1034 = vperm.xlu1 %4308, %v7499_v44   ;;  %v798_v10 = vadd.f32 %v7508_v62, %v7507_v19  ;;  %v4396_v19 = vld [vmem:[%s7266_s1 + $0x174] ss:$8 sps:$4 sm:$0xff]   ;;  %v4398_v62 = vld [vmem:[%s7266_s1 + $0x170] ss:$8 sps:$4 sm:$0xff]   ;;  %v4401_v34 = vld [vmem:[%s7266_s1 + $0x180] ss:$8 sps:$4 sm:$0xff]  }
 0x174   : > { %1038 = vperm.xlu0 %4307, %v7500_v28   ;;  %v890_v55 = vmax.f32 %v806_v21, 0.0  ;;  %v956_v44 = vpack.c.bf16 %v879_v0, %v877_v40  ;;  %v7523_v28 = vld [vmem:[#allocation55_spill] sm:$0xff]  ;;  %v4390_v21 = vld [vmem:[%s7266_s1 + $0x154] ss:$8 sps:$4 sm:$0xff]  }
 0x175   : > { %v887_v52 = vmax.f32 %v798_v10, 0.0  ;;  %v4399_v10 = vld [vmem:[%s7266_s1 + $0x184] ss:$8 sps:$4 sm:$0xff]  }
 0x176   : > { %1270 = vmatpush1.bf16.msra.mxu1 %v7486_v13  ;;  %v7514_v13 = vld [vmem:[#allocation53_spill] sm:$0xff]  ;;  %v961_v36 = vpack.c.bf16 %v890_v55, %v888_v25  ;;  %v4417_v55 = vld [vmem:[%s7266_s1 + $0x1e4] ss:$8 sps:$4 sm:$0xff]  }
 0x177   : > { %1271 = vmatprep.subr.bf16.mxu1 %v938_v54  ;;  %v963_v54 = vpack.c.bf16 %v894_v2, %v892_v24  ;;  %v788_v51 = vadd.f32 %v7514_v13, %v7513_v38  ;;  %v4392_v24 = vld [vmem:[%s7266_s1 + $0x150] ss:$8 sps:$4 sm:$0xff]   ;;  %v4393_v2 = vld [vmem:[%s7266_s1 + $0x164] ss:$8 sps:$4 sm:$0xff]   ;;  %v4420_v38 = vld [vmem:[%s7266_s1 + $0x1f4] ss:$8 sps:$4 sm:$0xff]  }
 0x178   : > { %v4416_v25 = vld [vmem:[%s7266_s1 + $0x1d0] ss:$8 sps:$4 sm:$0xff]  }
 0x179   : > { %v883_v9 = vmax.f32 %v788_v51, 0.0  ;;  %v4422_v13 = vld [vmem:[%s7266_s1 + $0x1f0] ss:$8 sps:$4 sm:$0xff]  }
 0x17a   : > { %1272 = vmatpush1.bf16.msra.mxu1 %v7494_v7  ;;  %v7519_v7 = vld [vmem:[#allocation41_spill] sm:$0xff] }
 0x17b   : > { %1273 = vmatprep.subr.bf16.mxu1 %v968_v20  ;;  %v960_v20 = vpack.c.bf16 %v887_v52, %v885_v32  ;;  %v764_v1 = vadd.f32 %v7520_v48, %v7519_v7  ;;  %v958_v16 = vpack.c.bf16 %v883_v9, %v881_v8 }
 0x17e   : > { %1274 = vmatpush2.bf16.msra.mxu1 %v967_v63  ;;  %v873_v63 = vmax.f32 %v764_v1, 0.0 }
 0x17f   : > { %1275 = vmatprep.subr.bf16.mxu1 %v966_v42  ;;  %v4380_v42 = vld [vmem:[%s7266_s1 + $0x110] ss:$8 sps:$4 sm:$0xff]  }
 0x180   : > { %v954_v58 = vpack.c.bf16 %v875_v45, %v873_v63 }
 0x182   : > { %1276 = vmatpush2.bf16.msra.mxu1 %v965_v27  ;;  %v4395_v27 = vld [vmem:[%s7266_s1 + $0x160] ss:$8 sps:$4 sm:$0xff]  }
 0x183   : > { %1277 = vmatprep.subr.bf16.mxu1 %v964_v47  ;;  %v4404_v47 = vld [vmem:[%s7266_s1 + $0x190] ss:$8 sps:$4 sm:$0xff]  }
 0x186   : > { %1278 = vmatpush2.bf16.msra.mxu1 %v963_v54  ;;  %v4419_v54 = vld [vmem:[%s7266_s1 + $0x1e0] ss:$8 sps:$4 sm:$0xff]  }
 0x187   : > { %1279 = vmatprep.subr.bf16.mxu1 %v962_v4 }
 0x18a   : > { %1280 = vmatpush2.bf16.msra.mxu1 %v961_v36 }
 0x18b   : > { %1281 = vmatprep.subr.bf16.mxu1 %v960_v20 }
 0x18e   : > { %1282 = vmatpush2.bf16.msra.mxu1 %v959_v41 }
 0x18f   : > { %1283 = vmatprep.subr.bf16.mxu1 %v958_v16 }
 0x192   : > { %1284 = vmatpush2.bf16.msra.mxu1 %v7523_v28 }
 0x193   : > { %1285 = vmatprep.subr.bf16.mxu1 %v956_v44 }
 0x196   : > { %1286 = vmatpush2.bf16.msra.mxu1 %v7524_v23 }
 0x197   : > { %1287 = vmatprep.subr.bf16.mxu1 %v954_v58 }
 0x19a   : > { %1288 = vmatpush2.bf16.msra.mxu1 %v7525_v15 }
 0x19d   : > { %1290 = vmatmul.mubr.bf16.vlgmr.msra.gmra.mxu1 %v4375_v12 }
 0x19e   : > { %1299 = vmatprep.mubr.bf16.mxu1 %v4378_v11 }
 0x1a5   : > { %1300 = vmatmul.mubr.bf16.gmra.mxu1 %v4380_v42 }
 0x1a6   : > { %1309 = vmatprep.mubr.bf16.mxu1 %v4381_v18 }
 0x1ad   : > { %1310 = vmatmul.mubr.bf16.gmra.mxu1 %v4383_v17 }
 0x1ae   : > { %1319 = vmatprep.mubr.bf16.mxu1 %v4384_v31 }
 0x1b2   : > { %v5563_v51 = vpop.permute.xlu1 %1030  ;;  %v5565_v32 = vpop.permute.xlu0 %1026 }
 0x1b5   : > { %1320 = vmatmul.mubr.bf16.gmra.mxu1 %v4386_v29 }
 0x1b6   : > { %1329 = vmatprep.mubr.bf16.mxu1 %v4387_v26  ;;  %v5567_v52 = vpop.permute.xlu1 %1018  ;;  %v5569_v4 = vpop.permute.xlu0 %1022 }
 0x1ba   : > { %v5571_v56 = vpop.permute.xlu1 %1010  ;;  %v5573_v37 = vpop.permute.xlu0 %1014 }
 0x1bd   : > { %1330 = vmatmul.mubr.bf16.gmra.mxu1 %v4389_v6 }
 0x1be   : > { %1339 = vmatprep.mubr.bf16.mxu1 %v4390_v21  ;;  %v5575_v59 = vpop.permute.xlu1 %1002  ;;  %v5577_v60 = vpop.permute.xlu0 %1006 }
 0x1c2   : > { %v5579_v22 = vpop.permute.xlu1 %994  ;;  %v5581_v36 = vpop.permute.xlu0 %998 }
 0x1c5   : > { %1340 = vmatmul.mubr.bf16.gmra.mxu1 %v4392_v24 }
 0x1c6   : > { %1349 = vmatprep.mubr.bf16.mxu1 %v4393_v2  ;;  %v5583_v9 = vpop.permute.xlu1 %986  ;;  %v5585_v8 = vpop.permute.xlu0 %990 }
 0x1ca   : > { %v5587_v33 = vpop.permute.xlu1 %978  ;;  %v5589_v43 = vpop.permute.xlu0 %982 }
 0x1cd   : > { %1350 = vmatmul.mubr.bf16.gmra.mxu1 %v4395_v27 }
 0x1ce   : > { %1359 = vmatprep.mubr.bf16.mxu1 %v4396_v19  ;;  %v5591_v35 = vpop.permute.xlu1 %970  ;;  %v5595_v7 = vpop.permute.xlu0 %974 }
 0x1d2   : > { %v5619_v31 = vpop.permute.xlu1 %1090  ;;  %v5623_v26 = vpop.permute.xlu0 %1094 }
 0x1d3   : > { %7526 = vst [vmem:[#allocation26_spill] sm:$0xff] %v5619_v31  ;;  %7527 = vst [vmem:[#allocation43_spill] sm:$0xff] %v5623_v26 }
 0x1d5   : > { %1360 = vmatmul.mubr.bf16.gmra.mxu1 %v4398_v62 }
 0x1d6   : > { %1369 = vmatprep.mubr.bf16.mxu1 %v4399_v10  ;;  %v5629_v24 = vpop.permute.xlu1 %1082  ;;  %v5631_v27 = vpop.permute.xlu0 %1086 }
 0x1d7   : > { %7528 = vst [vmem:[#allocation19_spill] sm:$0xff] %v5629_v24  ;;  %7529 = vst [vmem:[#allocation18_spill] sm:$0xff] %v5631_v27 }
 0x1da   : > { %v5635_v10 = vpop.permute.xlu1 %1074 }
 0x1db   : > { %7530 = vst [vmem:[#allocation28_spill] sm:$0xff] %v5635_v10 }
 0x1dd   : > { %1370 = vmatmul.mubr.bf16.gmra.mxu1 %v4401_v34  ;;  %v4425_v34 = vld [vmem:[%s7266_s1 + $0x204] ss:$8 sps:$4 sm:$0xff]  }
 0x1de   : > { %1379 = vmatprep.mubr.bf16.mxu1 %v4402_v53  ;;  %1899 = vmatprep.mubr.bf16.mxu0 %v4425_v34 }
 0x1e5   : > { %1380 = vmatmul.mubr.bf16.gmra.mxu1 %v4404_v47  ;;  %v5642_v47 = vpop.permute.xlu0 %1078 }
 0x1e6   : > { %1389 = vmatprep.mubr.bf16.mxu1 %v4405_v50  ;;  %7531 = vst [vmem:[#allocation27_spill] sm:$0xff] %v5642_v47 }
 0x1ed   : > { %1390 = vmatmul.mubr.bf16.gmra.mxu1 %v4407_v49 }
 0x1ee   : > { %1399 = vmatprep.mubr.bf16.mxu1 %v4408_v14  ;;  %v5644_v14 = vpop.permute.xlu1 %1066 }
 0x1ef   : > { %7532 = vst [vmem:[#allocation21_spill] sm:$0xff] %v5644_v14 }
 0x1f5   : > { %1400 = vmatmul.mubr.bf16.gmra.mxu1 %v4410_v39 }
 0x1f6   : > { %1409 = vmatprep.mubr.bf16.mxu1 %v4411_v5  ;;  %v5646_v5 = vpop.permute.xlu0 %1070 }
 0x1f7   : > { %7533 = vst [vmem:[#allocation20_spill] sm:$0xff] %v5646_v5 }
 0x1fd   : > { %1410 = vmatmul.mubr.bf16.gmra.mxu1 %v4413_v61 }
 0x1fe   : > { %1419 = vmatprep.mubr.bf16.mxu1 %v4414_v57 }
 0x205   : > { %1420 = vmatmul.mubr.bf16.gmra.mxu1 %v4416_v25  ;;  %v5648_v25 = vpop.permute.xlu1 %1058 }
 0x206   : > { %1429 = vmatprep.mubr.bf16.mxu1 %v4417_v55  ;;  %7534 = vst [vmem:[#allocation29_spill] sm:$0xff] %v5648_v25 }
 0x20d   : > { %1430 = vmatmul.mubr.bf16.gmra.mxu1 %v4419_v54  ;;  %v5650_v54 = vpop.permute.xlu0 %1062 }
 0x20e   : > { %1439 = vmatprep.mubr.bf16.mxu1 %v4420_v38  ;;  %7535 = vst [vmem:[#allocation68_spill] sm:$0xff] %v5650_v54 }
 0x215   : > { %1440 = vmatmul.mubr.bf16.gmra.mxu1 %v4422_v13 }
 0x25d   : > { %v1291_v20 = vpop.f32.mrf.mxu1 }
 0x25e   : > { %v1292_v48 = vadd.f32 %v1291_v20, %v5591_v35  ;;  %v5652_v20 = vpop.permute.xlu1 %1050 }
 0x25f   : > { %v5593_v41 = vpop.f32.mrf.mxu1  ;;  %7536 = vst [vmem:[#allocation30_spill] sm:$0xff] %v5652_v20 }
 0x260   : > { %v1450_v30 = vmax.f32 %v1292_v48, 0.0 }
 0x261   : > { %v1295_v1 = vpop.f32.mrf.mxu1 }
 0x262   : > { %v1296_v0 = vadd.f32 %v1295_v1, %v5595_v7  ;;  %v5654_v1 = vpop.permute.xlu0 %1054 }
 0x263   : > { %v5599_v40 = vpop.f32.mrf.mxu1  ;;  %7537 = vst [vmem:[#allocation50_spill] sm:$0xff] %v5654_v1 }
 0x264   : > { %v1452_v46 = vmax.f32 %v1296_v0, 0.0 }
 0x265   : > { %v1301_v3 = vpop.f32.mrf.mxu1 }
 0x266   : > { %v5601_v16 = vpack.c.bf16 %v1452_v46, %v1450_v30  ;;  %v1302_v63 = vadd.f32 %v1301_v3, %v5587_v33  ;;  %v5656_v46 = vpop.permute.xlu1 %1042 }
 0x267   : > { %v5603_v45 = vpop.f32.mrf.mxu1 }
 0x268   : > { %v1454_v23 = vmax.f32 %v1302_v63, 0.0  ;;  %v5658_v63 = vpop.permute.xlu0 %1046 }
 0x269   : > { %v1305_v44 = vpop.f32.mrf.mxu1 }
 0x26a   : > { %v1306_v28 = vadd.f32 %v1305_v44, %v5589_v43  ;;  %v1035_v14 = vpop.permute.xlu1 %1034 }
 0x26b   : > { %v5607_v58 = vpop.f32.mrf.mxu1 }
 0x26c   : > { %v1456_v12 = vmax.f32 %v1306_v28, 0.0 }
 0x26d   : > { %v5609_v15 = vpop.f32.mrf.mxu1 }
 0x26e   : > { %v5611_v11 = vpack.c.bf16 %v1456_v12, %v1454_v23 }
 0x26f   : > { %v5613_v42 = vpop.f32.mrf.mxu1 }
 0x271   : > { %v5615_v18 = vpop.f32.mrf.mxu1 }
 0x273   : > { %v5617_v17 = vpop.f32.mrf.mxu1 }
 0x275   : > { %v5621_v29 = vpop.f32.mrf.mxu1 }
 0x277   : > { %v5625_v6 = vpop.f32.mrf.mxu1 }
 0x279   : > { %v5627_v21 = vpop.f32.mrf.mxu1 }
 0x27b   : > { %v1327_v2 = vpop.f32.mrf.mxu1 }
 0x27d   : > { %v5633_v19 = vpop.f32.mrf.mxu1 }
 0x27f   : > { %v1333_v62 = vpop.f32.mrf.mxu1 }
 0x281   : > { %v5640_v53 = vpop.f32.mrf.mxu1 }
 0x283   : > { %v1337_v50 = vpop.f32.mrf.mxu1 }
 0x285   : > { %v1341_v49 = vpop.f32.mrf.mxu1 }
 0x287   : > { %v1343_v39 = vpop.f32.mrf.mxu1 }
 0x289   : > { %v1345_v61 = vpop.f32.mrf.mxu1 }
 0x28b   : > { %v1347_v57 = vpop.f32.mrf.mxu1 }
 0x28c   : > { %v1348_v10 = vadd.f32 %v1347_v57, %v5573_v37  ;;  %v1346_v57 = vadd.f32 %v1345_v61, %v5573_v37  ;;  %v4644_v37 = vmov 2  }
 0x28d   : > { %v1351_v55 = vpop.f32.mrf.mxu1  ;;  %4309 = vset.pattern.permute.xlu1 %v4644_v37  ;;  %4310 = vset.pattern.permute.xlu0 %v4644_v37 }
 0x28e   : > { %v1473_v26 = vmax.f32 %v1348_v10, 0.0  ;;  %v1336_v10 = vadd.f32 %v5640_v53, %v5577_v60  ;;  %v1332_v53 = vadd.f32 %v5633_v19, %v5575_v59 }
 0x28f   : > { %v1353_v38 = vpop.f32.mrf.mxu1 }
 0x290   : > { %v1354_v20 = vadd.f32 %v1353_v38, %v5567_v52  ;;  %v1039_v38 = vpop.permute.xlu0 %1038 }
 0x291   : > { %v1355_v13 = vpop.f32.mrf.mxu1 }
 0x292   : > { %v1356_v25 = vadd.f32 %v1355_v13, %v5569_v4 }
 0x293   : > { %v1357_v48 = vpop.f32.mrf.mxu1 }
 0x294   : > { %v1358_v44 = vadd.f32 %v1357_v48, %v5569_v4 }
 0x295   : > { %v1361_v0 = vpop.f32.mrf.mxu1 }
 0x296   : > { %v1362_v12 = vadd.f32 %v1361_v0, %v5565_v32  ;;  %v1477_v47 = vmax.f32 %v1358_v44, 0.0  ;;  %v1476_v44 = vmax.f32 %v1356_v25, 0.0 }
 0x297   : > { %v1363_v30 = vpop.f32.mrf.mxu1 }
 0x298   : > { %v1364_v28 = vadd.f32 %v1363_v30, %v5565_v32  ;;  %v5669_v30 = vadd.f32 %v1327_v2, %v5581_v36  ;;  %v1352_v32 = vadd.f32 %v1351_v55, %v5567_v52  ;;  %v1478_v0 = vmax.f32 %v1362_v12, 0.0 }
 0x299   : > { %v1365_v3 = vpop.f32.mrf.mxu1  ;;  %v1334_v52 = vadd.f32 %v1333_v62, %v5575_v59  ;;  %v1342_v55 = vadd.f32 %v1341_v49, %v5571_v56 }
 0x29a   : > { %v1366_v23 = vadd.f32 %v1365_v3, %v5563_v51  ;;  %v1479_v48 = vmax.f32 %v1364_v28, 0.0 }
 0x29b   : > { %v1367_v34 = vpop.f32.mrf.mxu1 }
 0x29c   : > { %v1368_v1 = vadd.f32 %v1367_v34, %v5563_v51  ;;  %v1480_v54 = vmax.f32 %v1366_v23, 0.0  ;;  %v1344_v51 = vadd.f32 %v1343_v39, %v5571_v56  ;;  %v1475_v34 = vmax.f32 %v1354_v20, 0.0  ;;  %v5682_v56 = vld [vmem:[%s7267_s2 + $0x70] sm:$0xff] }
 0x29d   : > { %v1371_v5 = vpop.f32.mrf.mxu1  ;;  %v1338_v23 = vadd.f32 %v1337_v50, %v5577_v60  ;;  %v1474_v39 = vmax.f32 %v1352_v32, 0.0  ;;  %1636 = vperm.xlu1 %4309, %v5682_v56   ;;  %v5690_v60 = vld [vmem:[%s7267_s2 + $0x78] sm:$0xff] }
 0x29e   : > { %v1481_v24 = vmax.f32 %v1368_v1, 0.0  ;;  %v1372_v13 = vadd.f32 %v1371_v5, %v1035_v14  ;;  %v1561_v28 = vpack.c.bf16 %v1480_v54, %v1478_v0  ;;  %v1560_v2 = vpack.c.bf16 %v1477_v47, %v1475_v34  ;;  %1640 = vperm.xlu0 %4310, %v5690_v60  }
 0x29f   : > { %v1373_v3 = vpop.f32.mrf.mxu1  ;;  %v1469_v47 = vmax.f32 %v1338_v23, 0.0  ;;  %v1559_v61 = vpack.c.bf16 %v1476_v44, %v1474_v39  ;;  %v1468_v34 = vmax.f32 %v1336_v10, 0.0  ;;  %v1466_v44 = vmax.f32 %v1332_v53, 0.0 }
 0x2a0   : > { %v1562_v4 = vpack.c.bf16 %v1481_v24, %v1479_v48  ;;  %v1374_v31 = vadd.f32 %v1373_v3, %v1035_v14  ;;  %v1471_v24 = vmax.f32 %v1344_v51, 0.0  ;;  %v1482_v5 = vmax.f32 %v1372_v13, 0.0 }
 0x2a1   : > { %v1375_v1 = vpop.f32.mrf.mxu1  ;;  %v1472_v14 = vmax.f32 %v1346_v57, 0.0  ;;  %v1470_v48 = vmax.f32 %v1342_v55, 0.0  ;;  %v1326_v51 = vadd.f32 %v5627_v21, %v5581_v36  ;;  %v5716_v36 = vld [vmem:[%s7267_s2 + $0x50] sm:$0xff]  ;;  %v1308_v21 = vadd.f32 %v5607_v58, %v5589_v43 }
 0x2a2   : > { %v1376_v27 = vadd.f32 %v1375_v1, %v1039_v38  ;;  %1867 = vmatprep.subr.bf16.mxu0 %v1562_v4  ;;  %v1483_v62 = vmax.f32 %v1374_v31, 0.0  ;;  %v1467_v31 = vmax.f32 %v1334_v52, 0.0  ;;  %v5707_v4 = vld [vmem:[%s7267_s2 + $0x60] sm:$0xff]  ;;  %1620 = vperm.xlu0 %4310, %v5716_v36   ;;  %v1314_v57 = vadd.f32 %v5613_v42, %v5583_v9 }
 0x2a3   : > { %v1377_v20 = vpop.f32.mrf.mxu1  ;;  %1868 = vmatpush1.bf16.msra.mxu0 %v1561_v28  ;;  %v1557_v59 = vpack.c.bf16 %v1472_v14, %v1470_v48  ;;  %1628 = vperm.xlu1 %4309, %v5707_v4   ;;  %v1316_v55 = vadd.f32 %v5615_v18, %v5585_v8  ;;  %v1464_v43 = vmax.f32 %v1326_v51, 0.0  ;;  %v1555_v58 = vpack.c.bf16 %v1468_v34, %v1466_v44  ;;  %v5799_v34 = vld [vmem:[%s7267_s2 + $0x10] sm:$0xff]  ;;  %v5849_v44 = vld [vmem:[%s7267_s2 + $0xe0] sm:$0xff] }
 0x2a4   : > { %v1484_v50 = vmax.f32 %v1376_v27, 0.0  ;;  %v1378_v12 = vadd.f32 %v1377_v20, %v1039_v38  ;;  %1869 = vmatprep.subr.bf16.mxu0 %v1560_v2  ;;  %v1558_v27 = vpack.c.bf16 %v1473_v26, %v1471_v24  ;;  %v1324_v26 = vadd.f32 %v5625_v6, %v5579_v22  ;;  %7543 = vst [vmem:[#allocation32_spill] sm:$0xff] %v5799_v34 }
 0x2a5   : > { %v1381_v25 = vpop.f32.mrf.mxu1  ;;  %v1318_v38 = vadd.f32 %v5617_v17, %v5585_v8  ;;  %v1465_v6 = vmax.f32 %v5669_v30, 0.0  ;;  %v1556_v13 = vpack.c.bf16 %v1469_v47, %v1467_v31  ;;  %v1322_v30 = vadd.f32 %v5621_v29, %v5579_v22  ;;  %v5733_v22 = vld [vmem:[%s7267_s2 + $0x68] sm:$0xff]  ;;  %v5741_v8 = vld [vmem:[%s7267_s2 + $0x40] sm:$0xff]  ;;  %7549 = vst [vmem:[#allocation65_spill] sm:$0xff] %v5849_v44 }
 0x2a6   : > { %v5685_v49 = vpack.c.bf16 %v1484_v50, %v1482_v5  ;;  %v1485_v54 = vmax.f32 %v1378_v12, 0.0  ;;  %v1382_v3 = vadd.f32 %v1381_v25, %v5656_v46  ;;  %v1463_v28 = vmax.f32 %v1324_v26, 0.0  ;;  %7538 = vst [vmem:[#allocation31_spill] sm:$0xff] %v5741_v8  ;;  %1612 = vperm.xlu0 %4310, %v5741_v8   ;;  %v5757_v25 = vld [vmem:[%s7267_s2 + $0x58] sm:$0xff]  ;;  %v5783_v31 = vld [vmem:[%s7267_s2 + $0x20] sm:$0xff] }
 0x2a7   : > { %v1383_v32 = vpop.f32.mrf.mxu1  ;;  %1870 = vmatpush1.bf16.msra.mxu0 %v1559_v61  ;;  %v1461_v39 = vmax.f32 %v1318_v38, 0.0  ;;  %1632 = vperm.xlu1 %4309, %v5733_v22   ;;  %v1312_v18 = vadd.f32 %v5609_v15, %v5583_v9  ;;  %v1462_v5 = vmax.f32 %v1322_v30, 0.0  ;;  %v1304_v12 = vadd.f32 %v5603_v45, %v5587_v33  ;;  %v5765_v45 = vld [vmem:[%s7267_s2 + $0x30] sm:$0xff]  ;;  %7541 = vst [vmem:[#allocation23_spill] sm:$0xff] %v5783_v31  ;;  %v5793_v38 = vld [vmem:[%s7267_s2 + $0x38] sm:$0xff] }
 0x2a8   : > { %v5697_v0 = vpack.c.bf16 %v1485_v54, %v1483_v62  ;;  %1871 = vmatprep.subr.bf16.mxu0 %v1558_v27  ;;  %v1384_v23 = vadd.f32 %v1383_v32, %v5656_v46  ;;  %v1486_v1 = vmax.f32 %v1382_v3, 0.0  ;;  %v1554_v24 = vpack.c.bf16 %v1465_v6, %v1463_v28  ;;  %7539 = vst [vmem:[#allocation64_spill] sm:$0xff] %v5765_v45  ;;  %v5810_v6 = vld [vmem:[%s7267_s2 + $0x28] sm:$0xff] }
 0x2a9   : > { %v1385_v19 = vpop.f32.mrf.mxu1  ;;  %v1459_v37 = vmax.f32 %v1314_v57, 0.0  ;;  %v1460_v47 = vmax.f32 %v1316_v55, 0.0  ;;  %v1553_v14 = vpack.c.bf16 %v1464_v43, %v1462_v5  ;;  %v1298_v9 = vadd.f32 %v5599_v40, %v5595_v7  ;;  %v5777_v40 = vld [vmem:[%s7267_s2 + $0x48] sm:$0xff]  ;;  %7542 = vst [vmem:[#allocation22_spill] sm:$0xff] %v5793_v38  ;;  %7544 = vst [vmem:[#allocation66_spill] sm:$0xff] %v5810_v6  ;;  %v5873_v43 = vld [vmem:[%s7267_s2 + $0xc0] sm:$0xff] }
 0x2aa   : > { %v1386_v17 = vadd.f32 %v1385_v19, %v5658_v63  ;;  %v1487_v42 = vmax.f32 %v1384_v23, 0.0  ;;  %v1457_v15 = vmax.f32 %v1308_v21, 0.0  ;;  %1604 = vperm.xlu0 %4310, %v5765_v45   ;;  %v1458_v27 = vmax.f32 %v1312_v18, 0.0  ;;  %7540 = vst [vmem:[#allocation67_spill] sm:$0xff] %v5777_v40  ;;  %v5833_v21 = vld [vmem:[%s7267_s2 + $0xf0] sm:$0xff]  ;;  %7553 = vst [vmem:[#allocation62_spill] sm:$0xff] %v5873_v43 }
 0x2ab   : > { %v1387_v46 = vpop.f32.mrf.mxu1  ;;  %1872 = vmatpush1.bf16.msra.mxu0 %v1557_v59  ;;  %1624 = vperm.xlu1 %4309, %v5757_v25   ;;  %v1552_v33 = vpack.c.bf16 %v1461_v39, %v1459_v37  ;;  %v1294_v54 = vadd.f32 %v5593_v41, %v5591_v35  ;;  %v1455_v53 = vmax.f32 %v1304_v12, 0.0  ;;  %v1453_v32 = vmax.f32 %v1298_v9, 0.0  ;;  %7547 = vst [vmem:[#allocation60_spill] sm:$0xff] %v5833_v21  ;;  %v5867_v39 = vld [vmem:[%s7267_s2 + $0xe8] sm:$0xff]  ;;  %v5897_v37 = vld [vmem:[%s7267_s2 + $0xa0] sm:$0xff]  ;;  %v5903_v9 = vld [vmem:[%s7267_s2 + $0xb8] sm:$0xff] }
 0x2ac   : > { %v1488_v2 = vmax.f32 %v1386_v17, 0.0  ;;  %v1388_v52 = vadd.f32 %v1387_v46, %v5658_v63  ;;  %1873 = vmatprep.subr.bf16.mxu0 %v1556_v13  ;;  %v1551_v48 = vpack.c.bf16 %v1460_v47, %v1458_v27  ;;  %v5816_v13 = vld [vmem:[%s7267_s2] sm:$0xff]  ;;  %v5827_v17 = vld [vmem:[%s7267_s2 + $0x18] sm:$0xff]  ;;  %7552 = vst [vmem:[#allocation34_spill] sm:$0xff] %v5867_v39  ;;  %v5891_v12 = vld [vmem:[%s7267_s2 + $0xc8] sm:$0xff] }
 0x2ad   : > { %v5728_v20 = vpop.f32.mrf.mxu1  ;;  %v1550_v26 = vpack.c.bf16 %v1457_v15, %v1455_v53  ;;  %v1451_v41 = vmax.f32 %v1294_v54, 0.0  ;;  %7545 = vst [vmem:[#allocation46_spill] sm:$0xff] %v5816_v13  ;;  %7546 = vst [vmem:[#allocation33_spill] sm:$0xff] %v5827_v17  ;;  %v7559_v15 = vld [vmem:[#allocation18_spill] sm:$0xff]  ;;  %v7561_v53 = vld [vmem:[#allocation43_spill] sm:$0xff] }
 0x2ae   : > { %v5736_v29 = vpack.c.bf16 %v1488_v2, %v1486_v1  ;;  %v1489_v63 = vmax.f32 %v1388_v52, 0.0  ;;  %1596 = vperm.xlu0 %4310, %v5783_v31   ;;  %v5855_v1 = vld [vmem:[%s7267_s2 + $0xf8] sm:$0xff]  ;;  %v5861_v2 = vld [vmem:[%s7267_s2 + $0xd0] sm:$0xff]  ;;  %7556 = vst [vmem:[#allocation59_spill] sm:$0xff] %v5891_v12  ;;  %7557 = vst [vmem:[#allocation61_spill] sm:$0xff] %v5897_v37 }
 0x2af   : > { %v5746_v50 = vpop.f32.mrf.mxu1  ;;  %1874 = vmatpush1.bf16.msra.mxu0 %v1555_v58  ;;  %1616 = vperm.xlu1 %4309, %v5777_v40   ;;  %v1548_v51 = vpack.c.bf16 %v1453_v32, %v1451_v41  ;;  %7550 = vst [vmem:[#allocation25_spill] sm:$0xff] %v5855_v1  ;;  %7551 = vst [vmem:[#allocation24_spill] sm:$0xff] %v5861_v2  ;;  %v7560_v27 = vld [vmem:[#allocation26_spill] sm:$0xff]  ;;  %v5912_v32 = vld [vmem:[%s7267_s2 + $0x90] sm:$0xff] }
 0x2b0   : > { %v5750_v10 = vpack.c.bf16 %v1489_v63, %v1487_v42  ;;  %1875 = vmatprep.subr.bf16.mxu0 %v1554_v24  ;;  %v5879_v63 = vld [vmem:[%s7267_s2 + $0xd8] sm:$0xff]  ;;  %v5885_v24 = vld [vmem:[%s7267_s2 + $0xb0] sm:$0xff]  ;;  %7558 = vst [vmem:[#allocation36_spill] sm:$0xff] %v5903_v9  ;;  %7562 = vst [vmem:[#allocation58_spill] sm:$0xff] %v5912_v32 }
 0x2b1   : > { %v5752_v61 = vpop.f32.mrf.mxu1  ;;  %7554 = vst [vmem:[#allocation35_spill] sm:$0xff] %v5879_v63  ;;  %7555 = vst [vmem:[#allocation56_spill] sm:$0xff] %v5885_v24 }
 0x2b2   : > { %1588 = vperm.xlu0 %4310, %v5799_v34  }
 0x2b3   : > { %v5768_v62 = vpop.f32.mrf.mxu1  ;;  %1876 = vmatpush1.bf16.msra.mxu0 %v1553_v14  ;;  %1608 = vperm.xlu1 %4309, %v5793_v38  }
 0x2b4   : > { %1877 = vmatprep.subr.bf16.mxu0 %v1552_v33 }
 0x2b5   : > { %v5772_v7 = vpop.f32.mrf.mxu1 }
 0x2b6   : > { %1580 = vperm.xlu0 %4310, %v5816_v13  }
 0x2b7   : > { %v5786_v35 = vpop.f32.mrf.mxu1  ;;  %1878 = vmatpush1.bf16.msra.mxu0 %v1551_v48  ;;  %1600 = vperm.xlu1 %4309, %v5810_v6  }
 0x2b8   : > { %1879 = vmatprep.subr.bf16.mxu0 %v1550_v26 }
 0x2b9   : > { %v5788_v3 = vpop.f32.mrf.mxu1 }
 0x2ba   : > { %1700 = vperm.xlu0 %4310, %v5833_v21  }
 0x2bb   : > { %v5802_v59 = vpop.f32.mrf.mxu1  ;;  %1880 = vmatpush1.bf16.msra.mxu0 %v5611_v11  ;;  %1592 = vperm.xlu1 %4309, %v5827_v17  }
 0x2bc   : > { %1881 = vmatprep.subr.bf16.mxu0 %v1548_v51  ;;  %v7563_v51 = vld [vmem:[#allocation19_spill] sm:$0xff] }
 0x2bd   : > { %v5805_v19 = vpop.f32.mrf.mxu1 }
 0x2be   : > { %1692 = vperm.xlu0 %4310, %v5849_v44  }
 0x2bf   : > { %v5819_v23 = vpop.f32.mrf.mxu1  ;;  %1882 = vmatpush1.bf16.msra.mxu0 %v5601_v16  ;;  %v5843_v16 = vld [vmem:[%s7267_s2 + $0x8] sm:$0xff] }
 0x2c0   : > { %7548 = vst [vmem:[#allocation63_spill] sm:$0xff] %v5843_v16  ;;  %1584 = vperm.xlu1 %4309, %v5843_v16  }
 0x2c1   : > { %v5822_v11 = vpop.f32.mrf.mxu1 }
 0x2c2   : > { %1684 = vperm.xlu0 %4310, %v5861_v2  }
 0x2c3   : > { %v5836_v57 = vpop.f32.mrf.mxu1 }
 0x2c4   : > { %1704 = vperm.xlu1 %4309, %v5855_v1  }
 0x2c5   : > { %v5838_v30 = vpop.f32.mrf.mxu1 }
 0x2c6   : > { %1676 = vperm.xlu0 %4310, %v5873_v43  }
 0x2c7   : > { %v1423_v46 = vpop.f32.mrf.mxu1 }
 0x2c8   : > { %1696 = vperm.xlu1 %4309, %v5867_v39  }
 0x2c9   : > { %v1425_v28 = vpop.f32.mrf.mxu1 }
 0x2ca   : > { %1668 = vperm.xlu0 %4310, %v5885_v24  }
 0x2cb   : > { %v1427_v52 = vpop.f32.mrf.mxu1 }
 0x2cc   : > { %1688 = vperm.xlu1 %4309, %v5879_v63  }
 0x2cd   : > { %v1431_v55 = vpop.f32.mrf.mxu1 }
 0x2ce   : > { %1660 = vperm.xlu0 %4310, %v5897_v37  }
 0x2cf   : > { %v1433_v58 = vpop.f32.mrf.mxu1 }
 0x2d0   : > { %1680 = vperm.xlu1 %4309, %v5891_v12   ;;  %v1434_v37 = vadd.f32 %v1433_v58, %v7563_v51  ;;  %v5929_v58 = vld [vmem:[%s7267_s2 + $0x80] sm:$0xff] }
 0x2d1   : > { %v1435_v42 = vpop.f32.mrf.mxu1  ;;  %7566 = vst [vmem:[#allocation51_spill] sm:$0xff] %v5929_v58 }
 0x2d2   : > { %1652 = vperm.xlu0 %4310, %v5912_v32  }
 0x2d3   : > { %v1437_v18 = vpop.f32.mrf.mxu1 }
 0x2d4   : > { %1672 = vperm.xlu1 %4309, %v5903_v9   ;;  %v1438_v33 = vadd.f32 %v1437_v18, %v7559_v15  ;;  %v1436_v18 = vadd.f32 %v1435_v42, %v7559_v15  ;;  %v1432_v42 = vadd.f32 %v1431_v55, %v7563_v51 }
 0x2d5   : > { %v1441_v5 = vpop.f32.mrf.mxu1 }
 0x2d6   : > { %v1442_v26 = vadd.f32 %v1441_v5, %v7560_v27  ;;  %v1509_v32 = vmax.f32 %v1438_v33, 0.0  ;;  %1644 = vperm.xlu0 %4310, %v5929_v58  }
 0x2d7   : > { %v1443_v47 = vpop.f32.mrf.mxu1 }
 0x2d8   : > { %v1444_v54 = vadd.f32 %v1443_v47, %v7560_v27  ;;  %v5922_v47 = vld [vmem:[%s7267_s2 + $0xa8] sm:$0xff]  ;;  %v1510_v15 = vmax.f32 %v1442_v26, 0.0  ;;  %v7567_v27 = vld [vmem:[#allocation28_spill] sm:$0xff] }
 0x2d9   : > { %v1445_v14 = vpop.f32.mrf.mxu1  ;;  %7564 = vst [vmem:[#allocation37_spill] sm:$0xff] %v5922_v47  ;;  %1664 = vperm.xlu1 %4309, %v5922_v47  }
 0x2da   : > { %v1446_v48 = vadd.f32 %v1445_v14, %v7561_v53  ;;  %v7565_v14 = vld [vmem:[#allocation27_spill] sm:$0xff]  ;;  %v1511_v43 = vmax.f32 %v1444_v54, 0.0  ;;  %v7569_v54 = vld [vmem:[#allocation20_spill] sm:$0xff] }
 0x2db   : > { %v1447_v41 = vpop.f32.mrf.mxu1  ;;  %v1428_v12 = vadd.f32 %v1427_v52, %v7565_v14  ;;  %v1426_v47 = vadd.f32 %v1425_v28, %v7565_v14  ;;  %v1508_v52 = vmax.f32 %v1436_v18, 0.0  ;;  %v1418_v58 = vadd.f32 %v5836_v57, %v7569_v54  ;;  %v7570_v28 = vld [vmem:[#allocation21_spill] sm:$0xff]  ;;  %v5952_v57 = vld [vmem:[%s7267_s2 + $0x88] sm:$0xff] }
 0x2dc   : > { %v1448_v24 = vadd.f32 %v1447_v41, %v7561_v53  ;;  %v1512_v9 = vmax.f32 %v1446_v48, 0.0  ;;  %v1424_v53 = vadd.f32 %v1423_v46, %v7567_v27  ;;  %v1507_v48 = vmax.f32 %v1434_v37, 0.0  ;;  %7571 = vst [vmem:[#allocation57_spill] sm:$0xff] %v5952_v57 }
 0x2dd   : > { %v1505_v55 = vmax.f32 %v1428_v12, 0.0  ;;  %v1422_v46 = vadd.f32 %v5838_v30, %v7567_v27  ;;  %v1414_v37 = vadd.f32 %v5819_v23, %v7570_v28  ;;  %v1416_v51 = vadd.f32 %v5822_v11, %v7569_v54  ;;  %v7572_v30 = vld [vmem:[#allocation68_spill] sm:$0xff]  ;;  %v7573_v11 = vld [vmem:[#allocation29_spill] sm:$0xff]  ;;  %v7575_v54 = vld [vmem:[#allocation30_spill] sm:$0xff] }
 0x2de   : > { %v1513_v5 = vmax.f32 %v1448_v24, 0.0  ;;  %v1577_v33 = vpack.c.bf16 %v1512_v9, %v1510_v15  ;;  %v5938_v24 = vld [vmem:[%s7267_s2 + $0x98] sm:$0xff]  ;;  %v1576_v26 = vpack.c.bf16 %v1509_v32, %v1507_v48  ;;  %v1503_v9 = vmax.f32 %v1424_v53, 0.0 }
 0x2df   : > { %7568 = vst [vmem:[#allocation54_spill] sm:$0xff] %v5938_v24  ;;  %1656 = vperm.xlu1 %4309, %v5938_v24   ;;  %v1504_v18 = vmax.f32 %v1426_v47, 0.0  ;;  %v1408_v12 = vadd.f32 %v5802_v59, %v7572_v30  ;;  %v1501_v32 = vmax.f32 %v1418_v58, 0.0  ;;  %v1412_v23 = vadd.f32 %v5805_v19, %v7570_v28 }
 0x2e0   : > { %v1578_v41 = vpack.c.bf16 %v1513_v5, %v1511_v43  ;;  %v1506_v43 = vmax.f32 %v1432_v42, 0.0  ;;  %v1574_v5 = vpack.c.bf16 %v1505_v55, %v1503_v9  ;;  %v1502_v42 = vmax.f32 %v1422_v46, 0.0 }
 0x2e1   : > { %v1404_v47 = vadd.f32 %v5786_v35, %v7573_v11  ;;  %v1499_v15 = vmax.f32 %v1414_v37, 0.0  ;;  %v1406_v27 = vadd.f32 %v5788_v3, %v7572_v30  ;;  %v1500_v53 = vmax.f32 %v1416_v51, 0.0  ;;  %v4434_v30 = vld [vmem:[%s7266_s1 + $0x230] ss:$8 sps:$4 sm:$0xff]  }
 0x2e2   : > { %1883 = vmatprep.subr.bf16.mxu0 %v1578_v41  ;;  %v1575_v14 = vpack.c.bf16 %v1508_v52, %v1506_v43  ;;  %v1573_v48 = vpack.c.bf16 %v1504_v18, %v1502_v42  ;;  %v7574_v41 = vld [vmem:[#allocation50_spill] sm:$0xff]  ;;  %v1497_v58 = vmax.f32 %v1408_v12, 0.0  ;;  %v1402_v19 = vadd.f32 %v5772_v7, %v7573_v11 }
 0x2e3   : > { %1884 = vmatpush2.bf16.msra.mxu0 %v1577_v33  ;;  %1648 = vperm.xlu1 %4309, %v5952_v57   ;;  %v1398_v59 = vadd.f32 %v5768_v62, %v7574_v41  ;;  %v1572_v52 = vpack.c.bf16 %v1501_v32, %v1499_v15  ;;  %v1498_v33 = vmax.f32 %v1412_v23, 0.0  ;;  %v1394_v35 = vadd.f32 %v5746_v50, %v7575_v54  ;;  %v4435_v12 = vld [vmem:[%s7266_s1 + $0x244] ss:$8 sps:$4 sm:$0xff]   ;;  %v4437_v32 = vld [vmem:[%s7266_s1 + $0x240] ss:$8 sps:$4 sm:$0xff]  }
 0x2e4   : > { %1885 = vmatprep.subr.bf16.mxu0 %v1576_v26  ;;  %v1495_v55 = vmax.f32 %v1404_v47, 0.0  ;;  %v1396_v3 = vadd.f32 %v5752_v61, %v7574_v41  ;;  %v1496_v26 = vmax.f32 %v1406_v27, 0.0  ;;  %v1392_v62 = vadd.f32 %v5728_v20, %v7575_v54  ;;  %v4423_v20 = vld [vmem:[%s7266_s1 + $0x200] ss:$8 sps:$4 sm:$0xff]   ;;  %v4426_v61 = vld [vmem:[%s7266_s1 + $0x214] ss:$8 sps:$4 sm:$0xff]  }
 0x2e5   : > { %v1571_v46 = vpack.c.bf16 %v1500_v53, %v1498_v33  ;;  %v1493_v43 = vmax.f32 %v1398_v59, 0.0  ;;  %v1494_v37 = vmax.f32 %v1402_v19, 0.0  ;;  %v1491_v7 = vmax.f32 %v1394_v35, 0.0  ;;  %v4440_v23 = vld [vmem:[%s7266_s1 + $0x250] ss:$8 sps:$4 sm:$0xff]  }
 0x2e6   : > { %v1570_v28 = vpack.c.bf16 %v1497_v58, %v1495_v55  ;;  %v1492_v9 = vmax.f32 %v1396_v3, 0.0  ;;  %v1490_v50 = vmax.f32 %v1392_v62, 0.0  ;;  %v4441_v42 = vld [vmem:[%s7266_s1 + $0x264] ss:$8 sps:$4 sm:$0xff]   ;;  %v4443_v11 = vld [vmem:[%s7266_s1 + $0x260] ss:$8 sps:$4 sm:$0xff]  }
 0x2e7   : > { %1886 = vmatpush2.bf16.msra.mxu0 %v1575_v14  ;;  %v1569_v51 = vpack.c.bf16 %v1496_v26, %v1494_v37  ;;  %v1568_v18 = vpack.c.bf16 %v1493_v43, %v1491_v7  ;;  %v4444_v47 = vld [vmem:[%s7266_s1 + $0x274] ss:$8 sps:$4 sm:$0xff]   ;;  %v4446_v15 = vld [vmem:[%s7266_s1 + $0x270] ss:$8 sps:$4 sm:$0xff]   ;;  %v4447_v27 = vld [vmem:[%s7266_s1 + $0x284] ss:$8 sps:$4 sm:$0xff]  }
 0x2e8   : > { %1887 = vmatprep.subr.bf16.mxu0 %v1574_v5  ;;  %v1567_v14 = vpack.c.bf16 %v1492_v9, %v1490_v50  ;;  %v4438_v5 = vld [vmem:[%s7266_s1 + $0x254] ss:$8 sps:$4 sm:$0xff]   ;;  %v4449_v53 = vld [vmem:[%s7266_s1 + $0x280] ss:$8 sps:$4 sm:$0xff]   ;;  %v4452_v41 = vld [vmem:[%s7266_s1 + $0x290] ss:$8 sps:$4 sm:$0xff]  }
 0x2e9   : > { %v4453_v59 = vld [vmem:[%s7266_s1 + $0x2a4] ss:$8 sps:$4 sm:$0xff]   ;;  %v4455_v58 = vld [vmem:[%s7266_s1 + $0x2a0] ss:$8 sps:$4 sm:$0xff]   ;;  %v4458_v19 = vld [vmem:[%s7266_s1 + $0x2b0] ss:$8 sps:$4 sm:$0xff]  }
 0x2ea   : > { %v4459_v33 = vld [vmem:[%s7266_s1 + $0x2c4] ss:$8 sps:$4 sm:$0xff]   ;;  %v4461_v54 = vld [vmem:[%s7266_s1 + $0x2c0] ss:$8 sps:$4 sm:$0xff]   ;;  %v4462_v35 = vld [vmem:[%s7266_s1 + $0x2d4] ss:$8 sps:$4 sm:$0xff]  }
 0x2eb   : > { %1888 = vmatpush2.bf16.msra.mxu0 %v1573_v48  ;;  %v4450_v48 = vld [vmem:[%s7266_s1 + $0x294] ss:$8 sps:$4 sm:$0xff]   ;;  %v4464_v55 = vld [vmem:[%s7266_s1 + $0x2d0] ss:$8 sps:$4 sm:$0xff]   ;;  %v4465_v3 = vld [vmem:[%s7266_s1 + $0x2e4] ss:$8 sps:$4 sm:$0xff]  }
 0x2ec   : > { %1889 = vmatprep.subr.bf16.mxu0 %v1572_v52  ;;  %v4456_v52 = vld [vmem:[%s7266_s1 + $0x2b4] ss:$8 sps:$4 sm:$0xff]   ;;  %v4467_v26 = vld [vmem:[%s7266_s1 + $0x2e0] ss:$8 sps:$4 sm:$0xff]   ;;  %v4470_v43 = vld [vmem:[%s7266_s1 + $0x2f0] ss:$8 sps:$4 sm:$0xff]  }
 0x2ef   : > { %1890 = vmatpush2.bf16.msra.mxu0 %v1571_v46  ;;  %v4468_v46 = vld [vmem:[%s7266_s1 + $0x2f4] ss:$8 sps:$4 sm:$0xff]  }
 0x2f0   : > { %1891 = vmatprep.subr.bf16.mxu0 %v1570_v28 }
 0x2f3   : > { %1892 = vmatpush2.bf16.msra.mxu0 %v1569_v51 }
 0x2f4   : > { %1893 = vmatprep.subr.bf16.mxu0 %v1568_v18 }
 0x2f7   : > { %1894 = vmatpush2.bf16.msra.mxu0 %v1567_v14 }
 0x2f8   : > { %1895 = vmatprep.subr.bf16.mxu0 %v5750_v10  ;;  %v4428_v10 = vld [vmem:[%s7266_s1 + $0x210] ss:$8 sps:$4 sm:$0xff]  }
 0x2fb   : > { %1896 = vmatpush2.bf16.msra.mxu0 %v5736_v29  ;;  %v4432_v29 = vld [vmem:[%s7266_s1 + $0x234] ss:$8 sps:$4 sm:$0xff]  }
 0x2fc   : > { %1897 = vmatprep.subr.bf16.mxu0 %v5697_v0  ;;  %v4429_v0 = vld [vmem:[%s7266_s1 + $0x224] ss:$8 sps:$4 sm:$0xff]  }
 0x2ff   : > { %1898 = vmatpush2.bf16.msra.mxu0 %v5685_v49  ;;  %v4431_v49 = vld [vmem:[%s7266_s1 + $0x220] ss:$8 sps:$4 sm:$0xff]  }
 0x302   : > { %1900 = vmatmul.mubr.bf16.vlgmr.msra.gmra.mxu0 %v4423_v20 }
 0x303   : > { %1909 = vmatprep.mubr.bf16.mxu0 %v4426_v61 }
 0x30a   : > { %1910 = vmatmul.mubr.bf16.gmra.mxu0 %v4428_v10 }
 0x30b   : > { %1919 = vmatprep.mubr.bf16.mxu0 %v4429_v0 }
 0x312   : > { %1920 = vmatmul.mubr.bf16.gmra.mxu0 %v4431_v49 }
 0x313   : > { %1929 = vmatprep.mubr.bf16.mxu0 %v4432_v29 }
 0x318   : > { %v6070_v28 = vpop.permute.xlu1 %1636 }
 0x319   : > { %v6074_v37 = vpop.permute.xlu0 %1640 }
 0x31a   : > { %1930 = vmatmul.mubr.bf16.gmra.mxu0 %v4434_v30 }
 0x31b   : > { %1939 = vmatprep.mubr.bf16.mxu0 %v4435_v12 }
 0x31d   : > { %v6078_v9 = vpop.permute.xlu0 %1620 }
 0x31e   : > { %v6072_v62 = vpop.permute.xlu1 %1628 }
 0x321   : > { %v6082_v18 = vpop.permute.xlu0 %1612 }
 0x322   : > { %1940 = vmatmul.mubr.bf16.gmra.mxu0 %v4437_v32  ;;  %v6076_v7 = vpop.permute.xlu1 %1632 }
 0x323   : > { %1949 = vmatprep.mubr.bf16.mxu0 %v4438_v5 }
 0x325   : > { %v6086_v14 = vpop.permute.xlu0 %1604 }
 0x326   : > { %v6080_v51 = vpop.permute.xlu1 %1624 }
 0x329   : > { %v6090_v61 = vpop.permute.xlu0 %1596 }
 0x32a   : > { %1950 = vmatmul.mubr.bf16.gmra.mxu0 %v4440_v23  ;;  %v6084_v50 = vpop.permute.xlu1 %1616 }
 0x32b   : > { %1959 = vmatprep.mubr.bf16.mxu0 %v4441_v42 }
 0x32d   : > { %v6094_v0 = vpop.permute.xlu0 %1588 }
 0x32e   : > { %v6088_v20 = vpop.permute.xlu1 %1608 }
 0x331   : > { %v6098_v29 = vpop.permute.xlu0 %1580 }
 0x332   : > { %1960 = vmatmul.mubr.bf16.gmra.mxu0 %v4443_v11  ;;  %v6092_v10 = vpop.permute.xlu1 %1600  ;;  %7576 = vst [vmem:[#allocation38_spill] sm:$0xff] %v6098_v29 }
 0x333   : > { %1969 = vmatprep.mubr.bf16.mxu0 %v4444_v47 }
 0x336   : > { %v6096_v49 = vpop.permute.xlu1 %1592 }
 0x33a   : > { %1970 = vmatmul.mubr.bf16.gmra.mxu0 %v4446_v15 }
 0x33b   : > { %1979 = vmatprep.mubr.bf16.mxu0 %v4447_v27  ;;  %v6102_v32 = vpop.permute.xlu1 %1584 }
 0x33c   : > { %7578 = vst [vmem:[#allocation39_spill] sm:$0xff] %v6102_v32 }
 0x342   : > { %1980 = vmatmul.mubr.bf16.gmra.mxu0 %v4449_v53 }
 0x343   : > { %1989 = vmatprep.mubr.bf16.mxu0 %v4450_v48 }
 0x34a   : > { %1990 = vmatmul.mubr.bf16.gmra.mxu0 %v4452_v41 }
 0x34b   : > { %1999 = vmatprep.mubr.bf16.mxu0 %v4453_v59 }
 0x352   : > { %2000 = vmatmul.mubr.bf16.gmra.mxu0 %v4455_v58 }
 0x353   : > { %2009 = vmatprep.mubr.bf16.mxu0 %v4456_v52 }
 0x35a   : > { %2010 = vmatmul.mubr.bf16.gmra.mxu0 %v4458_v19 }
 0x35b   : > { %2019 = vmatprep.mubr.bf16.mxu0 %v4459_v33 }
 0x362   : > { %2020 = vmatmul.mubr.bf16.gmra.mxu0 %v4461_v54 }
 0x363   : > { %2029 = vmatprep.mubr.bf16.mxu0 %v4462_v35 }
 0x36a   : > { %2030 = vmatmul.mubr.bf16.gmra.mxu0 %v4464_v55 }
 0x36b   : > { %2039 = vmatprep.mubr.bf16.mxu0 %v4465_v3 }
 0x372   : > { %2040 = vmatmul.mubr.bf16.gmra.mxu0 %v4467_v26 }
 0x373   : > { %2049 = vmatprep.mubr.bf16.mxu0 %v4468_v46  ;;  %v6126_v46 = vpop.permute.xlu0 %1700 }
 0x374   : > { %7582 = vst [vmem:[#allocation41_spill] sm:$0xff] %v6126_v46 }
 0x37a   : > { %2050 = vmatmul.mubr.bf16.gmra.mxu0 %v4470_v43 }
 0x3c2   : > { %v1901_v30 = vpop.f32.mrf.mxu0 }
 0x3c3   : > { %v1902_v5 = vadd.f32 %v1901_v30, %v6098_v29  ;;  %v6130_v30 = vpop.permute.xlu1 %1704 }
 0x3c4   : > { %v6100_v12 = vpop.f32.mrf.mxu0  ;;  %7583 = vst [vmem:[#allocation44_spill] sm:$0xff] %v6130_v30 }
 0x3c5   : > { %7577 = vst [vmem:[#allocation53_spill] sm:$0xff] %v6100_v12  ;;  %v2060_v47 = vmax.f32 %v1902_v5, 0.0 }
 0x3c6   : > { %v1905_v23 = vpop.f32.mrf.mxu0 }
 0x3c7   : > { %v1906_v42 = vadd.f32 %v1905_v23, %v6102_v32 }
 0x3c8   : > { %v6106_v11 = vpop.f32.mrf.mxu0 }
 0x3c9   : > { %7579 = vst [vmem:[#allocation47_spill] sm:$0xff] %v6106_v11  ;;  %v2062_v15 = vmax.f32 %v1906_v42, 0.0  ;;  %v6136_v42 = vpop.permute.xlu0 %1692 }
 0x3ca   : > { %v1911_v27 = vpop.f32.mrf.mxu0  ;;  %7584 = vst [vmem:[#allocation42_spill] sm:$0xff] %v6136_v42 }
 0x3cb   : > { %v6108_v53 = vpack.c.bf16 %v2062_v15, %v2060_v47  ;;  %v1912_v41 = vadd.f32 %v1911_v27, %v6094_v0  ;;  %v6138_v15 = vpop.permute.xlu1 %1696 }
 0x3cc   : > { %v6110_v48 = vpop.f32.mrf.mxu0  ;;  %7585 = vst [vmem:[#allocation45_spill] sm:$0xff] %v6138_v15 }
 0x3cd   : > { %7580 = vst [vmem:[#allocation40_spill] sm:$0xff] %v6108_v53  ;;  %v2064_v19 = vmax.f32 %v1912_v41, 0.0 }
 0x3ce   : > { %v1915_v59 = vpop.f32.mrf.mxu0 }
 0x3cf   : > { %v1916_v58 = vadd.f32 %v1915_v59, %v6096_v49  ;;  %v6142_v59 = vpop.permute.xlu0 %1684 }
 0x3d0   : > { %v6114_v52 = vpop.f32.mrf.mxu0  ;;  %7586 = vst [vmem:[#allocation55_spill] sm:$0xff] %v6142_v59 }
 0x3d1   : > { %v2066_v33 = vmax.f32 %v1916_v58, 0.0  ;;  %v4473_v58 = vld [vmem:[%s7266_s1 + $0x304] ss:$8 sps:$4 sm:$0xff]  }
 0x3d2   : > { %v6116_v54 = vpop.f32.mrf.mxu0  ;;  %2509 = vmatprep.mubr.bf16.mxu1 %v4473_v58 }
 0x3d3   : > { %v6118_v35 = vpack.c.bf16 %v2066_v33, %v2064_v19  ;;  %v6149_v33 = vpop.permute.xlu1 %1688  ;;  %v6151_v42 = vpop.permute.xlu0 %1676 }
 0x3d4   : > { %v6120_v55 = vpop.f32.mrf.mxu0  ;;  %7587 = vst [vmem:[#allocation52_spill] sm:$0xff] %v6149_v33  ;;  %7588 = vst [vmem:[#allocation48_spill] sm:$0xff] %v6151_v42 }
 0x3d5   : > { %7581 = vst [vmem:[#allocation49_spill] sm:$0xff] %v6118_v35 }
 0x3d6   : > { %v6122_v3 = vpop.f32.mrf.mxu0 }
 0x3d7   : > { %v6153_v46 = vpop.permute.xlu1 %1680  ;;  %v6155_v63 = vpop.permute.xlu0 %1668 }
 0x3d8   : > { %v6124_v26 = vpop.f32.mrf.mxu0  ;;  %7589 = vst [vmem:[#allocation18_spill] sm:$0xff] %v6153_v46  ;;  %7590 = vst [vmem:[#allocation26_spill] sm:$0xff] %v6155_v63 }
 0x3da   : > { %v6128_v43 = vpop.f32.mrf.mxu0 }
 0x3db   : > { %v6157_v39 = vpop.permute.xlu1 %1672  ;;  %v6159_v1 = vpop.permute.xlu0 %1660 }
 0x3dc   : > { %v6132_v5 = vpop.f32.mrf.mxu0  ;;  %7591 = vst [vmem:[#allocation43_spill] sm:$0xff] %v6157_v39  ;;  %7592 = vst [vmem:[#allocation19_spill] sm:$0xff] %v6159_v1 }
 0x3de   : > { %v6134_v23 = vpop.f32.mrf.mxu0 }
 0x3df   : > { %v6161_v33 = vpop.permute.xlu1 %1664  ;;  %v6163_v13 = vpop.permute.xlu0 %1652 }
 0x3e0   : > { %v1937_v47 = vpop.f32.mrf.mxu0  ;;  %7593 = vst [vmem:[#allocation27_spill] sm:$0xff] %v6161_v33 }
 0x3e2   : > { %v6140_v27 = vpop.f32.mrf.mxu0 }
 0x3e3   : > { %v6165_v53 = vpop.permute.xlu1 %1656  ;;  %v1645_v45 = vpop.permute.xlu0 %1644 }
 0x3e4   : > { %v1943_v41 = vpop.f32.mrf.mxu0 }
 0x3e6   : > { %v6147_v19 = vpop.f32.mrf.mxu0 }
 0x3e8   : > { %v1947_v57 = vpop.f32.mrf.mxu0 }
 0x3ea   : > { %v1951_v24 = vpop.f32.mrf.mxu0 }
 0x3ec   : > { %v1953_v30 = vpop.f32.mrf.mxu0 }
 0x3ee   : > { %v1955_v15 = vpop.f32.mrf.mxu0 }
 0x3f0   : > { %v1957_v2 = vpop.f32.mrf.mxu0 }
 0x3f1   : > { %v1958_v12 = vadd.f32 %v1957_v2, %v6080_v51  ;;  %v1956_v2 = vadd.f32 %v1955_v15, %v6080_v51 }
 0x3f2   : > { %v1961_v59 = vpop.f32.mrf.mxu0 }
 0x3f3   : > { %v2083_v11 = vmax.f32 %v1958_v12, 0.0  ;;  %v2082_v51 = vmax.f32 %v1956_v2, 0.0 }
 0x3f4   : > { %v1963_v44 = vpop.f32.mrf.mxu0 }
 0x3f5   : > { %v1964_v1 = vadd.f32 %v1963_v44, %v6072_v62 }
 0x3f6   : > { %v1965_v21 = vpop.f32.mrf.mxu0 }
 0x3f7   : > { %v1966_v6 = vadd.f32 %v1965_v21, %v6076_v7 }
 0x3f8   : > { %v1967_v58 = vpop.f32.mrf.mxu0 }
 0x3f9   : > { %v1968_v34 = vadd.f32 %v1967_v58, %v6076_v7  ;;  %v1948_v7 = vadd.f32 %v1947_v57, %v6084_v50 }
 0x3fa   : > { %v1971_v16 = vpop.f32.mrf.mxu0 }
 0x3fb   : > { %v1972_v17 = vadd.f32 %v1971_v16, %v6070_v28  ;;  %v2087_v29 = vmax.f32 %v1968_v34, 0.0  ;;  %v1962_v16 = vadd.f32 %v1961_v59, %v6072_v62  ;;  %v2086_v34 = vmax.f32 %v1966_v6, 0.0 }
 0x3fc   : > { %v1973_v42 = vpop.f32.mrf.mxu0  ;;  %v1952_v62 = vadd.f32 %v1951_v24, %v6078_v9  ;;  %v4645_v6 = vmov 3  }
 0x3fd   : > { %v1974_v63 = vadd.f32 %v1973_v42, %v6070_v28  ;;  %v6176_v42 = vadd.f32 %v1937_v47, %v6088_v20  ;;  %v2088_v28 = vmax.f32 %v1972_v17, 0.0  ;;  %v1944_v17 = vadd.f32 %v1943_v41, %v6082_v18  ;;  %4312 = vset.pattern.permute.xlu1 %v4645_v6  ;;  %4311 = vset.pattern.permute.xlu0 %v4645_v6 }
 0x3fe   : > { %v1975_v46 = vpop.f32.mrf.mxu0  ;;  %2246 = vperm.xlu1 %4312, %v5682_v56   ;;  %2250 = vperm.xlu0 %4311, %v5690_v60   ;;  %v1936_v60 = vadd.f32 %v6134_v23, %v6088_v20  ;;  %v1924_v20 = vadd.f32 %v6120_v55, %v6090_v61  ;;  %v1932_v23 = vadd.f32 %v6128_v43, %v6086_v14 }
 0x3ff   : > { %v1976_v39 = vadd.f32 %v1975_v46, %v6074_v37  ;;  %v2089_v58 = vmax.f32 %v1974_v63, 0.0  ;;  %v1649_v46 = vpop.permute.xlu1 %1648 }
 0x400   : > { %v1977_v35 = vpop.f32.mrf.mxu0 }
 0x401   : > { %v1978_v33 = vadd.f32 %v1977_v35, %v6074_v37  ;;  %v2090_v31 = vmax.f32 %v1976_v39, 0.0  ;;  %v1954_v37 = vadd.f32 %v1953_v30, %v6078_v9  ;;  %v2085_v35 = vmax.f32 %v1964_v1, 0.0 }
 0x402   : > { %v1981_v38 = vpop.f32.mrf.mxu0  ;;  %v2084_v30 = vmax.f32 %v1962_v16, 0.0  ;;  %2238 = vperm.xlu1 %4312, %v5707_v4   ;;  %2242 = vperm.xlu0 %4311, %v5733_v22   ;;  %v1926_v22 = vadd.f32 %v6122_v3, %v6092_v10  ;;  %v2069_v3 = vmax.f32 %v1924_v20, 0.0 }
 0x403   : > { %v2091_v40 = vmax.f32 %v1978_v33, 0.0  ;;  %v1982_v39 = vadd.f32 %v1981_v38, %v1645_v45  ;;  %v2171_v63 = vpack.c.bf16 %v2090_v31, %v2088_v28  ;;  %v2170_v47 = vpack.c.bf16 %v2087_v29, %v2085_v35 }
 0x404   : > { %v1983_v44 = vpop.f32.mrf.mxu0  ;;  %v1946_v31 = vadd.f32 %v6147_v19, %v6084_v50  ;;  %v2169_v29 = vpack.c.bf16 %v2086_v34, %v2084_v30  ;;  %v1934_v50 = vadd.f32 %v6132_v5, %v6086_v14  ;;  %v2077_v19 = vmax.f32 %v1944_v17, 0.0  ;;  %v7594_v30 = vld [vmem:[#allocation31_spill] sm:$0xff] }
 0x405   : > { %v2172_v21 = vpack.c.bf16 %v2091_v40, %v2089_v58  ;;  %v1984_v32 = vadd.f32 %v1983_v44, %v1645_v45  ;;  %v2081_v40 = vmax.f32 %v1954_v37, 0.0  ;;  %v2092_v38 = vmax.f32 %v1982_v39, 0.0 }
 0x406   : > { %v1985_v33 = vpop.f32.mrf.mxu0  ;;  %v2079_v45 = vmax.f32 %v1948_v7, 0.0  ;;  %v2080_v58 = vmax.f32 %v1952_v62, 0.0  ;;  %2234 = vperm.xlu1 %4312, %v5757_v25   ;;  %2230 = vperm.xlu0 %4311, %v5716_v36   ;;  %v2070_v25 = vmax.f32 %v1926_v22, 0.0  ;;  %v7595_v36 = vld [vmem:[#allocation39_spill] sm:$0xff] }
 0x407   : > { %v1986_v8 = vadd.f32 %v1985_v33, %v1649_v46  ;;  %2477 = vmatprep.subr.bf16.mxu1 %v2172_v21  ;;  %v2168_v24 = vpack.c.bf16 %v2083_v11, %v2081_v40  ;;  %v2093_v9 = vmax.f32 %v1984_v32, 0.0  ;;  %v1928_v32 = vadd.f32 %v6124_v26, %v6092_v10 }
 0x408   : > { %v1987_v1 = vpop.f32.mrf.mxu0  ;;  %2478 = vmatpush1.bf16.msra.mxu1 %v2171_v63  ;;  %v2078_v11 = vmax.f32 %v1946_v31, 0.0  ;;  %v2166_v5 = vpack.c.bf16 %v2079_v45, %v2077_v19  ;;  %v1918_v26 = vadd.f32 %v6114_v52, %v6096_v49  ;;  %v2074_v49 = vmax.f32 %v1936_v60, 0.0  ;;  %v7603_v19 = vld [vmem:[#allocation66_spill] sm:$0xff] }
 0x409   : > { %v2094_v57 = vmax.f32 %v1986_v8, 0.0  ;;  %v1988_v59 = vadd.f32 %v1987_v1, %v1649_v46  ;;  %2479 = vmatprep.subr.bf16.mxu1 %v2170_v47  ;;  %v1942_v8 = vadd.f32 %v6140_v27, %v6082_v18  ;;  %v2167_v18 = vpack.c.bf16 %v2082_v51, %v2080_v58  ;;  %v7596_v1 = vld [vmem:[#allocation47_spill] sm:$0xff] }
 0x40a   : > { %v1991_v12 = vpop.f32.mrf.mxu0  ;;  %v2075_v46 = vmax.f32 %v6176_v42, 0.0  ;;  %v2073_v42 = vmax.f32 %v1934_v50, 0.0  ;;  %v2071_v7 = vmax.f32 %v1928_v32, 0.0  ;;  %v2072_v63 = vmax.f32 %v1932_v23, 0.0  ;;  %2222 = vperm.xlu1 %4312, %v7594_v30   ;;  %v7604_v32 = vld [vmem:[#allocation49_spill] sm:$0xff] }
 0x40b   : > { %v6187_v15 = vpack.c.bf16 %v2094_v57, %v2092_v38  ;;  %v2095_v41 = vmax.f32 %v1988_v59, 0.0  ;;  %v1992_v56 = vadd.f32 %v1991_v12, %v6163_v13  ;;  %v2076_v35 = vmax.f32 %v1942_v8, 0.0  ;;  %v7597_v38 = vld [vmem:[#allocation67_spill] sm:$0xff]  ;;  %v7610_v23 = vld [vmem:[#allocation25_spill] sm:$0xff] }
 0x40c   : > { %v1993_v16 = vpop.f32.mrf.mxu0  ;;  %2480 = vmatpush1.bf16.msra.mxu1 %v2169_v29  ;;  %v2164_v34 = vpack.c.bf16 %v2075_v46, %v2073_v42  ;;  %v1914_v10 = vadd.f32 %v6110_v48, %v6094_v0  ;;  %v2163_v17 = vpack.c.bf16 %v2074_v49, %v2072_v63  ;;  %v2162_v40 = vpack.c.bf16 %v2071_v7, %v2069_v3  ;;  %v7598_v0 = vld [vmem:[#allocation38_spill] sm:$0xff]  ;;  %v7599_v48 = vld [vmem:[#allocation53_spill] sm:$0xff]  ;;  %v7607_v46 = vld [vmem:[#allocation40_spill] sm:$0xff] }
 0x40d   : > { %v6194_v28 = vpack.c.bf16 %v2095_v41, %v2093_v9  ;;  %2481 = vmatprep.subr.bf16.mxu1 %v2168_v24  ;;  %v1994_v44 = vadd.f32 %v1993_v16, %v6163_v13  ;;  %v2096_v21 = vmax.f32 %v1992_v56, 0.0  ;;  %v2165_v52 = vpack.c.bf16 %v2078_v11, %v2076_v35  ;;  %2226 = vperm.xlu0 %4311, %v7597_v38   ;;  %v7600_v29 = vld [vmem:[#allocation22_spill] sm:$0xff]  ;;  %v7601_v9 = vld [vmem:[#allocation64_spill] sm:$0xff]  ;;  %v7602_v16 = vld [vmem:[#allocation23_spill] sm:$0xff] }
 0x40e   : > { %v1995_v27 = vpop.f32.mrf.mxu0  ;;  %v1904_v6 = vadd.f32 %v7599_v48, %v7598_v0  ;;  %v2065_v31 = vmax.f32 %v1914_v10, 0.0  ;;  %2218 = vperm.xlu1 %4312, %v7600_v29   ;;  %v7605_v11 = vld [vmem:[#allocation33_spill] sm:$0xff]  ;;  %v7611_v35 = vld [vmem:[#allocation60_spill] sm:$0xff]  ;;  %v7614_v7 = vld [vmem:[#allocation35_spill] sm:$0xff] }
 0x40f   : > { %v1996_v37 = vadd.f32 %v1995_v27, %v6165_v53  ;;  %v2097_v14 = vmax.f32 %v1994_v44, 0.0  ;;  %v7608_v44 = vld [vmem:[#allocation46_spill] sm:$0xff]  ;;  %v7615_v49 = vld [vmem:[#allocation24_spill] sm:$0xff]  ;;  %v7620_v30 = vld [vmem:[#allocation61_spill] sm:$0xff] }
 0x410   : > { %v1997_v4 = vpop.f32.mrf.mxu0  ;;  %2482 = vmatpush1.bf16.msra.mxu1 %v2167_v18  ;;  %v2061_v8 = vmax.f32 %v1904_v6, 0.0  ;;  %v7606_v18 = vld [vmem:[#allocation32_spill] sm:$0xff]  ;;  %v7625_v6 = vld [vmem:[#allocation42_spill] sm:$0xff] }
 0x411   : > { %v2098_v39 = vmax.f32 %v1996_v37, 0.0  ;;  %v1998_v13 = vadd.f32 %v1997_v4, %v6165_v53  ;;  %2483 = vmatprep.subr.bf16.mxu1 %v2166_v5  ;;  %v1922_v53 = vadd.f32 %v6116_v54, %v6090_v61  ;;  %v1908_v61 = vadd.f32 %v7596_v1, %v7595_v36  ;;  %2214 = vperm.xlu0 %4311, %v7601_v9   ;;  %v7609_v37 = vld [vmem:[#allocation63_spill] sm:$0xff]  ;;  %v7618_v10 = vld [vmem:[#allocation36_spill] sm:$0xff]  ;;  %v7621_v36 = vld [vmem:[#allocation45_spill] sm:$0xff] }
 0x412   : > { %v6215_v2 = vpop.f32.mrf.mxu0  ;;  %v2067_v54 = vmax.f32 %v1918_v26, 0.0  ;;  %2206 = vperm.xlu1 %4312, %v7602_v16   ;;  %v7619_v3 = vld [vmem:[#allocation56_spill] sm:$0xff] }
 0x413   : > { %v6218_v55 = vpack.c.bf16 %v2098_v39, %v2096_v21  ;;  %v2099_v43 = vmax.f32 %v1998_v13, 0.0  ;;  %v2068_v57 = vmax.f32 %v1922_v53, 0.0  ;;  %v2063_v12 = vmax.f32 %v1908_v61, 0.0  ;;  %v7612_v21 = vld [vmem:[#allocation65_spill] sm:$0xff]  ;;  %v7613_v39 = vld [vmem:[#allocation34_spill] sm:$0xff]  ;;  %v7627_v9 = vld [vmem:[#allocation52_spill] sm:$0xff] }
 0x414   : > { %v6223_v33 = vpop.f32.mrf.mxu0  ;;  %2484 = vmatpush1.bf16.msra.mxu1 %v2165_v52  ;;  %v2160_v24 = vpack.c.bf16 %v2067_v54, %v2065_v31  ;;  %v7622_v61 = vld [vmem:[#allocation41_spill] sm:$0xff] }
 0x415   : > { %v6227_v47 = vpack.c.bf16 %v2099_v43, %v2097_v14  ;;  %2485 = vmatprep.subr.bf16.mxu1 %v2164_v34  ;;  %v2161_v45 = vpack.c.bf16 %v2070_v25, %v2068_v57  ;;  %v2158_v50 = vpack.c.bf16 %v2063_v12, %v2061_v8  ;;  %2210 = vperm.xlu0 %4311, %v7603_v19   ;;  %v7616_v43 = vld [vmem:[#allocation62_spill] sm:$0xff]  ;;  %v7617_v34 = vld [vmem:[#allocation59_spill] sm:$0xff]  ;;  %v7624_v57 = vld [vmem:[#allocation37_spill] sm:$0xff] }
 0x416   : > { %v6229_v62 = vpop.f32.mrf.mxu0  ;;  %2202 = vperm.xlu1 %4312, %v7605_v11  }
 0x418   : > { %v6235_v59 = vpop.f32.mrf.mxu0  ;;  %2486 = vmatpush1.bf16.msra.mxu1 %v2163_v17 }
 0x419   : > { %2487 = vmatprep.subr.bf16.mxu1 %v2162_v40  ;;  %2198 = vperm.xlu0 %4311, %v7606_v18   ;;  %v7623_v40 = vld [vmem:[#allocation44_spill] sm:$0xff] }
 0x41a   : > { %v6239_v51 = vpop.f32.mrf.mxu0  ;;  %2190 = vperm.xlu1 %4312, %v7608_v44  }
 0x41c   : > { %v6243_v41 = vpop.f32.mrf.mxu0  ;;  %2488 = vmatpush1.bf16.msra.mxu1 %v2161_v45 }
 0x41d   : > { %2489 = vmatprep.subr.bf16.mxu1 %v2160_v24  ;;  %2194 = vperm.xlu0 %4311, %v7609_v37   ;;  %v7626_v24 = vld [vmem:[#allocation54_spill] sm:$0xff] }
 0x41e   : > { %v6245_v58 = vpop.f32.mrf.mxu0  ;;  %2314 = vperm.xlu1 %4312, %v7610_v23  }
 0x420   : > { %v6249_v56 = vpop.f32.mrf.mxu0  ;;  %2490 = vmatpush1.bf16.msra.mxu1 %v7604_v32  ;;  %v7628_v32 = vld [vmem:[#allocation58_spill] sm:$0xff] }
 0x421   : > { %2491 = vmatprep.subr.bf16.mxu1 %v2158_v50  ;;  %2310 = vperm.xlu0 %4311, %v7611_v35  }
 0x422   : > { %v6252_v60 = vpop.f32.mrf.mxu0  ;;  %2302 = vperm.xlu1 %4312, %v7612_v21  }
 0x424   : > { %v2023_v27 = vpop.f32.mrf.mxu0  ;;  %2492 = vmatpush1.bf16.msra.mxu1 %v7607_v46  ;;  %v7629_v46 = vld [vmem:[#allocation55_spill] sm:$0xff] }
 0x425   : > { %2306 = vperm.xlu0 %4311, %v7613_v39  }
 0x426   : > { %v2025_v5 = vpop.f32.mrf.mxu0  ;;  %2298 = vperm.xlu1 %4312, %v7614_v7   ;;  %v7630_v7 = vld [vmem:[#allocation51_spill] sm:$0xff] }
 0x428   : > { %v2027_v26 = vpop.f32.mrf.mxu0 }
 0x429   : > { %2294 = vperm.xlu0 %4311, %v7615_v49   ;;  %v7631_v49 = vld [vmem:[#allocation18_spill] sm:$0xff] }
 0x42a   : > { %v2031_v20 = vpop.f32.mrf.mxu0  ;;  %2286 = vperm.xlu1 %4312, %v7616_v43   ;;  %v7632_v43 = vld [vmem:[#allocation57_spill] sm:$0xff] }
 0x42c   : > { %v2033_v4 = vpop.f32.mrf.mxu0 }
 0x42d   : > { %2290 = vperm.xlu0 %4311, %v7617_v34   ;;  %v2034_v44 = vadd.f32 %v2033_v4, %v7629_v46  ;;  %v7633_v4 = vld [vmem:[#allocation48_spill] sm:$0xff] }
 0x42e   : > { %v2035_v42 = vpop.f32.mrf.mxu0  ;;  %2282 = vperm.xlu1 %4312, %v7618_v10  }
 0x42f   : > { %v2036_v35 = vadd.f32 %v2035_v42, %v7627_v9  ;;  %v2026_v42 = vadd.f32 %v2025_v5, %v7631_v49 }
 0x430   : > { %v2037_v13 = vpop.f32.mrf.mxu0 }
 0x431   : > { %2278 = vperm.xlu0 %4311, %v7619_v3   ;;  %v2038_v8 = vadd.f32 %v2037_v13, %v7627_v9  ;;  %v2028_v13 = vadd.f32 %v2027_v26, %v7631_v49  ;;  %v2114_v10 = vmax.f32 %v2036_v35, 0.0  ;;  %v4494_v35 = vld [vmem:[%s7266_s1 + $0x374] ss:$8 sps:$4 sm:$0xff]  }
 0x432   : > { %v2041_v22 = vpop.f32.mrf.mxu0  ;;  %2270 = vperm.xlu1 %4312, %v7620_v30   ;;  %v4500_v49 = vld [vmem:[%s7266_s1 + $0x394] ss:$8 sps:$4 sm:$0xff]  }
 0x433   : > { %v2042_v11 = vadd.f32 %v2041_v22, %v7625_v6  ;;  %v2032_v22 = vadd.f32 %v2031_v20, %v7629_v46  ;;  %v7635_v20 = vld [vmem:[#allocation26_spill] sm:$0xff]  ;;  %v4488_v46 = vld [vmem:[%s7266_s1 + $0x354] ss:$8 sps:$4 sm:$0xff]  }
 0x434   : > { %v2043_v52 = vpop.f32.mrf.mxu0 }
 0x435   : > { %2274 = vperm.xlu0 %4311, %v7624_v57   ;;  %v2044_v31 = vadd.f32 %v2043_v52, %v7625_v6  ;;  %v2115_v52 = vmax.f32 %v2038_v8, 0.0  ;;  %v2116_v34 = vmax.f32 %v2042_v11, 0.0  ;;  %v7637_v6 = vld [vmem:[#allocation19_spill] sm:$0xff] }
 0x436   : > { %v2045_v14 = vpop.f32.mrf.mxu0  ;;  %2266 = vperm.xlu1 %4312, %v7626_v24   ;;  %v4485_v11 = vld [vmem:[%s7266_s1 + $0x344] ss:$8 sps:$4 sm:$0xff]  }
 0x437   : > { %v2046_v29 = vadd.f32 %v2045_v14, %v7621_v36  ;;  %v2117_v37 = vmax.f32 %v2044_v31, 0.0 }
 0x438   : > { %v2047_v53 = vpop.f32.mrf.mxu0 }
 0x439   : > { %v2048_v1 = vadd.f32 %v2047_v53, %v7621_v36  ;;  %2262 = vperm.xlu0 %4311, %v7628_v32   ;;  %v2118_v21 = vmax.f32 %v2046_v29, 0.0  ;;  %v2024_v53 = vadd.f32 %v2023_v27, %v7633_v4  ;;  %v2022_v36 = vadd.f32 %v6252_v60, %v7633_v4  ;;  %v4482_v32 = vld [vmem:[%s7266_s1 + $0x330] ss:$8 sps:$4 sm:$0xff]   ;;  %v4507_v4 = vld [vmem:[%s7266_s1 + $0x3c0] ss:$8 sps:$4 sm:$0xff]  }
 0x43a   : > { %v2051_v63 = vpop.f32.mrf.mxu0  ;;  %2254 = vperm.xlu1 %4312, %v7630_v7   ;;  %v2012_v60 = vadd.f32 %v6239_v51, %v7635_v20  ;;  %v4495_v7 = vld [vmem:[%s7266_s1 + $0x380] ss:$8 sps:$4 sm:$0xff]  }
 0x43b   : > { %v2052_v0 = vadd.f32 %v2051_v63, %v7622_v61  ;;  %v2119_v16 = vmax.f32 %v2048_v1, 0.0  ;;  %v2113_v63 = vmax.f32 %v2034_v44, 0.0  ;;  %v2185_v3 = vpack.c.bf16 %v2118_v21, %v2116_v34  ;;  %v4486_v44 = vld [vmem:[%s7266_s1 + $0x350] ss:$8 sps:$4 sm:$0xff]   ;;  %v4509_v34 = vld [vmem:[%s7266_s1 + $0x3c4] ss:$8 sps:$4 sm:$0xff]  }
 0x43c   : > { %v2053_v25 = vpop.f32.mrf.mxu0  ;;  %v2112_v1 = vmax.f32 %v2032_v22, 0.0  ;;  %v2109_v27 = vmax.f32 %v2024_v53, 0.0  ;;  %v2104_v9 = vmax.f32 %v2012_v60, 0.0  ;;  %v4492_v21 = vld [vmem:[%s7266_s1 + $0x370] ss:$8 sps:$4 sm:$0xff]  }
 0x43d   : > { %v2054_v54 = vadd.f32 %v2053_v25, %v7622_v61  ;;  %v2120_v18 = vmax.f32 %v2052_v0, 0.0  ;;  %v2186_v14 = vpack.c.bf16 %v2119_v16, %v2117_v37  ;;  %2258 = vperm.xlu0 %4311, %v7632_v43   ;;  %v7634_v25 = vld [vmem:[#allocation43_spill] sm:$0xff]  ;;  %v2184_v30 = vpack.c.bf16 %v2115_v52, %v2113_v63  ;;  %v4506_v43 = vld [vmem:[%s7266_s1 + $0x3b4] ss:$8 sps:$4 sm:$0xff]   ;;  %v4504_v22 = vld [vmem:[%s7266_s1 + $0x3b0] ss:$8 sps:$4 sm:$0xff]  }
 0x43e   : > { %v2055_v17 = vpop.f32.mrf.mxu0  ;;  %v2018_v26 = vadd.f32 %v6249_v56, %v7634_v25  ;;  %v2014_v61 = vadd.f32 %v6243_v41, %v7635_v20  ;;  %v2016_v5 = vadd.f32 %v6245_v58, %v7634_v25  ;;  %v2004_v41 = vadd.f32 %v6223_v33, %v7637_v6  ;;  %v4491_v37 = vld [vmem:[%s7266_s1 + $0x364] ss:$8 sps:$4 sm:$0xff]   ;;  %v4512_v53 = vld [vmem:[%s7266_s1 + $0x3d4] ss:$8 sps:$4 sm:$0xff]   ;;  %v4510_v63 = vld [vmem:[%s7266_s1 + $0x3d0] ss:$8 sps:$4 sm:$0xff]  }
 0x43f   : > { %v2056_v38 = vadd.f32 %v2055_v17, %v7623_v40  ;;  %v2121_v50 = vmax.f32 %v2054_v54, 0.0  ;;  %v2111_v17 = vmax.f32 %v2028_v13, 0.0  ;;  %v2110_v54 = vmax.f32 %v2026_v42, 0.0  ;;  %v4498_v13 = vld [vmem:[%s7266_s1 + $0x390] ss:$8 sps:$4 sm:$0xff]  }
 0x440   : > { %v2057_v48 = vpop.f32.mrf.mxu0  ;;  %v2107_v57 = vmax.f32 %v2018_v26, 0.0  ;;  %v2105_v31 = vmax.f32 %v2014_v61, 0.0  ;;  %v2101_v51 = vmax.f32 %v2004_v41, 0.0  ;;  %v4503_v52 = vld [vmem:[%s7266_s1 + $0x3a4] ss:$8 sps:$4 sm:$0xff]  }
 0x441   : > { %v2058_v45 = vadd.f32 %v2057_v48, %v7623_v40  ;;  %v2122_v12 = vmax.f32 %v2056_v38, 0.0  ;;  %v2183_v40 = vpack.c.bf16 %v2114_v10, %v2112_v1  ;;  %v7636_v38 = vld [vmem:[#allocation27_spill] sm:$0xff]  ;;  %v2182_v0 = vpack.c.bf16 %v2111_v17, %v2109_v27  ;;  %v4516_v25 = vld [vmem:[%s7266_s1 + $0x3f0] ss:$8 sps:$4 sm:$0xff]  }
 0x442   : > { %v2008_v56 = vadd.f32 %v6235_v59, %v7636_v38  ;;  %v2108_v48 = vmax.f32 %v2022_v36, 0.0  ;;  %v2006_v58 = vadd.f32 %v6229_v62, %v7636_v38  ;;  %v2180_v24 = vpack.c.bf16 %v2107_v57, %v2105_v31  ;;  %v4474_v62 = vld [vmem:[%s7266_s1 + $0x314] ss:$8 sps:$4 sm:$0xff]   ;;  %v4515_v42 = vld [vmem:[%s7266_s1 + $0x3e4] ss:$8 sps:$4 sm:$0xff]  }
 0x443   : > { %v2123_v19 = vmax.f32 %v2058_v45, 0.0  ;;  %v2187_v39 = vpack.c.bf16 %v2122_v12, %v2120_v18  ;;  %v2106_v45 = vmax.f32 %v2016_v5, 0.0  ;;  %v2002_v59 = vadd.f32 %v6215_v2, %v7637_v6  ;;  %v4471_v2 = vld [vmem:[%s7266_s1 + $0x300] ss:$8 sps:$4 sm:$0xff]  }
 0x444   : > { %v2181_v29 = vpack.c.bf16 %v2110_v54, %v2108_v48  ;;  %v2103_v12 = vmax.f32 %v2008_v56, 0.0  ;;  %v2102_v8 = vmax.f32 %v2006_v58, 0.0  ;;  %v4483_v18 = vld [vmem:[%s7266_s1 + $0x340] ss:$8 sps:$4 sm:$0xff]  }
 0x445   : > { %v2188_v23 = vpack.c.bf16 %v2123_v19, %v2121_v50  ;;  %v2179_v16 = vpack.c.bf16 %v2106_v45, %v2104_v9  ;;  %v2100_v33 = vmax.f32 %v2002_v59, 0.0  ;;  %v4513_v10 = vld [vmem:[%s7266_s1 + $0x3e0] ss:$8 sps:$4 sm:$0xff]  }
 0x446   : > { %v2178_v50 = vpack.c.bf16 %v2103_v12, %v2101_v51 }
 0x447   : > { %2493 = vmatprep.subr.bf16.mxu1 %v2188_v23  ;;  %v2177_v19 = vpack.c.bf16 %v2102_v8, %v2100_v33  ;;  %v4489_v23 = vld [vmem:[%s7266_s1 + $0x360] ss:$8 sps:$4 sm:$0xff]  }
 0x448   : > { %2494 = vmatpush2.bf16.msra.mxu1 %v2187_v39  ;;  %v4497_v39 = vld [vmem:[%s7266_s1 + $0x384] ss:$8 sps:$4 sm:$0xff]  }
 0x449   : > { %2495 = vmatprep.subr.bf16.mxu1 %v2186_v14  ;;  %v4501_v14 = vld [vmem:[%s7266_s1 + $0x3a0] ss:$8 sps:$4 sm:$0xff]  }
 0x44c   : > { %2496 = vmatpush2.bf16.msra.mxu1 %v2185_v3  ;;  %v4518_v3 = vld [vmem:[%s7266_s1 + $0x3f4] ss:$8 sps:$4 sm:$0xff]  }
 0x44d   : > { %2497 = vmatprep.subr.bf16.mxu1 %v2184_v30 }
 0x450   : > { %2498 = vmatpush2.bf16.msra.mxu1 %v2183_v40 }
 0x451   : > { %2499 = vmatprep.subr.bf16.mxu1 %v2182_v0 }
 0x454   : > { %2500 = vmatpush2.bf16.msra.mxu1 %v2181_v29 }
 0x455   : > { %2501 = vmatprep.subr.bf16.mxu1 %v2180_v24 }
 0x458   : > { %2502 = vmatpush2.bf16.msra.mxu1 %v2179_v16 }
 0x459   : > { %2503 = vmatprep.subr.bf16.mxu1 %v2178_v50 }
 0x45c   : > { %2504 = vmatpush2.bf16.msra.mxu1 %v2177_v19 }
 0x45d   : > { %2505 = vmatprep.subr.bf16.mxu1 %v6227_v47  ;;  %v4476_v47 = vld [vmem:[%s7266_s1 + $0x310] ss:$8 sps:$4 sm:$0xff]  }
 0x460   : > { %2506 = vmatpush2.bf16.msra.mxu1 %v6218_v55  ;;  %v4480_v55 = vld [vmem:[%s7266_s1 + $0x334] ss:$8 sps:$4 sm:$0xff]  }
 0x461   : > { %2507 = vmatprep.subr.bf16.mxu1 %v6194_v28  ;;  %v4477_v28 = vld [vmem:[%s7266_s1 + $0x324] ss:$8 sps:$4 sm:$0xff]  }
 0x464   : > { %2508 = vmatpush2.bf16.msra.mxu1 %v6187_v15  ;;  %v4479_v15 = vld [vmem:[%s7266_s1 + $0x320] ss:$8 sps:$4 sm:$0xff]  }
 0x467   : > { %2510 = vmatmul.mubr.bf16.vlgmr.msra.gmra.mxu1 %v4471_v2  ;;  %v6542_v2 = vld [vmem:[%s7267_s2 + $0x18] sm:$0xff] }
 0x468   : > { %2519 = vmatprep.mubr.bf16.mxu1 %v4474_v62  ;;  %7656 = vst [vmem:[#allocation23_spill] sm:$0xff] %v6542_v2 }
 0x46f   : > { %2520 = vmatmul.mubr.bf16.gmra.mxu1 %v4476_v47 }
 0x470   : > { %2529 = vmatprep.mubr.bf16.mxu1 %v4477_v28 }
 0x477   : > { %2530 = vmatmul.mubr.bf16.gmra.mxu1 %v4479_v15  ;;  %v6548_v15 = vld [vmem:[%s7267_s2 + $0x30] sm:$0xff] }
 0x478   : > { %2539 = vmatprep.mubr.bf16.mxu1 %v4480_v55  ;;  %7657 = vst [vmem:[#allocation66_spill] sm:$0xff] %v6548_v15 }
 0x479   : > { %v6405_v26 = vpop.permute.xlu1 %2246  ;;  %v6407_v17 = vpop.permute.xlu0 %2250 }
 0x47d   : > { %v6409_v30 = vpop.permute.xlu1 %2238  ;;  %v6411_v36 = vpop.permute.xlu0 %2242 }
 0x47f   : > { %2540 = vmatmul.mubr.bf16.gmra.mxu1 %v4482_v32 }
 0x480   : > { %2549 = vmatprep.mubr.bf16.mxu1 %v4485_v11  ;;  %v7639_v11 = vld [vmem:[#allocation8_spill] sm:$0xff] }
 0x481   : > { %v6413_v1 = vpop.permute.xlu1 %2234  ;;  %v6415_v20 = vpop.permute.xlu0 %2230 }
 0x485   : > { %v6417_v61 = vpop.permute.xlu1 %2222 }
 0x487   : > { %2550 = vmatmul.mubr.bf16.gmra.mxu1 %v4483_v18  ;;  %v7640_v18 = vrot.slane %v7639_v11, 3 }
 0x488   : > { %2559 = vmatprep.mubr.bf16.mxu1 %v4488_v46  ;;  %v6419_v27 = vpop.permute.xlu0 %2226 }
 0x489   : > { %v6421_v5 = vpop.permute.xlu1 %2218  ;;  %v262_v46 = vsel %vm261_vm0, 0.0, %v7640_v18 }
 0x48c   : > { %v6423_v54 = vpop.permute.xlu0 %2214 }
 0x48d   : > { %v6425_v40 = vpop.permute.xlu1 %2206 }
 0x48f   : > { %2560 = vmatmul.mubr.bf16.gmra.mxu1 %v4486_v44 }
 0x490   : > { %2569 = vmatprep.mubr.bf16.mxu1 %v4491_v37  ;;  %v6427_v38 = vpop.permute.xlu0 %2210 }
 0x491   : > { %v2203_v56 = vpop.permute.xlu1 %2202 }
 0x494   : > { %v2199_v57 = vpop.permute.xlu0 %2198 }
 0x495   : > { %v2191_v0 = vpop.permute.xlu1 %2190 }
 0x497   : > { %2570 = vmatmul.mubr.bf16.gmra.mxu1 %v4489_v23 }
 0x498   : > { %2579 = vmatprep.mubr.bf16.mxu1 %v4494_v35  ;;  %v2195_v41 = vpop.permute.xlu0 %2194 }
 0x49f   : > { %2580 = vmatmul.mubr.bf16.gmra.mxu1 %v4492_v21  ;;  %v7641_v21 = vld [vmem:[#allocation9_spill] sm:$0xff] }
 0x4a0   : > { %2589 = vmatprep.mubr.bf16.mxu1 %v4497_v39  ;;  %v263_v39 = vsel %vm261_vm0, 0.0, %v7641_v21 }
 0x4a7   : > { %2590 = vmatmul.mubr.bf16.gmra.mxu1 %v4495_v7 }
 0x4a8   : > { %2599 = vmatprep.mubr.bf16.mxu1 %v4500_v49 }
 0x4af   : > { %2600 = vmatmul.mubr.bf16.gmra.mxu1 %v4498_v13 }
 0x4b0   : > { %2609 = vmatprep.mubr.bf16.mxu1 %v4503_v52 }
 0x4b7   : > { %2610 = vmatmul.mubr.bf16.gmra.mxu1 %v4501_v14 }
 0x4b8   : > { %2619 = vmatprep.mubr.bf16.mxu1 %v4506_v43 }
 0x4bf   : > { %2620 = vmatmul.mubr.bf16.gmra.mxu1 %v4504_v22 }
 0x4c0   : > { %2629 = vmatprep.mubr.bf16.mxu1 %v4509_v34 }
 0x4c7   : > { %2630 = vmatmul.mubr.bf16.gmra.mxu1 %v4507_v4 }
 0x4c8   : > { %2639 = vmatprep.mubr.bf16.mxu1 %v4512_v53 }
 0x4cf   : > { %2640 = vmatmul.mubr.bf16.gmra.mxu1 %v4510_v63 }
 0x4d0   : > { %2649 = vmatprep.mubr.bf16.mxu1 %v4515_v42  ;;  %v7660_v42 = vld [vmem:[#allocation7_spill] sm:$0xff] }
 0x4d7   : > { %2650 = vmatmul.mubr.bf16.gmra.mxu1 %v4513_v10 }
 0x4d8   : > { %2659 = vmatprep.mubr.bf16.mxu1 %v4518_v3  ;;  %v6459_v3 = vpop.permute.xlu1 %2314 }
 0x4d9   : > { %7642 = vst [vmem:[#allocation20_spill] sm:$0xff] %v6459_v3 }
 0x4df   : > { %2660 = vmatmul.mubr.bf16.gmra.mxu1 %v4516_v25 }
 0x527   : > { %v2511_v60 = vpop.f32.mrf.mxu1 }
 0x528   : > { %v2512_v48 = vadd.f32 %v2511_v60, %v2191_v0 }
 0x529   : > { %v2513_v6 = vpop.f32.mrf.mxu1 }
 0x52a   : > { %v2514_v31 = vadd.f32 %v2513_v6, %v2191_v0  ;;  %v2670_v45 = vmax.f32 %v2512_v48, 0.0  ;;  %v6466_v6 = vpop.permute.xlu0 %2310  ;;  %v6558_v0 = vsel %vm261_vm0, 0.0, %v7660_v42  ;;  %v7664_v42 = vld [vmem:[#allocation2_spill] sm:$0xff] }
 0x52b   : > { %v2515_v58 = vpop.f32.mrf.mxu1  ;;  %7643 = vst [vmem:[#allocation21_spill] sm:$0xff] %v6466_v6  ;;  %v7669_v6 = vld [vmem:[#allocation17_spill] sm:$0xff] }
 0x52c   : > { %v2516_v29 = vadd.f32 %v2515_v58, %v2195_v41  ;;  %v2671_v24 = vmax.f32 %v2514_v31, 0.0  ;;  %v6429_v8 = vmul.f32 0.70710677, %v2670_v45  ;;  %v6472_v45 = vpop.permute.xlu1 %2302 }
 0x52d   : > { %v2517_v12 = vpop.f32.mrf.mxu1  ;;  %7644 = vst [vmem:[#allocation68_spill] sm:$0xff] %v6472_v45  ;;  %v7665_v45 = vrot.slane %v7664_v42, 3  ;;  %v6596_v42 = vsel %vm261_vm0, 0.0, %v7669_v6 }
 0x52e   : > { %v2672_v59 = vmax.f32 %v2516_v29, 0.0  ;;  %v2518_v9 = vadd.f32 %v2517_v12, %v2195_v41  ;;  %7638 = vst [vmem:[#allocation28_spill] sm:$0xff] %v6429_v8  ;;  %v6433_v19 = vmul.f32 0.70710677, %v2671_v24 }
 0x52f   : > { %v2521_v51 = vpop.f32.mrf.mxu1 }
 0x530   : > { %v6431_v16 = vmul.f32 0.70710677, %v2672_v59  ;;  %v2673_v50 = vmax.f32 %v2518_v9, 0.0  ;;  %v2522_v47 = vadd.f32 %v2521_v51, %v2199_v57  ;;  %v6476_v59 = vpop.permute.xlu0 %2306  ;;  %v6480_v51 = vpop.permute.xlu1 %2298 }
 0x531   : > { %v2523_v33 = vpop.f32.mrf.mxu1  ;;  %7645 = vst [vmem:[#allocation29_spill] sm:$0xff] %v6476_v59  ;;  %7646 = vst [vmem:[#allocation50_spill] sm:$0xff] %v6480_v51 }
 0x532   : > { %v6437_v62 = vmul.f32 0.70710677, %v2673_v50  ;;  %v2524_v55 = vadd.f32 %v2523_v33, %v2199_v57  ;;  %v2674_v37 = vmax.f32 %v2522_v47, 0.0 }
 0x533   : > { %v2525_v28 = vpop.f32.mrf.mxu1 }
 0x534   : > { %v2526_v32 = vadd.f32 %v2525_v28, %v2203_v56  ;;  %v2675_v49 = vmax.f32 %v2524_v55, 0.0  ;;  %v6449_v22 = vmul.f32 0.70710677, %v2674_v37  ;;  %v6482_v47 = vpop.permute.xlu0 %2294  ;;  %v4521_v55 = vld [vmem:[%s7266_s1 + $0x404] ss:$8 sps:$4 sm:$0xff]  }
 0x535   : > { %v2527_v44 = vpop.f32.mrf.mxu1  ;;  %7647 = vst [vmem:[#allocation30_spill] sm:$0xff] %v6482_v47  ;;  %3247 = vmatprep.mubr.bf16.mxu0 %v4521_v55 }
 0x536   : > { %v2676_v23 = vmax.f32 %v2526_v32, 0.0  ;;  %v2528_v35 = vadd.f32 %v2527_v44, %v2203_v56  ;;  %v6453_v63 = vmul.f32 0.70710677, %v2675_v49  ;;  %v6489_v32 = vpop.permute.xlu1 %2286 }
 0x537   : > { %v2531_v7 = vpop.f32.mrf.mxu1  ;;  %7648 = vst [vmem:[#allocation31_spill] sm:$0xff] %v6489_v32 }
 0x538   : > { %v2740_v13 = vadd.f32 %v2676_v23, %v262_v46  ;;  %v2677_v52 = vmax.f32 %v2528_v35, 0.0  ;;  %v2532_v14 = vadd.f32 %v2531_v7, %v6425_v40  ;;  %v6495_v46 = vpop.permute.xlu0 %2290  ;;  %v4646_v35 = vmov 4   ;;  %v6512_v7 = vld [vmem:[%s7267_s2 + $0x8] sm:$0xff] }
 0x539   : > { %v6447_v43 = vpop.f32.mrf.mxu1  ;;  %7649 = vst [vmem:[#allocation39_spill] sm:$0xff] %v6495_v46  ;;  %4313 = vset.pattern.permute.xlu1 %v4646_v35  ;;  %4314 = vset.pattern.permute.xlu0 %v4646_v35  ;;  %7652 = vst [vmem:[#allocation38_spill] sm:$0xff] %v6512_v7 }
 0x53a   : > { %v6451_v34 = vmul.f32 0.70710677, %v2740_v13  ;;  %v2741_v4 = vadd.f32 %v2677_v52, %v263_v39  ;;  %v2678_v25 = vmax.f32 %v2532_v14, 0.0  ;;  %v6499_v37 = vpop.permute.xlu1 %2282  ;;  %v6506_v39 = vld [vmem:[%s7267_s2] sm:$0xff]  ;;  %2932 = vperm.xlu0 %4314, %v6512_v7  }
 0x53b   : > { %v2535_v53 = vpop.f32.mrf.mxu1  ;;  %7650 = vst [vmem:[#allocation47_spill] sm:$0xff] %v6499_v37  ;;  %7651 = vst [vmem:[#allocation67_spill] sm:$0xff] %v6506_v39  ;;  %2928 = vperm.xlu1 %4313, %v6506_v39  }
 0x53c   : > { %v6457_v10 = vmul.f32 0.70710677, %v2741_v4  ;;  %v2536_v56 = vadd.f32 %v2535_v53, %v6427_v38  ;;  %v6468_v41 = vmul.f32 0.70710677, %v2678_v25  ;;  %v6515_v49 = vpop.permute.xlu0 %2278  ;;  %v6522_v4 = vld [vmem:[%s7267_s2 + $0x10] sm:$0xff]  ;;  %v6528_v53 = vld [vmem:[%s7267_s2 + $0x20] sm:$0xff] }
 0x53d   : > { %v2537_v57 = vpop.f32.mrf.mxu1  ;;  %7653 = vst [vmem:[#allocation53_spill] sm:$0xff] %v6515_v49  ;;  %7654 = vst [vmem:[#allocation22_spill] sm:$0xff] %v6522_v4  ;;  %v7661_v49 = vld [vmem:[#allocation3_spill] sm:$0xff] }
 0x53e   : > { %v2680_v60 = vmax.f32 %v2536_v56, 0.0  ;;  %v6517_v52 = vpop.permute.xlu1 %2270  ;;  %7655 = vst [vmem:[#allocation64_spill] sm:$0xff] %v6528_v53  ;;  %2944 = vperm.xlu0 %4314, %v6528_v53   ;;  %v7662_v32 = vrot.slane %v7661_v49, 3 }
 0x53f   : > { %v6464_v48 = vpop.f32.mrf.mxu1  ;;  %2936 = vperm.xlu1 %4313, %v6522_v4  }
 0x540   : > { %v6470_v31 = vmul.f32 0.70710677, %v2680_v60  ;;  %v6531_v56 = vpop.permute.xlu0 %2274  ;;  %v6534_v60 = vadd.f32 %v2537_v57, %v6427_v38  ;;  %v7658_v38 = vld [vmem:[#allocation6_spill] sm:$0xff]  ;;  %v6566_v46 = vsel %vm261_vm0, 0.0, %v7662_v32  ;;  %v6584_v32 = vadd.f32 %v6447_v43, %v6425_v40 }
 0x541   : > { %v2543_v58 = vpop.f32.mrf.mxu1  ;;  %v7659_v57 = vrot.slane %v7658_v38, 3  ;;  %v7663_v38 = vld [vmem:[#allocation5_spill] sm:$0xff] }
 0x542   : > { %2952 = vperm.xlu0 %4314, %v6548_v15   ;;  %v6568_v47 = vpop.permute.xlu1 %2266 }
 0x543   : > { %v2545_v12 = vpop.f32.mrf.mxu1  ;;  %2940 = vperm.xlu1 %4313, %v6542_v2  }
 0x544   : > { %v6537_v55 = vadd.f32 %v2545_v12, %v6421_v5  ;;  %v6554_v12 = vsel %vm261_vm0, 0.0, %v7659_v57  ;;  %v6575_v57 = vsel %vm261_vm0, 0.0, %v7663_v38 }
 0x545   : > { %v2547_v24 = vpop.f32.mrf.mxu1 }
 0x546   : > { %v6561_v29 = vadd.f32 %v2547_v24, %v6421_v5  ;;  %v268_v5 = vsel %vm261_vm0, 0.0, %v7665_v45  ;;  %v7666_v24 = vld [vmem:[#allocation4_spill] sm:$0xff]  ;;  %v2255_v2 = vpop.permute.xlu1 %2254 }
 0x547   : > { %v6478_v9 = vpop.f32.mrf.mxu1  ;;  %v269_v49 = vsel %vm261_vm0, 0.0, %v7666_v24  ;;  %v6600_v24 = vadd.f32 %v2543_v58, %v6423_v54 }
 0x548   : > { %v6624_v59 = vadd.f32 %v6478_v9, %v6417_v61 }
 0x549   : > { %v2553_v50 = vpop.f32.mrf.mxu1 }
 0x54a   : > { %v6571_v37 = vadd.f32 %v2553_v50, %v6417_v61  ;;  %v7667_v50 = vld [vmem:[#allocation15_spill] sm:$0xff] }
 0x54b   : > { %v2555_v33 = vpop.f32.mrf.mxu1  ;;  %v7668_v3 = vrot.slane %v7667_v50, 3  ;;  %v6607_v50 = vld [vmem:[%s7267_s2 + $0x28] sm:$0xff] }
 0x54c   : > { %v6587_v53 = vadd.f32 %v2555_v33, %v6419_v27  ;;  %7670 = vst [vmem:[#allocation49_spill] sm:$0xff] %v6607_v50  ;;  %2948 = vperm.xlu1 %4313, %v6607_v50  }
 0x54d   : > { %v6484_v28 = vpop.f32.mrf.mxu1  ;;  %v6592_v38 = vsel %vm261_vm0, 0.0, %v7668_v3  ;;  %v6613_v3 = vld [vmem:[%s7267_s2 + $0x40] sm:$0xff] }
 0x54e   : > { %7671 = vst [vmem:[#allocation33_spill] sm:$0xff] %v6613_v3  ;;  %2960 = vperm.xlu0 %4314, %v6613_v3   ;;  %v6629_v50 = vadd.f32 %v6484_v28, %v6419_v27 }
 0x54f   : > { %v6491_v11 = vpop.f32.mrf.mxu1 }
 0x551   : > { %v6493_v18 = vpop.f32.mrf.mxu1 }
 0x552   : > { %v6637_v61 = vadd.f32 %v6493_v18, %v6415_v20 }
 0x553   : > { %v6497_v44 = vpop.f32.mrf.mxu1 }
 0x554   : > { %v2566_v9 = vadd.f32 %v6497_v44, %v6413_v1 }
 0x555   : > { %v2567_v23 = vpop.f32.mrf.mxu1 }
 0x556   : > { %v2568_v43 = vadd.f32 %v2567_v23, %v6413_v1  ;;  %v6618_v23 = vpop.permute.xlu0 %2262 }
 0x557   : > { %v6501_v21 = vpop.f32.mrf.mxu1 }
 0x558   : > { %v2693_v27 = vmax.f32 %v2568_v43, 0.0 }
 0x559   : > { %v2573_v13 = vpop.f32.mrf.mxu1 }
 0x55a   : > { %v2574_v4 = vadd.f32 %v2573_v13, %v6409_v30 }
 0x55b   : > { %v2575_v14 = vpop.f32.mrf.mxu1 }
 0x55c   : > { %v2576_v28 = vadd.f32 %v2575_v14, %v6411_v36  ;;  %v2572_v14 = vadd.f32 %v6501_v21, %v6409_v30  ;;  %v2695_v51 = vmax.f32 %v2574_v4, 0.0  ;;  %v6665_v30 = vld [vmem:[%s7267_s2 + $0x48] sm:$0xff] }
 0x55d   : > { %v2577_v25 = vpop.f32.mrf.mxu1  ;;  %7674 = vst [vmem:[#allocation46_spill] sm:$0xff] %v6665_v30 }
 0x55e   : > { %v2578_v58 = vadd.f32 %v2577_v25, %v6411_v36  ;;  %v2689_v36 = vmax.f32 %v6629_v50, 0.0  ;;  %v6659_v25 = vadd.f32 %v6491_v11, %v6415_v20  ;;  %v6671_v20 = vld [vmem:[%s7267_s2 + $0x60] sm:$0xff] }
 0x55f   : > { %v2581_v35 = vpop.f32.mrf.mxu1  ;;  %7675 = vst [vmem:[#allocation63_spill] sm:$0xff] %v6671_v20 }
 0x560   : > { %v2582_v6 = vadd.f32 %v2581_v35, %v6405_v26  ;;  %v6645_v35 = vld [vmem:[%s7267_s2 + $0x38] sm:$0xff]  ;;  %v2697_v18 = vmax.f32 %v2578_v58, 0.0  ;;  %v2696_v58 = vmax.f32 %v2576_v28, 0.0  ;;  %v2823_v28 = vmul.f32 0.70710677, %v2695_v51  ;;  %v6685_v51 = vld [vmem:[%s7267_s2 + $0x70] sm:$0xff] }
 0x561   : > { %v2583_v15 = vpop.f32.mrf.mxu1  ;;  %7672 = vst [vmem:[#allocation32_spill] sm:$0xff] %v6645_v35  ;;  %2956 = vperm.xlu1 %4313, %v6645_v35   ;;  %v2259_v35 = vpop.permute.xlu0 %2258 }
 0x562   : > { %v2584_v45 = vadd.f32 %v2583_v15, %v6405_v26  ;;  %v2825_v11 = vmul.f32 0.70710677, %v2697_v18 }
 0x563   : > { %v2585_v33 = vpop.f32.mrf.mxu1 }
 0x564   : > { %v2586_v40 = vadd.f32 %v2585_v33, %v6407_v17  ;;  %v2699_v1 = vmax.f32 %v2584_v45, 0.0  ;;  %v2691_v45 = vmax.f32 %v6637_v61, 0.0 }
 0x565   : > { %v2587_v3 = vpop.f32.mrf.mxu1  ;;  %2964 = vperm.xlu1 %4313, %v6665_v30   ;;  %v2824_v30 = vmul.f32 0.70710677, %v2696_v58 }
 0x566   : > { %v2700_v15 = vmax.f32 %v2586_v40, 0.0  ;;  %v2588_v33 = vadd.f32 %v2587_v3, %v6407_v17  ;;  %v6651_v17 = vld [vmem:[%s7267_s2 + $0x50] sm:$0xff]  ;;  %v2698_v40 = vmax.f32 %v2582_v6, 0.0  ;;  %v2827_v21 = vmul.f32 0.70710677, %v2699_v1 }
 0x567   : > { %v2591_v26 = vpop.f32.mrf.mxu1  ;;  %7673 = vst [vmem:[#allocation40_spill] sm:$0xff] %v6651_v17  ;;  %2968 = vperm.xlu0 %4314, %v6651_v17  }
 0x568   : > { %v2764_v44 = vadd.f32 %v2700_v15, %v268_v5  ;;  %v2701_v13 = vmax.f32 %v2588_v33, 0.0  ;;  %v2592_v43 = vadd.f32 %v2591_v26, %v2255_v2  ;;  %v2692_v5 = vmax.f32 %v2566_v9, 0.0 }
 0x569   : > { %v2593_v3 = vpop.f32.mrf.mxu1  ;;  %v2826_v6 = vmul.f32 0.70710677, %v2698_v40 }
 0x56a   : > { %v2765_v7 = vadd.f32 %v2701_v13, %v269_v49  ;;  %v2594_v17 = vadd.f32 %v2593_v3, %v2255_v2  ;;  %v2828_v15 = vmul.f32 0.70710677, %v2764_v44  ;;  %v2757_v2 = vadd.f32 %v2693_v27, %v6575_v57  ;;  %v6679_v57 = vld [vmem:[%s7267_s2 + $0x58] sm:$0xff] }
 0x56b   : > { %v2595_v50 = vpop.f32.mrf.mxu1  ;;  %2976 = vperm.xlu0 %4314, %v6671_v20   ;;  %v2694_v49 = vmax.f32 %v2572_v14, 0.0  ;;  %v2702_v33 = vmax.f32 %v2592_v43, 0.0  ;;  %v2756_v3 = vadd.f32 %v2692_v5, %v6566_v46  ;;  %2972 = vperm.xlu1 %4313, %v6679_v57   ;;  %v2690_v46 = vmax.f32 %v6659_v25, 0.0 }
 0x56c   : > { %v2829_v4 = vmul.f32 0.70710677, %v2765_v7  ;;  %v2596_v61 = vadd.f32 %v2595_v50, %v2259_v35  ;;  %v2703_v26 = vmax.f32 %v2594_v17, 0.0  ;;  %v2909_v39 = vpack.c.bf16 %v2828_v15, %v2826_v6 }
 0x56d   : > { %v2597_v9 = vpop.f32.mrf.mxu1  ;;  %v2821_v7 = vmul.f32 0.70710677, %v2757_v2  ;;  %v2908_v27 = vpack.c.bf16 %v2825_v11, %v2823_v28  ;;  %v7676_v17 = vmax.f32 %v6561_v29, 0.0  ;;  %v2822_v1 = vmul.f32 0.70710677, %v2694_v49 }
 0x56e   : > { %v2598_v44 = vadd.f32 %v2597_v9, %v2259_v35  ;;  %v2910_v13 = vpack.c.bf16 %v2829_v4, %v2827_v21  ;;  %v2704_v8 = vmax.f32 %v2596_v61, 0.0  ;;  %v6692_v14 = vmul.f32 0.70710677, %v2702_v33 }
 0x56f   : > { %v2601_v20 = vpop.f32.mrf.mxu1  ;;  %2984 = vperm.xlu0 %4314, %v6685_v51   ;;  %v2749_v18 = vadd.f32 %v7676_v17, %v6558_v0  ;;  %v2819_v5 = vmul.f32 0.70710677, %v2691_v45  ;;  %v6696_v58 = vmul.f32 0.70710677, %v2703_v26  ;;  %v2817_v50 = vmul.f32 0.70710677, %v2689_v36 }
 0x570   : > { %v2705_v35 = vmax.f32 %v2598_v44, 0.0  ;;  %3215 = vmatprep.subr.bf16.mxu0 %v2910_v13  ;;  %7677 = vst [vmem:[#allocation25_spill] sm:$0xff] %v6692_v14  ;;  %v6694_v40 = vmul.f32 0.70710677, %v2704_v8  ;;  %v2602_v25 = vadd.f32 %v2601_v20, %v6618_v23  ;;  %v2820_v2 = vmul.f32 0.70710677, %v2756_v3 }
 0x571   : > { %v2603_v43 = vpop.f32.mrf.mxu1  ;;  %3216 = vmatpush1.bf16.msra.mxu0 %v2909_v39  ;;  %7679 = vst [vmem:[#allocation65_spill] sm:$0xff] %v6696_v58  ;;  %v2907_v11 = vpack.c.bf16 %v2824_v30, %v2822_v1  ;;  %v6706_v8 = vld [vmem:[%s7267_s2 + $0x68] sm:$0xff]  ;;  %v6712_v39 = vld [vmem:[%s7267_s2 + $0x80] sm:$0xff]  ;;  %v2906_v20 = vpack.c.bf16 %v2821_v7, %v2819_v5  ;;  %v2542_v21 = vadd.f32 %v6464_v48, %v6423_v54  ;;  %v2683_v4 = vmax.f32 %v6600_v24, 0.0  ;;  %v7712_v14 = vld [vmem:[#allocation32_spill] sm:$0xff] }
 0x572   : > { %7678 = vst [vmem:[#allocation60_spill] sm:$0xff] %v6694_v40  ;;  %v6698_v15 = vmul.f32 0.70710677, %v2705_v35  ;;  %3217 = vmatprep.subr.bf16.mxu0 %v2908_v27  ;;  %2980 = vperm.xlu1 %4313, %v6706_v8   ;;  %v2604_v45 = vadd.f32 %v2603_v43, %v6618_v23  ;;  %v2686_v49 = vmax.f32 %v6624_v59, 0.0  ;;  %v2818_v6 = vmul.f32 0.70710677, %v2690_v46 }
 0x573   : > { %v2605_v29 = vpop.f32.mrf.mxu1  ;;  %2992 = vperm.xlu0 %4314, %v6712_v39   ;;  %v7681_v61 = vmax.f32 %v6571_v37, 0.0  ;;  %v2706_v28 = vmax.f32 %v2602_v25, 0.0  ;;  %v7682_v44 = vmax.f32 %v6537_v55, 0.0  ;;  %v2813_v54 = vmul.f32 0.70710677, %v2749_v18  ;;  %v6734_v37 = vld [vmem:[%s7267_s2 + $0x78] sm:$0xff] }
 0x574   : > { %7680 = vst [vmem:[#allocation34_spill] sm:$0xff] %v6698_v15  ;;  %v2606_v30 = vadd.f32 %v2605_v29, %v6568_v47  ;;  %v7683_v48 = vmax.f32 %v6587_v53, 0.0  ;;  %v2905_v59 = vpack.c.bf16 %v2820_v2, %v2818_v6  ;;  %v2679_v7 = vmax.f32 %v6584_v32, 0.0  ;;  %v6758_v29 = vld [vmem:[%s7267_s2 + $0x88] sm:$0xff] }
 0x575   : > { %v2607_v33 = vpop.f32.mrf.mxu1  ;;  %3218 = vmatpush1.bf16.msra.mxu0 %v2907_v11  ;;  %v2815_v9 = vmul.f32 0.70710677, %v7681_v61  ;;  %v2748_v13 = vadd.f32 %v7682_v44, %v6554_v12  ;;  %v2707_v12 = vmax.f32 %v2604_v45, 0.0  ;;  %v2682_v27 = vmax.f32 %v2542_v21, 0.0  ;;  %v6764_v45 = vld [vmem:[%s7267_s2 + $0xa0] sm:$0xff]  ;;  %v6789_v44 = vld [vmem:[%s7267_s2 + $0xb0] sm:$0xff] }
 0x576   : > { %v2708_v26 = vmax.f32 %v2606_v30, 0.0  ;;  %v2608_v23 = vadd.f32 %v2607_v33, %v6568_v47  ;;  %3219 = vmatprep.subr.bf16.mxu0 %v2906_v20  ;;  %v2816_v24 = vmul.f32 0.70710677, %v7683_v48  ;;  %2988 = vperm.xlu1 %4313, %v6734_v37   ;;  %v6740_v47 = vld [vmem:[%s7267_s2 + $0x90] sm:$0xff]  ;;  %v2814_v35 = vmul.f32 0.70710677, %v2686_v49 }
 0x577   : > { %v2611_v3 = vpop.f32.mrf.mxu1  ;;  %3000 = vperm.xlu0 %4314, %v6740_v47   ;;  %v2904_v55 = vpack.c.bf16 %v2817_v50, %v2815_v9  ;;  %v2811_v1 = vmul.f32 0.70710677, %v2683_v4  ;;  %v6748_v43 = vmul.f32 0.70710677, %v2706_v28  ;;  %v2812_v2 = vmul.f32 0.70710677, %v2748_v13 }
 0x578   : > { %v2772_v53 = vadd.f32 %v2708_v26, %v6592_v38  ;;  %v2709_v46 = vmax.f32 %v2608_v23, 0.0  ;;  %v2612_v17 = vadd.f32 %v2611_v3, %v6517_v52  ;;  %v7684_v38 = vmax.f32 %v6534_v60, 0.0  ;;  %v6783_v23 = vld [vmem:[%s7267_s2 + $0x98] sm:$0xff] }
 0x579   : > { %v6746_v18 = vpop.f32.mrf.mxu1  ;;  %3220 = vmatpush1.bf16.msra.mxu0 %v2905_v59  ;;  %v2903_v32 = vpack.c.bf16 %v2816_v24, %v2814_v35  ;;  %v2902_v20 = vpack.c.bf16 %v2813_v54, %v2811_v1  ;;  %v2810_v21 = vmul.f32 0.70710677, %v2682_v27  ;;  %v2807_v33 = vmul.f32 0.70710677, %v2679_v7  ;;  %7685 = vst [vmem:[#allocation35_spill] sm:$0xff] %v6783_v23  ;;  %v6827_v35 = vld [vmem:[%s7267_s2 + $0xb8] sm:$0xff] }
 0x57a   : > { %v6750_v5 = vmul.f32 0.70710677, %v2772_v53  ;;  %v2773_v25 = vadd.f32 %v2709_v46, %v6596_v42  ;;  %3221 = vmatprep.subr.bf16.mxu0 %v2904_v55  ;;  %v2809_v50 = vmul.f32 0.70710677, %v7684_v38  ;;  %2996 = vperm.xlu1 %4313, %v6758_v29   ;;  %v6767_v42 = vmul.f32 0.70710677, %v2707_v12 }
 0x57b   : > { %v2615_v11 = vpop.f32.mrf.mxu1  ;;  %3008 = vperm.xlu0 %4314, %v6764_v45   ;;  %v2710_v4 = vmax.f32 %v2612_v17, 0.0  ;;  %v2901_v9 = vpack.c.bf16 %v2812_v2, %v2810_v21  ;;  %v6805_v55 = vld [vmem:[%s7267_s2 + $0xa8] sm:$0xff]  ;;  %v6811_v12 = vld [vmem:[%s7267_s2 + $0xc0] sm:$0xff]  ;;  %v7686_v46 = vpack.c.bf16 %v6470_v31, %v6468_v41  ;;  %v7687_v7 = vpack.c.bf16 %v6457_v10, %v6453_v63  ;;  %7688 = vst [vmem:[#allocation24_spill] sm:$0xff] %v6827_v35  ;;  %v6833_v17 = vld [vmem:[%s7267_s2 + $0xd0] sm:$0xff] }
 0x57c   : > { %v6771_v30 = vmul.f32 0.70710677, %v2773_v25  ;;  %v2616_v49 = vadd.f32 %v2615_v11, %v6531_v56  ;;  %v2900_v13 = vpack.c.bf16 %v2809_v50, %v2807_v33  ;;  %7689 = vst [vmem:[#allocation62_spill] sm:$0xff] %v6833_v17  ;;  %v7690_v63 = vpack.c.bf16 %v6451_v34, %v6449_v22  ;;  %v6849_v1 = vld [vmem:[%s7267_s2 + $0xc8] sm:$0xff]  ;;  %v6855_v25 = vld [vmem:[%s7267_s2 + $0xe0] sm:$0xff]  ;;  %v6866_v38 = vld [vmem:[%s7267_s2 + $0xd8] sm:$0xff] }
 0x57d   : > { %v6774_v6 = vpop.f32.mrf.mxu1  ;;  %3222 = vmatpush1.bf16.msra.mxu0 %v2903_v32  ;;  %v6792_v54 = vmul.f32 0.70710677, %v2710_v4  ;;  %v7691_v10 = vpack.c.bf16 %v6437_v62, %v6433_v19  ;;  %7692 = vst [vmem:[#allocation59_spill] sm:$0xff] %v6855_v25  ;;  %v7693_v19 = vld [vmem:[#allocation28_spill] sm:$0xff]  ;;  %7695 = vst [vmem:[#allocation36_spill] sm:$0xff] %v6866_v38  ;;  %v6884_v21 = vld [vmem:[%s7267_s2 + $0xf8] sm:$0xff] }
 0x57e   : > { %3223 = vmatprep.subr.bf16.mxu0 %v2902_v20  ;;  %v2712_v28 = vmax.f32 %v2616_v49, 0.0  ;;  %3004 = vperm.xlu1 %4313, %v6783_v23   ;;  %v7694_v62 = vpack.c.bf16 %v6431_v16, %v7693_v19  ;;  %v6872_v50 = vld [vmem:[%s7267_s2 + $0xf0] sm:$0xff]  ;;  %v6878_v16 = vld [vmem:[%s7267_s2 + $0xe8] sm:$0xff]  ;;  %7698 = vst [vmem:[#allocation45_spill] sm:$0xff] %v6884_v21  ;;  %v4647_v49 = vmov 5   ;;  %v7703_v19 = vld [vmem:[#allocation49_spill] sm:$0xff] }
 0x57f   : > { %v6778_v26 = vpop.f32.mrf.mxu1  ;;  %3016 = vperm.xlu0 %4314, %v6789_v44   ;;  %7696 = vst [vmem:[#allocation56_spill] sm:$0xff] %v6872_v50  ;;  %7697 = vst [vmem:[#allocation61_spill] sm:$0xff] %v6878_v16  ;;  %v7699_v33 = vld [vmem:[#allocation67_spill] sm:$0xff]  ;;  %v7705_v60 = vld [vmem:[#allocation29_spill] sm:$0xff] }
 0x580   : > { %v6794_v48 = vmul.f32 0.70710677, %v2712_v28  ;;  %v7700_v28 = vld [vmem:[#allocation38_spill] sm:$0xff]  ;;  %v7706_v59 = vld [vmem:[#allocation21_spill] sm:$0xff]  ;;  %v7711_v23 = vld [vmem:[#allocation68_spill] sm:$0xff] }
 0x581   : > { %v6796_v24 = vpop.f32.mrf.mxu1  ;;  %3224 = vmatpush1.bf16.msra.mxu0 %v2901_v9 }
 0x582   : > { %3225 = vmatprep.subr.bf16.mxu0 %v2900_v13  ;;  %3012 = vperm.xlu1 %4313, %v6805_v55  }
 0x583   : > { %v6800_v3 = vpop.f32.mrf.mxu1  ;;  %3024 = vperm.xlu0 %4314, %v6811_v12  }
 0x585   : > { %v6814_v53 = vpop.f32.mrf.mxu1  ;;  %3226 = vmatpush1.bf16.msra.mxu0 %v7686_v46  ;;  %v7701_v46 = vld [vmem:[#allocation23_spill] sm:$0xff] }
 0x586   : > { %3227 = vmatprep.subr.bf16.mxu0 %v7687_v7  ;;  %3020 = vperm.xlu1 %4313, %v6827_v35  }
 0x587   : > { %v6822_v27 = vpop.f32.mrf.mxu1  ;;  %3032 = vperm.xlu0 %4314, %v6833_v17  }
 0x589   : > { %v6836_v41 = vpop.f32.mrf.mxu1  ;;  %3228 = vmatpush1.bf16.msra.mxu0 %v7690_v63  ;;  %v7702_v63 = vld [vmem:[#allocation22_spill] sm:$0xff] }
 0x58a   : > { %3229 = vmatprep.subr.bf16.mxu0 %v7691_v10  ;;  %3028 = vperm.xlu1 %4313, %v6849_v1  }
 0x58b   : > { %v6844_v31 = vpop.f32.mrf.mxu1  ;;  %3040 = vperm.xlu0 %4314, %v6855_v25   ;;  %v7714_v25 = vld [vmem:[#allocation66_spill] sm:$0xff] }
 0x58d   : > { %v2637_v22 = vpop.f32.mrf.mxu1  ;;  %3230 = vmatpush1.bf16.msra.mxu0 %v7694_v62  ;;  %v7704_v62 = vld [vmem:[#allocation50_spill] sm:$0xff] }
 0x58e   : > { %3036 = vperm.xlu1 %4313, %v6866_v38   ;;  %v7707_v38 = vld [vmem:[#allocation20_spill] sm:$0xff] }
 0x58f   : > { %v6861_v34 = vpop.f32.mrf.mxu1  ;;  %3048 = vperm.xlu0 %4314, %v6872_v50  }
 0x591   : > { %v2643_v2 = vpop.f32.mrf.mxu1 }
 0x592   : > { %3044 = vperm.xlu1 %4313, %v6878_v16  }
 0x593   : > { %v2645_v32 = vpop.f32.mrf.mxu1  ;;  %4315 = vset.pattern.permute.xlu0 %v4647_v49 }
 0x594   : > { %3473 = vperm.xlu0 %4315, %v7699_v33  }
 0x595   : > { %v2647_v11 = vpop.f32.mrf.mxu1 }
 0x596   : > { %3052 = vperm.xlu1 %4313, %v6884_v21   ;;  %v2648_v0 = vadd.f32 %v2647_v11, %v7704_v62  ;;  %v7708_v21 = vld [vmem:[#allocation64_spill] sm:$0xff] }
 0x597   : > { %v2651_v20 = vpop.f32.mrf.mxu1 }
 0x598   : > { %3485 = vperm.xlu0 %4315, %v7701_v46   ;;  %v7709_v46 = vld [vmem:[#allocation10_spill] sm:$0xff] }
 0x599   : > { %v2653_v4 = vpop.f32.mrf.mxu1  ;;  %v7710_v35 = vrot.slane %v7709_v46, 3 }
 0x59a   : > { %4316 = vset.pattern.permute.xlu1 %v4647_v49 }
 0x59b   : > { %v2655_v9 = vpop.f32.mrf.mxu1  ;;  %3477 = vperm.xlu1 %4316, %v7700_v28  }
 0x59c   : > { %3493 = vperm.xlu0 %4315, %v7703_v19   ;;  %v2654_v19 = vadd.f32 %v2653_v4, %v7711_v23  ;;  %v7715_v4 = vld [vmem:[#allocation12_spill] sm:$0xff] }
 0x59d   : > { %v2657_v13 = vpop.f32.mrf.mxu1 }
 0x59e   : > { %v2658_v61 = vadd.f32 %v2657_v13, %v7705_v60  ;;  %v2646_v13 = vadd.f32 %v2645_v32, %v7704_v62  ;;  %v7719_v62 = vld [vmem:[#allocation30_spill] sm:$0xff] }
 0x59f   : > { %v2661_v7 = vpop.f32.mrf.mxu1  ;;  %3481 = vperm.xlu1 %4316, %v7702_v63   ;;  %v276_v63 = vsel %vm261_vm0, 0.0, %v7710_v35 }
 0x5a0   : > { %v2662_v28 = vadd.f32 %v2661_v7, %v7706_v59  ;;  %3501 = vperm.xlu0 %4315, %v7712_v14   ;;  %v2729_v7 = vmax.f32 %v2658_v61, 0.0  ;;  %v2644_v61 = vadd.f32 %v2643_v2, %v7719_v62  ;;  %v2642_v2 = vadd.f32 %v6861_v34, %v7719_v62 }
 0x5a1   : > { %v2663_v10 = vpop.f32.mrf.mxu1 }
 0x5a2   : > { %v2664_v33 = vadd.f32 %v2663_v10, %v7706_v59  ;;  %v2725_v10 = vmax.f32 %v2648_v0, 0.0  ;;  %v2652_v0 = vadd.f32 %v2651_v20, %v7711_v23  ;;  %v2730_v32 = vmax.f32 %v2662_v28, 0.0  ;;  %v7722_v23 = vld [vmem:[#allocation33_spill] sm:$0xff] }
 0x5a3   : > { %v2665_v36 = vpop.f32.mrf.mxu1  ;;  %3489 = vperm.xlu1 %4316, %v7708_v21   ;;  %v7713_v21 = vld [vmem:[#allocation11_spill] sm:$0xff]  ;;  %v2857_v58 = vmul.f32 0.70710677, %v2729_v7  ;;  %v2722_v62 = vmax.f32 %v2642_v2, 0.0 }
 0x5a4   : > { %v2666_v49 = vadd.f32 %v2665_v36, %v7707_v38  ;;  %v2656_v36 = vadd.f32 %v2655_v9, %v7705_v60  ;;  %v277_v59 = vsel %vm261_vm0, 0.0, %v7713_v21  ;;  %v2731_v46 = vmax.f32 %v2664_v33, 0.0  ;;  %v7718_v60 = vld [vmem:[#allocation47_spill] sm:$0xff] }
 0x5a5   : > { %v2667_v50 = vpop.f32.mrf.mxu1  ;;  %v2628_v9 = vadd.f32 %v6814_v53, %v7718_v60  ;;  %v2727_v33 = vmax.f32 %v2654_v19, 0.0  ;;  %v2724_v21 = vmax.f32 %v2646_v13, 0.0  ;;  %v2626_v53 = vadd.f32 %v6800_v3, %v7718_v60  ;;  %v7723_v19 = vld [vmem:[#allocation31_spill] sm:$0xff] }
 0x5a6   : > { %v2732_v17 = vmax.f32 %v2666_v49, 0.0  ;;  %v2668_v11 = vadd.f32 %v2667_v50, %v7707_v38  ;;  %v7716_v49 = vrot.slane %v7715_v4, 3  ;;  %v7717_v50 = vld [vmem:[#allocation14_spill] sm:$0xff]  ;;  %v2728_v4 = vmax.f32 %v2656_v36, 0.0 }
 0x5a7   : > { %3497 = vperm.xlu1 %4316, %v7714_v25   ;;  %v275_v14 = vsel %vm261_vm0, 0.0, %v7717_v50  ;;  %v7721_v25 = vld [vmem:[#allocation39_spill] sm:$0xff]  ;;  %v2859_v50 = vmul.f32 0.70710677, %v2731_v46  ;;  %v2726_v20 = vmax.f32 %v2652_v0, 0.0  ;;  %v2723_v13 = vmax.f32 %v2644_v61, 0.0 }
 0x5a8   : > { %v2796_v40 = vadd.f32 %v2732_v17, %v276_v63  ;;  %v2733_v35 = vmax.f32 %v2668_v11, 0.0  ;;  %v274_v38 = vsel %vm261_vm0, 0.0, %v7716_v49  ;;  %v7720_v63 = vld [vmem:[#allocation46_spill] sm:$0xff]  ;;  %v2638_v11 = vadd.f32 %v2637_v22, %v7721_v25  ;;  %v7725_v0 = vld [vmem:[#allocation40_spill] sm:$0xff] }
 0x5a9   : > { %3509 = vperm.xlu0 %4315, %v7720_v63   ;;  %v2789_v16 = vadd.f32 %v2725_v10, %v275_v14  ;;  %v2858_v28 = vmul.f32 0.70710677, %v2730_v32  ;;  %v2634_v22 = vadd.f32 %v6836_v41, %v7723_v19  ;;  %v2855_v36 = vmul.f32 0.70710677, %v2727_v33  ;;  %v7724_v10 = vld [vmem:[#allocation63_spill] sm:$0xff]  ;;  %v7726_v32 = vld [vmem:[#allocation16_spill] sm:$0xff] }
 0x5aa   : > { %v2797_v17 = vadd.f32 %v2733_v35, %v277_v59  ;;  %v2860_v49 = vmul.f32 0.70710677, %v2796_v40  ;;  %v2636_v59 = vadd.f32 %v6844_v31, %v7721_v25  ;;  %v2788_v7 = vadd.f32 %v2724_v21, %v274_v38  ;;  %v7727_v31 = vld [vmem:[#allocation53_spill] sm:$0xff] }
 0x5ab   : > { %3505 = vperm.xlu1 %4316, %v7722_v23   ;;  %v2856_v46 = vmul.f32 0.70710677, %v2728_v4  ;;  %v2717_v3 = vmax.f32 %v2628_v9, 0.0  ;;  %v2721_v14 = vmax.f32 %v2638_v11, 0.0  ;;  %v2853_v60 = vmul.f32 0.70710677, %v2789_v16 }
 0x5ac   : > { %v2861_v15 = vmul.f32 0.70710677, %v2797_v17  ;;  %v2925_v35 = vpack.c.bf16 %v2860_v49, %v2858_v28  ;;  %v2924_v34 = vpack.c.bf16 %v2857_v58, %v2855_v36  ;;  %v273_v41 = vsel %vm261_vm0, 0.0, %v7726_v32  ;;  %v7728_v33 = vld [vmem:[#allocation13_spill] sm:$0xff]  ;;  %v7746_v32 = vld [vmem:[#allocation36_spill] sm:$0xff] }
 0x5ad   : > { %3521 = vperm.xlu0 %4315, %v7724_v10   ;;  %v2854_v61 = vmul.f32 0.70710677, %v2726_v20  ;;  %v2624_v38 = vadd.f32 %v6796_v24, %v7727_v31  ;;  %v7729_v9 = vrot.slane %v7728_v33, 3  ;;  %v2719_v58 = vmax.f32 %v2634_v22, 0.0  ;;  %v4534_v33 = vld [vmem:[%s7266_s1 + $0x450] ss:$8 sps:$4 sm:$0xff]  }
 0x5ae   : > { %v2926_v40 = vpack.c.bf16 %v2861_v15, %v2859_v50  ;;  %v2632_v15 = vadd.f32 %v6822_v27, %v7723_v19  ;;  %v2851_v17 = vmul.f32 0.70710677, %v2723_v13  ;;  %v2716_v63 = vmax.f32 %v2626_v53, 0.0 }
 0x5af   : > { %3513 = vperm.xlu1 %4316, %v7725_v0   ;;  %v272_v16 = vsel %vm261_vm0, 0.0, %v7729_v9  ;;  %v2720_v25 = vmax.f32 %v2636_v59, 0.0  ;;  %v2852_v11 = vmul.f32 0.70710677, %v2788_v7  ;;  %v2923_v21 = vpack.c.bf16 %v2856_v46, %v2854_v61  ;;  %v7745_v0 = vld [vmem:[#allocation45_spill] sm:$0xff] }
 0x5b0   : > { %3231 = vmatprep.subr.bf16.mxu0 %v2926_v40  ;;  %v2618_v27 = vadd.f32 %v6774_v6, %v6531_v56  ;;  %v2781_v4 = vadd.f32 %v2717_v3, %v273_v41  ;;  %v2849_v49 = vmul.f32 0.70710677, %v2721_v14  ;;  %v2922_v50 = vpack.c.bf16 %v2853_v60, %v2851_v17  ;;  %v7743_v3 = vld [vmem:[#allocation56_spill] sm:$0xff]  ;;  %v4527_v41 = vld [vmem:[%s7266_s1 + $0x420] ss:$8 sps:$4 sm:$0xff]  }
 0x5b1   : > { %3232 = vmatpush2.bf16.msra.mxu0 %v2925_v35  ;;  %3537 = vperm.xlu0 %4315, %v6712_v39   ;;  %v2622_v24 = vadd.f32 %v6778_v26, %v7727_v31  ;;  %v2718_v23 = vmax.f32 %v2632_v15, 0.0  ;;  %v2850_v2 = vmul.f32 0.70710677, %v2722_v62  ;;  %v2614_v39 = vadd.f32 %v6746_v18, %v6517_v52  ;;  %v4524_v14 = vld [vmem:[%s7266_s1 + $0x410] ss:$8 sps:$4 sm:$0xff]  }
 0x5b2   : > { %3233 = vmatprep.subr.bf16.mxu0 %v2924_v34  ;;  %v2715_v53 = vmax.f32 %v2624_v38, 0.0  ;;  %v2847_v20 = vmul.f32 0.70710677, %v2719_v58  ;;  %v2780_v56 = vadd.f32 %v2716_v63, %v272_v16  ;;  %v2848_v6 = vmul.f32 0.70710677, %v2720_v25  ;;  %v7744_v60 = vld [vmem:[#allocation24_spill] sm:$0xff] }
 0x5b3   : > { %3525 = vperm.xlu1 %4316, %v6706_v8   ;;  %v2921_v28 = vpack.c.bf16 %v2852_v11, %v2850_v2  ;;  %v2713_v19 = vmax.f32 %v2618_v27, 0.0  ;;  %v2845_v22 = vmul.f32 0.70710677, %v2781_v4  ;;  %v2714_v26 = vmax.f32 %v2622_v24, 0.0  ;;  %v4525_v34 = vld [vmem:[%s7266_s1 + $0x424] ss:$8 sps:$4 sm:$0xff]  }
 0x5b4   : > { %v2920_v8 = vpack.c.bf16 %v2849_v49, %v2847_v20  ;;  %v2846_v13 = vmul.f32 0.70710677, %v2718_v23  ;;  %v2711_v36 = vmax.f32 %v2614_v39, 0.0  ;;  %v2843_v40 = vmul.f32 0.70710677, %v2715_v53  ;;  %v7747_v39 = vld [vmem:[#allocation67_spill] sm:$0xff] }
 0x5b5   : > { %3234 = vmatpush2.bf16.msra.mxu0 %v2923_v21  ;;  %3529 = vperm.xlu0 %4315, %v6685_v51   ;;  %v2844_v52 = vmul.f32 0.70710677, %v2780_v56  ;;  %v2841_v10 = vmul.f32 0.70710677, %v2713_v19  ;;  %v2842_v59 = vmul.f32 0.70710677, %v2714_v26 }
 0x5b6   : > { %3235 = vmatprep.subr.bf16.mxu0 %v2922_v50  ;;  %v2919_v18 = vpack.c.bf16 %v2848_v6, %v2846_v13  ;;  %v2918_v51 = vpack.c.bf16 %v2845_v22, %v2843_v40  ;;  %v2839_v7 = vmul.f32 0.70710677, %v2711_v36  ;;  %v4528_v15 = vld [vmem:[%s7266_s1 + $0x434] ss:$8 sps:$4 sm:$0xff]   ;;  %v4530_v62 = vld [vmem:[%s7266_s1 + $0x430] ss:$8 sps:$4 sm:$0xff]   ;;  %v2929_v23 = vpop.permute.xlu1 %2928 }
 0x5b7   : > { %3541 = vperm.xlu1 %4316, %v6758_v29   ;;  %v2917_v29 = vpack.c.bf16 %v2844_v52, %v2842_v59  ;;  %v4533_v61 = vld [vmem:[%s7266_s1 + $0x444] ss:$8 sps:$4 sm:$0xff]   ;;  %v4531_v31 = vld [vmem:[%s7266_s1 + $0x440] ss:$8 sps:$4 sm:$0xff]   ;;  %v4536_v38 = vld [vmem:[%s7266_s1 + $0x454] ss:$8 sps:$4 sm:$0xff]  }
 0x5b8   : > { %v2916_v46 = vpack.c.bf16 %v2841_v10, %v2839_v7  ;;  %v4539_v9 = vld [vmem:[%s7266_s1 + $0x464] ss:$8 sps:$4 sm:$0xff]   ;;  %v4537_v16 = vld [vmem:[%s7266_s1 + $0x460] ss:$8 sps:$4 sm:$0xff]   ;;  %v4542_v58 = vld [vmem:[%s7266_s1 + $0x474] ss:$8 sps:$4 sm:$0xff]  }
 0x5b9   : > { %3236 = vmatpush2.bf16.msra.mxu0 %v2921_v28  ;;  %3557 = vperm.xlu0 %4315, %v6805_v55   ;;  %v7730_v55 = vpack.c.bf16 %v6794_v48, %v6792_v54  ;;  %v4519_v54 = vld [vmem:[%s7266_s1 + $0x400] ss:$8 sps:$4 sm:$0xff]   ;;  %v4540_v17 = vld [vmem:[%s7266_s1 + $0x470] ss:$8 sps:$4 sm:$0xff]   ;;  %v4545_v63 = vld [vmem:[%s7266_s1 + $0x484] ss:$8 sps:$4 sm:$0xff]  }
 0x5ba   : > { %3237 = vmatprep.subr.bf16.mxu0 %v2920_v8  ;;  %v4543_v25 = vld [vmem:[%s7266_s1 + $0x480] ss:$8 sps:$4 sm:$0xff]   ;;  %v4548_v11 = vld [vmem:[%s7266_s1 + $0x494] ss:$8 sps:$4 sm:$0xff]   ;;  %v4546_v21 = vld [vmem:[%s7266_s1 + $0x490] ss:$8 sps:$4 sm:$0xff]   ;;  %v7057_v20 = vpop.permute.xlu1 %2936  ;;  %v2933_v8 = vpop.permute.xlu0 %2932 }
 0x5bb   : > { %3553 = vperm.xlu1 %4316, %v6764_v45   ;;  %v7731_v45 = vpack.c.bf16 %v6771_v30, %v6767_v42  ;;  %v7737_v42 = vld [vmem:[#allocation59_spill] sm:$0xff]  ;;  %v7738_v30 = vld [vmem:[#allocation60_spill] sm:$0xff]  ;;  %v4648_v2 = vmov 6  }
 0x5bc   : > { %v4551_v27 = vld [vmem:[%s7266_s1 + $0x4a4] ss:$8 sps:$4 sm:$0xff]   ;;  %v4549_v4 = vld [vmem:[%s7266_s1 + $0x4a0] ss:$8 sps:$4 sm:$0xff]   ;;  %v4554_v49 = vld [vmem:[%s7266_s1 + $0x4b4] ss:$8 sps:$4 sm:$0xff]  }
 0x5bd   : > { %3238 = vmatpush2.bf16.msra.mxu0 %v2919_v18  ;;  %3545 = vperm.xlu0 %4315, %v6740_v47   ;;  %v7733_v47 = vld [vmem:[#allocation34_spill] sm:$0xff]  ;;  %v4552_v50 = vld [vmem:[%s7266_s1 + $0x4b0] ss:$8 sps:$4 sm:$0xff]   ;;  %v4560_v56 = vld [vmem:[%s7266_s1 + $0x4d4] ss:$8 sps:$4 sm:$0xff]  }
 0x5be   : > { %3239 = vmatprep.subr.bf16.mxu0 %v2918_v51  ;;  %v4557_v24 = vld [vmem:[%s7266_s1 + $0x4c4] ss:$8 sps:$4 sm:$0xff]   ;;  %v4555_v53 = vld [vmem:[%s7266_s1 + $0x4c0] ss:$8 sps:$4 sm:$0xff]   ;;  %v7062_v6 = vpop.permute.xlu1 %2940  ;;  %v4558_v28 = vld [vmem:[%s7266_s1 + $0x4d0] ss:$8 sps:$4 sm:$0xff]   ;;  %v7080_v40 = vpop.permute.xlu0 %2944 }
 0x5bf   : > { %3517 = vperm.xlu1 %4316, %v6679_v57   ;;  %v7732_v57 = vpack.c.bf16 %v6750_v5, %v6748_v43  ;;  %v7741_v43 = vld [vmem:[#allocation62_spill] sm:$0xff]  ;;  %v7742_v5 = vld [vmem:[#allocation35_spill] sm:$0xff]  ;;  %v4566_v13 = vld [vmem:[%s7266_s1 + $0x4f4] ss:$8 sps:$4 sm:$0xff]  }
 0x5c0   : > { %v4563_v19 = vld [vmem:[%s7266_s1 + $0x4e4] ss:$8 sps:$4 sm:$0xff]   ;;  %v4561_v26 = vld [vmem:[%s7266_s1 + $0x4e0] ss:$8 sps:$4 sm:$0xff]   ;;  %v4564_v52 = vld [vmem:[%s7266_s1 + $0x4f0] ss:$8 sps:$4 sm:$0xff]  }
 0x5c1   : > { %3240 = vmatpush2.bf16.msra.mxu0 %v2917_v29  ;;  %3573 = vperm.xlu0 %4315, %v6849_v1   ;;  %v7734_v1 = vld [vmem:[#allocation65_spill] sm:$0xff] }
 0x5c2   : > { %3241 = vmatprep.subr.bf16.mxu0 %v2916_v46  ;;  %v7735_v35 = vpack.c.bf16 %v7733_v47, %v7734_v1  ;;  %v7087_v10 = vpop.permute.xlu0 %2952 }
 0x5c3   : > { %3569 = vperm.xlu1 %4316, %v6811_v12   ;;  %v7736_v12 = vld [vmem:[#allocation61_spill] sm:$0xff] }
 0x5c5   : > { %3242 = vmatpush2.bf16.msra.mxu0 %v7730_v55  ;;  %3561 = vperm.xlu0 %4315, %v6789_v44   ;;  %v7739_v44 = vld [vmem:[#allocation25_spill] sm:$0xff] }
 0x5c6   : > { %3243 = vmatprep.subr.bf16.mxu0 %v7731_v45  ;;  %v7740_v48 = vpack.c.bf16 %v7738_v30, %v7739_v44 }
 0x5c7   : > { %3533 = vperm.xlu1 %4316, %v6734_v37   ;;  %v4522_v37 = vld [vmem:[%s7266_s1 + $0x414] ss:$8 sps:$4 sm:$0xff]   ;;  %v7070_v22 = vpop.permute.xlu1 %2948 }
 0x5c9   : > { %3244 = vmatpush2.bf16.msra.mxu0 %v7732_v57  ;;  %3589 = vperm.xlu0 %4315, %v7736_v12   ;;  %v7091_v59 = vpop.permute.xlu0 %2960 }
 0x5ca   : > { %3245 = vmatprep.subr.bf16.mxu0 %v7735_v35 }
 0x5cb   : > { %3585 = vperm.xlu1 %4316, %v7737_v42  }
 0x5cd   : > { %3246 = vmatpush2.bf16.msra.mxu0 %v7740_v48  ;;  %3577 = vperm.xlu0 %4315, %v7741_v43  }
 0x5cf   : > { %3549 = vperm.xlu1 %4316, %v7742_v5  }
 0x5d0   : > { %3248 = vmatmul.mubr.bf16.vlgmr.msra.gmra.mxu0 %v4519_v54 }
 0x5d1   : > { %3257 = vmatprep.mubr.bf16.mxu0 %v4522_v37  ;;  %3593 = vperm.xlu0 %4315, %v7743_v3  }
 0x5d3   : > { %3565 = vperm.xlu1 %4316, %v7744_v60  }
 0x5d5   : > { %3597 = vperm.xlu0 %4315, %v7745_v0  }
 0x5d7   : > { %3581 = vperm.xlu1 %4316, %v7746_v32  }
 0x5d8   : > { %3258 = vmatmul.mubr.bf16.gmra.mxu0 %v4524_v14 }
 0x5d9   : > { %3267 = vmatprep.mubr.bf16.mxu0 %v4525_v34  ;;  %4318 = vset.pattern.permute.xlu0 %v4648_v2 }
 0x5db   : > { %4317 = vset.pattern.permute.xlu1 %v4648_v2 }
 0x5dc   : > { %3829 = vperm.xlu1 %4317, %v7747_v39   ;;  %v7078_v36 = vpop.permute.xlu1 %2956 }
 0x5e0   : > { %3268 = vmatmul.mubr.bf16.gmra.mxu0 %v4527_v41  ;;  %v7085_v18 = vpop.permute.xlu1 %2964 }
 0x5e1   : > { %3277 = vmatprep.mubr.bf16.mxu0 %v4528_v15 }
 0x5e2   : > { %v7095_v29 = vpop.permute.xlu0 %2968 }
 0x5e6   : > { %v7089_v51 = vpop.permute.xlu1 %2972  ;;  %v7099_v55 = vpop.permute.xlu0 %2976 }
 0x5e8   : > { %3278 = vmatmul.mubr.bf16.gmra.mxu0 %v4530_v62 }
 0x5e9   : > { %3287 = vmatprep.mubr.bf16.mxu0 %v4533_v61 }
 0x5ea   : > { %v7103_v57 = vpop.permute.xlu0 %2984 }
 0x5ed   : > { %v7093_v7 = vpop.permute.xlu1 %2980 }
 0x5ee   : > { %v7107_v1 = vpop.permute.xlu0 %2992 }
 0x5f0   : > { %3288 = vmatmul.mubr.bf16.gmra.mxu0 %v4531_v31 }
 0x5f1   : > { %3297 = vmatprep.mubr.bf16.mxu0 %v4536_v38  ;;  %v7097_v46 = vpop.permute.xlu1 %2988 }
 0x5f2   : > { %v7111_v12 = vpop.permute.xlu0 %3000 }
 0x5f5   : > { %v7101_v45 = vpop.permute.xlu1 %2996 }
 0x5f6   : > { %v7115_v42 = vpop.permute.xlu0 %3008 }
 0x5f8   : > { %3298 = vmatmul.mubr.bf16.gmra.mxu0 %v4534_v33 }
 0x5f9   : > { %3307 = vmatprep.mubr.bf16.mxu0 %v4539_v9  ;;  %v7105_v47 = vpop.permute.xlu1 %3004 }
 0x5fa   : > { %v7119_v44 = vpop.permute.xlu0 %3016 }
 0x5fd   : > { %v7109_v35 = vpop.permute.xlu1 %3012 }
 0x5fe   : > { %v7123_v37 = vpop.permute.xlu0 %3024 }
 0x600   : > { %3308 = vmatmul.mubr.bf16.gmra.mxu0 %v4537_v16 }
 0x601   : > { %3317 = vmatprep.mubr.bf16.mxu0 %v4542_v58  ;;  %v7113_v54 = vpop.permute.xlu1 %3020 }
 0x602   : > { %v7127_v5 = vpop.permute.xlu0 %3032 }
 0x605   : > { %v7117_v30 = vpop.permute.xlu1 %3028 }
 0x606   : > { %v7131_v14 = vpop.permute.xlu0 %3040 }
 0x608   : > { %3318 = vmatmul.mubr.bf16.gmra.mxu0 %v4540_v17 }
 0x609   : > { %3327 = vmatprep.mubr.bf16.mxu0 %v4545_v63  ;;  %v7121_v48 = vpop.permute.xlu1 %3036 }
 0x60a   : > { %v7133_v34 = vpop.permute.xlu0 %3048 }
 0x60d   : > { %v7125_v43 = vpop.permute.xlu1 %3044 }
 0x60f   : > { %v3474_v33 = vpop.permute.xlu0 %3473 }
 0x610   : > { %3328 = vmatmul.mubr.bf16.gmra.mxu0 %v4543_v25 }
 0x611   : > { %3337 = vmatprep.mubr.bf16.mxu0 %v4548_v11  ;;  %v7129_v3 = vpop.permute.xlu1 %3052 }
 0x616   : > { %v3478_v60 = vpop.permute.xlu1 %3477 }
 0x618   : > { %3338 = vmatmul.mubr.bf16.gmra.mxu0 %v4546_v21 }
 0x619   : > { %3347 = vmatprep.mubr.bf16.mxu0 %v4551_v27 }
 0x61a   : > { %v3482_v32 = vpop.permute.xlu1 %3481 }
 0x61e   : > { %v3490_v58 = vpop.permute.xlu1 %3489 }
 0x620   : > { %3348 = vmatmul.mubr.bf16.gmra.mxu0 %v4549_v4 }
 0x621   : > { %3357 = vmatprep.mubr.bf16.mxu0 %v4554_v49 }
 0x628   : > { %3358 = vmatmul.mubr.bf16.gmra.mxu0 %v4552_v50 }
 0x629   : > { %3367 = vmatprep.mubr.bf16.mxu0 %v4557_v24 }
 0x630   : > { %3368 = vmatmul.mubr.bf16.gmra.mxu0 %v4555_v53 }
 0x631   : > { %3377 = vmatprep.mubr.bf16.mxu0 %v4560_v56  ;;  %v3498_v56 = vpop.permute.xlu1 %3497 }
 0x638   : > { %3378 = vmatmul.mubr.bf16.gmra.mxu0 %v4558_v28 }
 0x639   : > { %3387 = vmatprep.mubr.bf16.mxu0 %v4563_v19 }
 0x640   : > { %3388 = vmatmul.mubr.bf16.gmra.mxu0 %v4561_v26 }
 0x641   : > { %3397 = vmatprep.mubr.bf16.mxu0 %v4566_v13 }
 0x648   : > { %3398 = vmatmul.mubr.bf16.gmra.mxu0 %v4564_v52 }
 0x690   : > { %v3249_v0 = vpop.f32.mrf.mxu0 }
 0x691   : > { %v3250_v41 = vadd.f32 %v3249_v0, %v2929_v23 }
 0x692   : > { %v3251_v15 = vpop.f32.mrf.mxu0 }
 0x693   : > { %v3252_v62 = vadd.f32 %v3251_v15, %v2929_v23  ;;  %v3408_v31 = vmax.f32 %v3250_v41, 0.0 }
 0x694   : > { %v3253_v61 = vpop.f32.mrf.mxu0 }
 0x695   : > { %v3254_v38 = vadd.f32 %v3253_v61, %v2933_v8  ;;  %v3409_v9 = vmax.f32 %v3252_v62, 0.0  ;;  %v3600_v4 = vmul.f32 %v3474_v33, %v3408_v31  ;;  %v3486_v61 = vpop.permute.xlu0 %3485 }
 0x696   : > { %v3255_v16 = vpop.f32.mrf.mxu0 }
 0x697   : > { %v3410_v17 = vmax.f32 %v3254_v38, 0.0  ;;  %v3256_v63 = vadd.f32 %v3255_v16, %v2933_v8  ;;  %v3601_v50 = vmul.f32 %v3474_v33, %v3409_v9  ;;  %v7140_v9 = vpop.permute.xlu1 %3505 }
 0x698   : > { %v3259_v25 = vpop.f32.mrf.mxu0 }
 0x699   : > { %v3411_v11 = vmax.f32 %v3256_v63, 0.0  ;;  %v3260_v21 = vadd.f32 %v3259_v25, %v7057_v20  ;;  %v3602_v27 = vmul.f32 %v3478_v60, %v3410_v17 }
 0x69a   : > { %v3261_v49 = vpop.f32.mrf.mxu0 }
 0x69b   : > { %v3412_v24 = vmax.f32 %v3260_v21, 0.0  ;;  %v3262_v23 = vadd.f32 %v3261_v49, %v7057_v20  ;;  %v3603_v2 = vmul.f32 %v3478_v60, %v3411_v11  ;;  %v3664_v39 = vadd.f32 %v3602_v27, %v3600_v4 }
 0x69c   : > { %v3263_v53 = vpop.f32.mrf.mxu0 }
 0x69d   : > { %v3413_v28 = vmax.f32 %v3262_v23, 0.0  ;;  %v3264_v19 = vadd.f32 %v3263_v53, %v7062_v6  ;;  %v3604_v26 = vmul.f32 %v3482_v32, %v3412_v24  ;;  %v3673_v8 = vadd.f32 %v3603_v2, %v3601_v50  ;;  %v3494_v50 = vpop.permute.xlu0 %3493  ;;  %v7145_v23 = vpop.permute.xlu1 %3513 }
 0x69e   : > { %v3265_v13 = vpop.f32.mrf.mxu0 }
 0x69f   : > { %v3414_v52 = vmax.f32 %v3264_v19, 0.0  ;;  %v3266_v0 = vadd.f32 %v3265_v13, %v7062_v6  ;;  %v3605_v41 = vmul.f32 %v3482_v32, %v3413_v28  ;;  %v3665_v15 = vadd.f32 %v3664_v39, %v3604_v26 }
 0x6a0   : > { %v3269_v62 = vpop.f32.mrf.mxu0 }
 0x6a1   : > { %v3415_v31 = vmax.f32 %v3266_v0, 0.0  ;;  %v3606_v38 = vmul.f32 %v3486_v61, %v3414_v52  ;;  %v3674_v20 = vadd.f32 %v3673_v8, %v3605_v41  ;;  %v3270_v60 = vadd.f32 %v3269_v62, %v7080_v40 }
 0x6a2   : > { %v3271_v33 = vpop.f32.mrf.mxu0 }
 0x6a3   : > { %v3272_v16 = vadd.f32 %v3271_v33, %v7080_v40  ;;  %v3607_v17 = vmul.f32 %v3486_v61, %v3415_v31  ;;  %v3666_v63 = vadd.f32 %v3665_v15, %v3606_v38  ;;  %v3416_v6 = vmax.f32 %v3270_v60, 0.0 }
 0x6a4   : > { %v3273_v25 = vpop.f32.mrf.mxu0 }
 0x6a5   : > { %v3274_v11 = vadd.f32 %v3273_v25, %v7070_v22  ;;  %v3675_v21 = vadd.f32 %v3674_v20, %v3607_v17  ;;  %v3417_v27 = vmax.f32 %v3272_v16, 0.0  ;;  %v3608_v53 = vmul.f32 %v3490_v58, %v3416_v6  ;;  %v7150_v20 = vpop.permute.xlu1 %3525  ;;  %v3502_v6 = vpop.permute.xlu0 %3501 }
 0x6a6   : > { %v3275_v32 = vpop.f32.mrf.mxu0  ;;  %v3667_v52 = vrot.slane %v3666_v63, 4 }
 0x6a7   : > { %v3418_v4 = vmax.f32 %v3274_v11, 0.0  ;;  %v3276_v49 = vadd.f32 %v3275_v32, %v7070_v22  ;;  %v3609_v19 = vmul.f32 %v3490_v58, %v3417_v27  ;;  %v3676_v0 = vrot.slane %v3675_v21, 4 }
 0x6a8   : > { %v3279_v24 = vpop.f32.mrf.mxu0  ;;  %v3668_v16 = vadd.f32 %v3667_v52, %v3666_v63 }
 0x6a9   : > { %v3419_v2 = vmax.f32 %v3276_v49, 0.0  ;;  %v3280_v39 = vadd.f32 %v3279_v24, %v7087_v10  ;;  %v3610_v40 = vmul.f32 %v3494_v50, %v3418_v4  ;;  %v3677_v17 = vadd.f32 %v3676_v0, %v3675_v21 }
 0x6aa   : > { %v3281_v28 = vpop.f32.mrf.mxu0 }
 0x6ab   : > { %v3420_v26 = vmax.f32 %v3280_v39, 0.0  ;;  %v3282_v8 = vadd.f32 %v3281_v28, %v7087_v10  ;;  %v3611_v13 = vmul.f32 %v3494_v50, %v3419_v2  ;;  %v3682_v41 = vadd.f32 %v3610_v40, %v3608_v53  ;;  %v7155_v53 = vpop.permute.xlu1 %3541 }
 0x6ac   : > { %v3283_v15 = vpop.f32.mrf.mxu0  ;;  %v3669_v2 = vrot.slane %v3668_v16, 2  ;;  %v3678_v39 = vrot.slane %v3677_v17, 2 }
 0x6ad   : > { %v3612_v22 = vmul.f32 %v3498_v56, %v3420_v26  ;;  %v3421_v62 = vmax.f32 %v3282_v8, 0.0  ;;  %v3691_v61 = vadd.f32 %v3611_v13, %v3609_v19  ;;  %v3284_v31 = vadd.f32 %v3283_v15, %v7078_v36 }
 0x6ae   : > { %v3285_v38 = vpop.f32.mrf.mxu0  ;;  %v3670_v0 = vadd.f32 %v3669_v2, %v3668_v16 }
 0x6af   : > { %v3613_v60 = vmul.f32 %v3498_v56, %v3421_v62  ;;  %v3286_v33 = vadd.f32 %v3285_v38, %v7078_v36  ;;  %v3683_v58 = vadd.f32 %v3682_v41, %v3612_v22  ;;  %v3422_v10 = vmax.f32 %v3284_v31, 0.0  ;;  %v3510_v22 = vpop.permute.xlu0 %3509 }
 0x6b0   : > { %v3289_v25 = vpop.f32.mrf.mxu0  ;;  %v3679_v41 = vadd.f32 %v3678_v39, %v3677_v17 }
 0x6b1   : > { %v3423_v11 = vmax.f32 %v3286_v33, 0.0  ;;  %v3692_v32 = vadd.f32 %v3691_v61, %v3613_v60  ;;  %v3290_v27 = vadd.f32 %v3289_v25, %v7091_v59  ;;  %v3614_v4 = vmul.f32 %v3502_v6, %v3422_v10  ;;  %v7162_v25 = vpop.permute.xlu1 %3553 }
 0x6b2   : > { %v3291_v49 = vpop.f32.mrf.mxu0 }
 0x6b3   : > { %v3615_v50 = vmul.f32 %v3502_v6, %v3423_v11  ;;  %v3292_v24 = vadd.f32 %v3291_v49, %v7091_v59  ;;  %v3684_v56 = vadd.f32 %v3683_v58, %v3614_v4  ;;  %v3424_v40 = vmax.f32 %v3290_v27, 0.0 }
 0x6b4   : > { %v3293_v36 = vpop.f32.mrf.mxu0  ;;  %v3671_v6 = vrot.slane %v3670_v0, 1 }
 0x6b5   : > { %v3693_v63 = vadd.f32 %v3692_v32, %v3615_v50  ;;  %v3294_v21 = vadd.f32 %v3293_v36, %v7085_v18  ;;  %v3685_v28 = vrot.slane %v3684_v56, 4  ;;  %v3425_v19 = vmax.f32 %v3292_v24, 0.0 }
 0x6b6   : > { %v3295_v26 = vpop.f32.mrf.mxu0  ;;  %v3616_v15 = vmul.f32 %v7140_v9, %v3424_v40  ;;  %v3680_v32 = vrot.slane %v3679_v41, 1 }
 0x6b7   : > { %v3694_v8 = vrot.slane %v3693_v63, 4  ;;  %v3426_v13 = vmax.f32 %v3294_v21, 0.0  ;;  %v3296_v52 = vadd.f32 %v3295_v26, %v7085_v18  ;;  %v3686_v59 = vadd.f32 %v3685_v28, %v3684_v56 }
 0x6b8   : > { %v3299_v62 = vpop.f32.mrf.mxu0  ;;  %v3617_v58 = vmul.f32 %v7140_v9, %v3425_v19  ;;  %v3672_v19 = vadd.f32 %v3671_v6, %v3670_v0  ;;  %v3681_v26 = vadd.f32 %v3680_v32, %v3679_v41 }
 0x6b9   : > { %v3695_v61 = vadd.f32 %v3694_v8, %v3693_v63  ;;  %v3427_v31 = vmax.f32 %v3296_v52, 0.0  ;;  %v3618_v38 = vmul.f32 %v3510_v22, %v3426_v13  ;;  %v3300_v60 = vadd.f32 %v3299_v62, %v7095_v29  ;;  %v3518_v13 = vpop.permute.xlu1 %3517 }
 0x6ba   : > { %v3687_v33 = vrot.slane %v3686_v59, 2  ;;  %v3301_v10 = vpop.f32.mrf.mxu0 }
 0x6bb   : > { %v3696_v11 = vrot.slane %v3695_v61, 2  ;;  %v3619_v18 = vmul.f32 %v3510_v22, %v3427_v31  ;;  %v3700_v16 = vadd.f32 %v3618_v38, %v3616_v15  ;;  %v3428_v17 = vmax.f32 %v3300_v60, 0.0 }
 0x6bc   : > { %v3688_v27 = vadd.f32 %v3687_v33, %v3686_v59  ;;  %v3302_v4 = vadd.f32 %v3301_v10, %v7095_v29  ;;  %v3303_v49 = vpop.f32.mrf.mxu0 }
 0x6bd   : > { %v3697_v50 = vadd.f32 %v3696_v11, %v3695_v61  ;;  %v3709_v24 = vadd.f32 %v3619_v18, %v3617_v58  ;;  %v3620_v2 = vmul.f32 %v7145_v23, %v3428_v17  ;;  %v3304_v39 = vadd.f32 %v3303_v49, %v7089_v51  ;;  %v3522_v61 = vpop.permute.xlu0 %3521 }
 0x6be   : > { %v3689_v9 = vrot.slane %v3688_v27, 1  ;;  %v3429_v56 = vmax.f32 %v3302_v4, 0.0  ;;  %v3305_v40 = vpop.f32.mrf.mxu0 }
 0x6bf   : > { %v3698_v36 = vrot.slane %v3697_v50, 1  ;;  %v3701_v63 = vadd.f32 %v3700_v16, %v3620_v2  ;;  %v3430_v21 = vmax.f32 %v3304_v39, 0.0  ;;  %v3306_v28 = vadd.f32 %v3305_v40, %v7089_v51 }
 0x6c0   : > { %v3690_v8 = vadd.f32 %v3689_v9, %v3688_v27  ;;  %v3621_v29 = vmul.f32 %v7145_v23, %v3429_v56  ;;  %v3309_v52 = vpop.f32.mrf.mxu0 }
 0x6c1   : > { %v3699_v59 = vadd.f32 %v3698_v36, %v3697_v50  ;;  %v3431_v15 = vmax.f32 %v3306_v28, 0.0  ;;  %v3622_v22 = vmul.f32 %v3518_v13, %v3430_v21  ;;  %v3310_v62 = vadd.f32 %v3309_v52, %v7099_v55  ;;  %v7175_v49 = vpop.permute.xlu0 %3537 }
 0x6c2   : > { %v3809_v31 = vsel %vm3808_vm4, %v3672_v19, %v3690_v8  ;;  %v3710_v38 = vadd.f32 %v3709_v24, %v3621_v29  ;;  %v3311_v60 = vpop.f32.mrf.mxu0 }
 0x6c3   : > { %v3810_v33 = vsel %vm3808_vm4, %v3681_v26, %v3699_v59  ;;  %v3623_v51 = vmul.f32 %v3518_v13, %v3431_v15  ;;  %v3702_v0 = vadd.f32 %v3701_v63, %v3622_v22  ;;  %v3432_v41 = vmax.f32 %v3310_v62, 0.0  ;;  %v7179_v63 = vpop.permute.xlu1 %3569 }
 0x6c4   : > { %v3312_v58 = vadd.f32 %v3311_v60, %v7099_v55  ;;  %v3313_v23 = vpop.f32.mrf.mxu0 }
 0x6c5   : > { %v3703_v10 = vrot.slane %v3702_v0, 4  ;;  %v3711_v11 = vadd.f32 %v3710_v38, %v3623_v51  ;;  %v3314_v18 = vadd.f32 %v3313_v23, %v7093_v7  ;;  %v3624_v50 = vmul.f32 %v3522_v61, %v3432_v41  ;;  %v3530_v15 = vpop.permute.xlu0 %3529 }
 0x6c6   : > { %v3433_v16 = vmax.f32 %v3312_v58, 0.0  ;;  %v3315_v17 = vpop.f32.mrf.mxu0 }
 0x6c7   : > { %v3704_v6 = vadd.f32 %v3703_v10, %v3702_v0  ;;  %v3712_v32 = vrot.slane %v3711_v11, 4  ;;  %v3434_v27 = vmax.f32 %v3314_v18, 0.0  ;;  %v3316_v4 = vadd.f32 %v3315_v17, %v7093_v7  ;;  %v3534_v58 = vpop.permute.xlu1 %3533 }
 0x6c8   : > { %v3319_v24 = vpop.f32.mrf.mxu0  ;;  %v3625_v56 = vmul.f32 %v3522_v61, %v3433_v16 }
 0x6c9   : > { %v3705_v2 = vrot.slane %v3704_v6, 2  ;;  %v3713_v39 = vadd.f32 %v3712_v32, %v3711_v11  ;;  %v3626_v55 = vmul.f32 %v7150_v20, %v3434_v27  ;;  %v3435_v9 = vmax.f32 %v3316_v4, 0.0 }
 0x6ca   : > { %v3320_v40 = vadd.f32 %v3319_v24, %v7103_v57  ;;  %v3321_v36 = vpop.f32.mrf.mxu0 }
 0x6cb   : > { %v3706_v21 = vadd.f32 %v3705_v2, %v3704_v6  ;;  %v3714_v28 = vrot.slane %v3713_v39, 2  ;;  %v3718_v19 = vadd.f32 %v3626_v55, %v3624_v50  ;;  %v3627_v7 = vmul.f32 %v7150_v20, %v3435_v9 }
 0x6cc   : > { %v3436_v26 = vmax.f32 %v3320_v40, 0.0  ;;  %v3322_v8 = vadd.f32 %v3321_v36, %v7103_v57  ;;  %v3323_v29 = vpop.f32.mrf.mxu0 }
 0x6cd   : > { %v3707_v13 = vrot.slane %v3706_v21, 1  ;;  %v3715_v52 = vadd.f32 %v3714_v28, %v3713_v39  ;;  %v3727_v59 = vadd.f32 %v3627_v7, %v3625_v56  ;;  %v3324_v22 = vadd.f32 %v3323_v29, %v7097_v46 }
 0x6ce   : > { %v3437_v62 = vmax.f32 %v3322_v8, 0.0  ;;  %v3628_v61 = vmul.f32 %v3530_v15, %v3436_v26  ;;  %v3325_v38 = vpop.f32.mrf.mxu0 }
 0x6cf   : > { %v3708_v60 = vadd.f32 %v3707_v13, %v3706_v21  ;;  %v3716_v51 = vrot.slane %v3715_v52, 1  ;;  %v3438_v0 = vmax.f32 %v3324_v22, 0.0  ;;  %v3326_v41 = vadd.f32 %v3325_v38, %v7097_v46 }
 0x6d0   : > { %v3629_v20 = vmul.f32 %v3530_v15, %v3437_v62  ;;  %v3329_v23 = vpop.f32.mrf.mxu0  ;;  %v3719_v10 = vadd.f32 %v3718_v19, %v3628_v61  ;;  %v7187_v19 = vpop.permute.xlu0 %3557 }
 0x6d1   : > { %v3717_v57 = vadd.f32 %v3716_v51, %v3715_v52  ;;  %v3439_v11 = vmax.f32 %v3326_v41, 0.0  ;;  %v3630_v18 = vmul.f32 %v3534_v58, %v3438_v0  ;;  %v3812_v17 = vsel %vm3811_vm5, %v3809_v31, %v3708_v60 }
 0x6d2   : > { %v3331_v16 = vpop.f32.mrf.mxu0  ;;  %v3728_v6 = vadd.f32 %v3727_v59, %v3629_v20 }
 0x6d3   : > { %v3631_v32 = vmul.f32 %v3534_v58, %v3439_v11  ;;  %v3720_v27 = vadd.f32 %v3719_v10, %v3630_v18  ;;  %v3813_v50 = vsel %vm3811_vm5, %v3810_v33, %v3717_v57  ;;  %v3330_v33 = vadd.f32 %v3329_v23, %v7107_v1  ;;  %v7199_v58 = vpop.permute.xlu1 %3585 }
 0x6d4   : > { %v3333_v4 = vpop.f32.mrf.mxu0  ;;  %v3332_v22 = vadd.f32 %v3331_v16, %v7107_v1  ;;  %v3546_v51 = vpop.permute.xlu0 %3545 }
 0x6d5   : > { %v3721_v24 = vrot.slane %v3720_v27, 4  ;;  %v3729_v2 = vadd.f32 %v3728_v6, %v3631_v32  ;;  %v3334_v31 = vadd.f32 %v3333_v4, %v7101_v45  ;;  %v3440_v20 = vmax.f32 %v3330_v33, 0.0 }
 0x6d6   : > { %v3335_v39 = vpop.f32.mrf.mxu0  ;;  %v3441_v11 = vmax.f32 %v3332_v22, 0.0 }
 0x6d7   : > { %v3722_v46 = vadd.f32 %v3721_v24, %v3720_v27  ;;  %v3730_v55 = vrot.slane %v3729_v2, 4  ;;  %v3336_v59 = vadd.f32 %v3335_v39, %v7101_v45  ;;  %v3442_v62 = vmax.f32 %v3334_v31, 0.0 }
 0x6d8   : > { %v3339_v9 = vpop.f32.mrf.mxu0  ;;  %v3632_v32 = vmul.f32 %v7175_v49, %v3440_v20  ;;  %v7210_v39 = vpop.permute.xlu0 %3573 }
 0x6d9   : > { %v3723_v56 = vrot.slane %v3722_v46, 2  ;;  %v3731_v40 = vadd.f32 %v3730_v55, %v3729_v2  ;;  %v3340_v15 = vadd.f32 %v3339_v9, %v7111_v12  ;;  %v3443_v45 = vmax.f32 %v3336_v59, 0.0  ;;  %v3550_v55 = vpop.permute.xlu1 %3549 }
 0x6da   : > { %v3341_v36 = vpop.f32.mrf.mxu0 }
 0x6db   : > { %v3724_v21 = vadd.f32 %v3723_v56, %v3722_v46  ;;  %v3732_v28 = vrot.slane %v3731_v40, 2  ;;  %v3342_v60 = vadd.f32 %v3341_v36, %v7111_v12  ;;  %v3444_v57 = vmax.f32 %v3340_v15, 0.0 }
 0x6dc   : > { %v3343_v7 = vpop.f32.mrf.mxu0  ;;  %v3634_v12 = vmul.f32 %v7155_v53, %v3442_v62  ;;  %v3635_v24 = vmul.f32 %v7155_v53, %v3443_v45  ;;  %v3633_v46 = vmul.f32 %v7175_v49, %v3441_v11  ;;  %v3562_v22 = vpop.permute.xlu0 %3561 }
 0x6dd   : > { %v3725_v26 = vrot.slane %v3724_v21, 1  ;;  %v3733_v8 = vadd.f32 %v3732_v28, %v3731_v40  ;;  %v3344_v0 = vadd.f32 %v3343_v7, %v7105_v47  ;;  %v3445_v16 = vmax.f32 %v3342_v60, 0.0  ;;  %v3566_v11 = vpop.permute.xlu1 %3565 }
 0x6de   : > { %v3345_v29 = vpop.f32.mrf.mxu0  ;;  %v3636_v2 = vmul.f32 %v3546_v51, %v3444_v57  ;;  %v3736_v36 = vadd.f32 %v3634_v12, %v3632_v32 }
 0x6df   : > { %v3726_v13 = vadd.f32 %v3725_v26, %v3724_v21  ;;  %v3734_v52 = vrot.slane %v3733_v8, 1  ;;  %v3346_v10 = vadd.f32 %v3345_v29, %v7105_v47  ;;  %v3446_v6 = vmax.f32 %v3344_v0, 0.0 }
 0x6e0   : > { %v3349_v61 = vpop.f32.mrf.mxu0  ;;  %v3637_v21 = vmul.f32 %v3546_v51, %v3445_v16  ;;  %v3737_v33 = vadd.f32 %v3736_v36, %v3636_v2 }
 0x6e1   : > { %v3735_v38 = vadd.f32 %v3734_v52, %v3733_v8  ;;  %v7197_v41 = vsel %vm3814_vm6, %v3812_v17, %v3726_v13  ;;  %v3350_v27 = vadd.f32 %v3349_v61, %v7115_v42  ;;  %v3447_v47 = vmax.f32 %v3346_v10, 0.0 }
 0x6e2   : > { %v3351_v23 = vpop.f32.mrf.mxu0  ;;  %v3638_v28 = vmul.f32 %v3550_v55, %v3446_v6  ;;  %v3745_v8 = vadd.f32 %v3635_v24, %v3633_v46 }
 0x6e3   : > { %v7203_v1 = vsel %vm3814_vm6, %v3813_v50, %v3735_v38  ;;  %v3352_v9 = vadd.f32 %v3351_v23, %v7115_v42  ;;  %v3448_v7 = vmax.f32 %v3350_v27, 0.0  ;;  %v3639_v29 = vmul.f32 %v3550_v55, %v3447_v47 }
 0x6e4   : > { %v3353_v18 = vpop.f32.mrf.mxu0  ;;  %v3746_v59 = vadd.f32 %v3745_v8, %v3637_v21  ;;  %v3738_v15 = vadd.f32 %v3737_v33, %v3638_v28 }
 0x6e5   : > { %v3354_v17 = vadd.f32 %v3353_v18, %v7109_v35  ;;  %v3640_v61 = vmul.f32 %v7162_v25, %v3448_v7 }
 0x6e6   : > { %v3355_v4 = vpop.f32.mrf.mxu0  ;;  %v3747_v20 = vadd.f32 %v3746_v59, %v3639_v29  ;;  %v3739_v12 = vrot.slane %v3738_v15, 4 }
 0x6e7   : > { %v3356_v50 = vadd.f32 %v3355_v4, %v7109_v35  ;;  %v3450_v56 = vmax.f32 %v3354_v17, 0.0  ;;  %v3449_v35 = vmax.f32 %v3352_v9, 0.0 }
 0x6e8   : > { %v3359_v40 = vpop.f32.mrf.mxu0 }
 0x6e9   : > { %v3360_v31 = vadd.f32 %v3359_v40, %v7119_v44  ;;  %v3451_v53 = vmax.f32 %v3356_v50, 0.0  ;;  %v3642_v49 = vmul.f32 %v7187_v19, %v3450_v56  ;;  %v3641_v57 = vmul.f32 %v7162_v25, %v3449_v35  ;;  %v7225_v56 = vpop.permute.xlu0 %3589 }
 0x6ea   : > { %v3361_v26 = vpop.f32.mrf.mxu0  ;;  %v3740_v50 = vadd.f32 %v3739_v12, %v3738_v15 }
 0x6eb   : > { %v3452_v13 = vmax.f32 %v3360_v31, 0.0  ;;  %v3362_v52 = vadd.f32 %v3361_v26, %v7119_v44  ;;  %v3643_v38 = vmul.f32 %v7187_v19, %v3451_v53  ;;  %v3754_v44 = vadd.f32 %v3642_v49, %v3640_v61 }
 0x6ec   : > { %v3363_v42 = vpop.f32.mrf.mxu0  ;;  %v3748_v19 = vrot.slane %v3747_v20, 4  ;;  %v3741_v7 = vrot.slane %v3740_v50, 2 }
 0x6ed   : > { %v3364_v62 = vadd.f32 %v3363_v42, %v7113_v54  ;;  %v3644_v60 = vmul.f32 %v3562_v22, %v3452_v13  ;;  %v3453_v51 = vmax.f32 %v3362_v52, 0.0  ;;  %v3763_v17 = vadd.f32 %v3643_v38, %v3641_v57  ;;  %v3578_v15 = vpop.permute.xlu0 %3577 }
 0x6ee   : > { %v3365_v0 = vpop.f32.mrf.mxu0  ;;  %v3749_v9 = vadd.f32 %v3748_v19, %v3747_v20 }
 0x6ef   : > { %v3454_v23 = vmax.f32 %v3364_v62, 0.0  ;;  %v3366_v45 = vadd.f32 %v3365_v0, %v7113_v54  ;;  %v3645_v10 = vmul.f32 %v3562_v22, %v3453_v51  ;;  %v3755_v32 = vadd.f32 %v3754_v44, %v3644_v60 }
 0x6f0   : > { %v3369_v18 = vpop.f32.mrf.mxu0  ;;  %v3750_v13 = vrot.slane %v3749_v9, 2 }
 0x6f1   : > { %v3455_v16 = vmax.f32 %v3366_v45, 0.0  ;;  %v3646_v6 = vmul.f32 %v3566_v11, %v3454_v23  ;;  %v3764_v24 = vadd.f32 %v3763_v17, %v3645_v10  ;;  %v3370_v54 = vadd.f32 %v3369_v18, %v7123_v37  ;;  %v3582_v18 = vpop.permute.xlu1 %3581 }
 0x6f2   : > { %v3371_v27 = vpop.f32.mrf.mxu0  ;;  %v3751_v20 = vadd.f32 %v3750_v13, %v3749_v9 }
 0x6f3   : > { %v3647_v4 = vmul.f32 %v3566_v11, %v3455_v16  ;;  %v3756_v2 = vadd.f32 %v3755_v32, %v3646_v6  ;;  %v3372_v40 = vadd.f32 %v3371_v27, %v7123_v37  ;;  %v3456_v53 = vmax.f32 %v3370_v54, 0.0 }
 0x6f4   : > { %v3373_v47 = vpop.f32.mrf.mxu0  ;;  %v3752_v19 = vrot.slane %v3751_v20, 1 }
 0x6f5   : > { %v3765_v46 = vadd.f32 %v3764_v24, %v3647_v4  ;;  %v3374_v25 = vadd.f32 %v3373_v47, %v7117_v30  ;;  %v3757_v21 = vrot.slane %v3756_v2, 4  ;;  %v3457_v35 = vmax.f32 %v3372_v40, 0.0 }
 0x6f6   : > { %v3375_v55 = vpop.f32.mrf.mxu0  ;;  %v3648_v22 = vmul.f32 %v7179_v63, %v3456_v53 }
 0x6f7   : > { %v3376_v36 = vadd.f32 %v3375_v55, %v7117_v30  ;;  %v3458_v28 = vmax.f32 %v3374_v25, 0.0  ;;  %v3766_v33 = vrot.slane %v3765_v46, 4  ;;  %v3758_v52 = vadd.f32 %v3757_v21, %v3756_v2 }
 0x6f8   : > { %v3379_v31 = vpop.f32.mrf.mxu0  ;;  %v3742_v30 = vadd.f32 %v3741_v7, %v3740_v50  ;;  %v3649_v23 = vmul.f32 %v7179_v63, %v3457_v35 }
 0x6f9   : > { %v3459_v26 = vmax.f32 %v3376_v36, 0.0  ;;  %v3380_v8 = vadd.f32 %v3379_v31, %v7127_v5  ;;  %v3650_v42 = vmul.f32 %v7210_v39, %v3458_v28  ;;  %v3767_v61 = vadd.f32 %v3766_v33, %v3765_v46 }
 0x6fa   : > { %v3381_v29 = vpop.f32.mrf.mxu0  ;;  %v3759_v57 = vrot.slane %v3758_v52, 2  ;;  %v3753_v36 = vadd.f32 %v3752_v19, %v3751_v20 }
 0x6fb   : > { %v3460_v49 = vmax.f32 %v3380_v8, 0.0  ;;  %v3382_v37 = vadd.f32 %v3381_v29, %v7127_v5  ;;  %v3651_v62 = vmul.f32 %v7210_v39, %v3459_v26  ;;  %v3772_v5 = vadd.f32 %v3650_v42, %v3648_v22 }
 0x6fc   : > { %v3383_v59 = vpop.f32.mrf.mxu0  ;;  %v3743_v39 = vrot.slane %v3742_v30, 1  ;;  %v3768_v6 = vrot.slane %v3767_v61, 2  ;;  %v3760_v2 = vadd.f32 %v3759_v57, %v3758_v52 }
 0x6fd   : > { %v3652_v38 = vmul.f32 %v3578_v15, %v3460_v49  ;;  %v3461_v60 = vmax.f32 %v3382_v37, 0.0  ;;  %v3384_v51 = vadd.f32 %v3383_v59, %v7121_v48  ;;  %v3781_v12 = vadd.f32 %v3651_v62, %v3649_v23  ;;  %v3594_v49 = vpop.permute.xlu0 %3593 }
 0x6fe   : > { %v3385_v0 = vpop.f32.mrf.mxu0  ;;  %v3744_v46 = vadd.f32 %v3743_v39, %v3742_v30  ;;  %v3769_v25 = vadd.f32 %v3768_v6, %v3767_v61  ;;  %v3761_v7 = vrot.slane %v3760_v2, 1 }
 0x6ff   : > { %v3386_v45 = vadd.f32 %v3385_v0, %v7121_v48  ;;  %v3653_v44 = vmul.f32 %v3578_v15, %v3461_v60  ;;  %v3462_v10 = vmax.f32 %v3384_v51, 0.0  ;;  %v3773_v17 = vadd.f32 %v3772_v5, %v3652_v38 }
 0x700   : > { %v3389_v11 = vpop.f32.mrf.mxu0  ;;  %v3770_v35 = vrot.slane %v3769_v25, 1  ;;  %v3818_v37 = vsel %vm3817_vm7, %v7197_v41, %v3744_v46  ;;  %v3819_v15 = vsel %vm3817_vm7, %v7203_v1, %v3753_v36  ;;  %v3762_v22 = vadd.f32 %v3761_v7, %v3760_v2  ;;  %v3830_v36 = vpop.permute.xlu1 %3829 }
 0x701   : > { %v3463_v16 = vmax.f32 %v3386_v45, 0.0  ;;  %v3654_v32 = vmul.f32 %v3582_v18, %v3462_v10  ;;  %v3782_v4 = vadd.f32 %v3781_v12, %v3653_v44  ;;  %v3390_v50 = vadd.f32 %v3389_v11, %v7131_v14 }
 0x702   : > { %v3391_v27 = vpop.f32.mrf.mxu0  ;;  %v3771_v23 = vadd.f32 %v3770_v35, %v3769_v25  ;;  %v3820_v39 = vsel %vm261_vm0, %v3818_v37, %v3762_v22 }
 0x703   : > { %v3655_v24 = vmul.f32 %v3582_v18, %v3463_v16  ;;  %v3774_v63 = vadd.f32 %v3773_v17, %v3654_v32  ;;  %v3392_v9 = vadd.f32 %v3391_v27, %v7131_v14  ;;  %v3464_v33 = vmax.f32 %v3390_v50, 0.0  ;;  %v3598_v18 = vpop.permute.xlu0 %3597 }
 0x704   : > { %v3393_v47 = vpop.f32.mrf.mxu0  ;;  %v3821_v27 = vsel %vm261_vm0, %v3819_v15, %v3771_v23 }
 0x705   : > { %v3783_v48 = vadd.f32 %v3782_v4, %v3655_v24  ;;  %v3394_v54 = vadd.f32 %v3393_v47, %v7125_v43  ;;  %v3775_v55 = vrot.slane %v3774_v63, 4  ;;  %v3465_v42 = vmax.f32 %v3392_v9, 0.0 }
 0x706   : > { %v3395_v40 = vpop.f32.mrf.mxu0  ;;  %v3656_v0 = vmul.f32 %v7199_v58, %v3464_v33 }
 0x707   : > { %v3784_v21 = vrot.slane %v3783_v48, 4  ;;  %v3466_v28 = vmax.f32 %v3394_v54, 0.0  ;;  %v3396_v31 = vadd.f32 %v3395_v40, %v7125_v43  ;;  %v3776_v53 = vadd.f32 %v3775_v55, %v3774_v63 }
 0x708   : > { %v3399_v26 = vpop.f32.mrf.mxu0  ;;  %v3657_v45 = vmul.f32 %v7199_v58, %v3465_v42 }
 0x709   : > { %v3785_v8 = vadd.f32 %v3784_v21, %v3783_v48  ;;  %v3467_v29 = vmax.f32 %v3396_v31, 0.0  ;;  %v3400_v13 = vadd.f32 %v3399_v26, %v7133_v34  ;;  %v3777_v52 = vrot.slane %v3776_v53, 2 }
 0x70a   : > { %v3401_v14 = vpop.f32.mrf.mxu0  ;;  %v3658_v43 = vmul.f32 %v7225_v56, %v3466_v28 }
 0x70b   : > { %v3786_v59 = vrot.slane %v3785_v8, 2  ;;  %v3468_v30 = vmax.f32 %v3400_v13, 0.0  ;;  %v3778_v62 = vadd.f32 %v3777_v52, %v3776_v53  ;;  %v3659_v61 = vmul.f32 %v7225_v56, %v3467_v29 }
 0x70c   : > { %v3402_v38 = vadd.f32 %v3401_v14, %v7133_v34  ;;  %v3403_v60 = vpop.f32.mrf.mxu0  ;;  %v3790_v1 = vadd.f32 %v3658_v43, %v3656_v0 }
 0x70d   : > { %v3787_v51 = vadd.f32 %v3786_v59, %v3785_v8  ;;  %v3660_v20 = vmul.f32 %v3594_v49, %v3468_v30  ;;  %v3404_v41 = vadd.f32 %v3403_v60, %v7129_v3  ;;  %v3779_v44 = vrot.slane %v3778_v62, 1 }
 0x70e   : > { %v3469_v57 = vmax.f32 %v3402_v38, 0.0  ;;  %v3405_v5 = vpop.f32.mrf.mxu0  ;;  %v3799_v34 = vadd.f32 %v3659_v61, %v3657_v45 }
 0x70f   : > { %v3470_v10 = vmax.f32 %v3404_v41, 0.0  ;;  %v3406_v11 = vadd.f32 %v3405_v5, %v7129_v3  ;;  %v3788_v56 = vrot.slane %v3787_v51, 1  ;;  %v3780_v16 = vadd.f32 %v3779_v44, %v3778_v62 }
 0x710   : > { %v3661_v12 = vmul.f32 %v3594_v49, %v3469_v57  ;;  %v3791_v6 = vadd.f32 %v3790_v1, %v3660_v20 }
 0x711   : > { %v3662_v17 = vmul.f32 %v3598_v18, %v3470_v10  ;;  %v3471_v32 = vmax.f32 %v3406_v11, 0.0  ;;  %v3789_v58 = vadd.f32 %v3788_v56, %v3787_v51  ;;  %v3823_v19 = vsel %vm3822_vm8, %v3820_v39, %v3780_v16 }
 0x712   : > { %v3800_v4 = vadd.f32 %v3799_v34, %v3661_v12 }
 0x713   : > { %v3792_v24 = vadd.f32 %v3791_v6, %v3662_v17  ;;  %v3663_v3 = vmul.f32 %v3598_v18, %v3471_v32  ;;  %v3824_v2 = vsel %vm3822_vm8, %v3821_v27, %v3789_v58 }
 0x715   : > { %v3793_v63 = vrot.slane %v3792_v24, 4  ;;  %v3801_v47 = vadd.f32 %v3800_v4, %v3663_v3 }
 0x717   : > { %v3794_v48 = vadd.f32 %v3793_v63, %v3792_v24  ;;  %v3802_v50 = vrot.slane %v3801_v47, 4 }
 0x719   : > { %v3795_v54 = vrot.slane %v3794_v48, 2  ;;  %v3803_v46 = vadd.f32 %v3802_v50, %v3801_v47 }
 0x71b   : > { %v3804_v25 = vrot.slane %v3803_v46, 2  ;;  %v3796_v55 = vadd.f32 %v3795_v54, %v3794_v48 }
 0x71d   : > { %v3797_v9 = vrot.slane %v3796_v55, 1  ;;  %v3805_v40 = vadd.f32 %v3804_v25, %v3803_v46 }
 0x71f   : > { %v3798_v21 = vadd.f32 %v3797_v9, %v3796_v55  ;;  %v3806_v28 = vrot.slane %v3805_v40, 1 }
 0x721   : > { %v3807_v31 = vadd.f32 %v3806_v28, %v3805_v40  ;;  %v3826_v7 = vsel %vm3825_vm9, %v3823_v19, %v3798_v21 }
 0x722   : > { %v3832_v53 = vadd.f32 %v3830_v36, %v3826_v7 }
 0x723   : > { %v3827_v26 = vsel %vm3825_vm9, %v3824_v2, %v3807_v31 }
 0x724   : > { %v3833_v8 = vadd.f32 %v3830_v36, %v3827_v26  ;;  %3834 = vst [vmem:[%s172_s8] sm:$0xff] %v3832_v53 }
 0x726   : > { %3835 = vst [vmem:[%s172_s8 + $0x8] sm:$0xff] %v3833_v8 }
 0x727 PF: > { %s13_s12 = sadd.s32 1, %s4637_s12  }
 0x728   : > { %p10_p5 = scmp.ge.s32.totalorder %s13_s12, 4  }
 0x72a   :  { %12 = sbr.rel (!%p10_p5) target bundleno = 1 (0x1), region = 66 }

</bundles_post_ra>
